<compile_context>
chip_gen: v7x
topology: tpu7x:2x2x1
jax: 0.10.0
libtpu: 0.0.40
codegen_flags: <defaults>
</compile_context>

<pallas_src>
import functools

import numpy as np
import jax
import jax.numpy as jnp
from jax.experimental import pallas as pl
from jax.experimental.pallas import tpu as pltpu


# ----------------------------- Pallas kernel -------------------------------

def _mamba_block_kernel(x_ref, rms_ref, inwx_ref, inbx_ref, inwz_ref, inbz_ref,
                        convw_ref, convb_ref, wdt_ref, dtb_ref, wbeta_ref,
                        wgamma_ref, alpha_ref, delta_ref, outw_ref, outb_ref,
                        o_ref,
                        xs_s, dt_s, beta_s, gamma_s, y_s, state_s, hist_s,
                        *, sub, compute_dtype):
    """One (batch-tile, seq-chunk) step of a MambaBlock.

    x block layout is time-major (Lc, Bt, E); inside the kernel it is
    flattened to (Lc*Bt, feat) so every projection is one lane-dense GEMM.
    """
    Lc, Bt, E = x_ref.shape
    K = convw_ref.shape[0]
    R = Lc * Bt
    cd = compute_dtype
    lchunk = pl.program_id(1)

    # Reset the carried scratches at the start of each batch tile's sequence.
    @pl.when(lchunk == 0)
    def _():
        state_s[...] = jnp.zeros_like(state_s)
        hist_s[...] = jnp.zeros_like(hist_s)

    x = x_ref[...].reshape(R, E)

    # RMSNorm.
    # TODO(synk): models.decoder.RMSNorm source not provided; standard RMSNorm
    # (eps=1e-8, fp32) assumed.
    xn = x * jax.lax.rsqrt(jnp.mean(x * x, axis=-1, keepdims=True) + 1e-8) * rms_ref[0]
    xnc = xn.astype(cd)

    # Input projection, lane-aligned split of the fused torch weight.
    xh = jnp.dot(xnc, inwx_ref[...].astype(cd),
                 preferred_element_type=jnp.float32) + inbx_ref[0]     # (R, inner)
    zeta = jnp.dot(xnc, inwz_ref[...].astype(cd),
                   preferred_element_type=jnp.float32) + inbz_ref[0]   # (R, inner)

    # Causal depthwise conv1d: accumulate the K taps in registers; only a
    # ((K-1)*Bt)-row xh history is carried between sequence chunks.
    hist = hist_s[...]                                                  # ((K-1)*Bt, inner)
    ext = jnp.concatenate([hist, xh], axis=0)                           # ((K-1+Lc)*Bt, inner)
    xc = ext[0:R, :] * convw_ref[0]
    for k in range(1, K):                                               # K small & static
        xc = xc + ext[k * Bt:k * Bt + R, :] * convw_ref[k]
    xc = xc + convb_ref[0]
    hist_s[...] = xh[R - (K - 1) * Bt:, :]                              # history for next chunk
    xs = xc * jax.nn.sigmoid(xc)                                        # SiLU -> SSM input

    # SelectiveSSM projections (dt uses the pre-fused W = ssm_w_dt @ dt_w).
    xsc = xs.astype(cd)
    dt = jax.nn.softplus(jnp.dot(xsc, wdt_ref[...].astype(cd),
                                 preferred_element_type=jnp.float32) + dtb_ref[0])
    beta = jnp.dot(xsc, wbeta_ref[...].astype(cd), preferred_element_type=jnp.float32)
    gamma = jnp.dot(xsc, wgamma_ref[...].astype(cd), preferred_element_type=jnp.float32)

    # Stage scan inputs so the serial loop reads contiguous row blocks.
    xs_s[...] = xs
    dt_s[...] = dt
    beta_s[...] = beta
    gamma_s[...] = gamma

    alpha3 = alpha_ref[...][None, :, :]     # (1, inner, state) = -exp(alpha_log), hoisted

    sub_rows = sub * Bt
    n_sub = Lc // sub

    def subchunk(c, s):
        base = pl.multiple_of(c * sub_rows, sub_rows)
        dt_c = dt_s[pl.ds(base, sub_rows), :]                           # (sub*Bt, inner)
        xs_c = xs_s[pl.ds(base, sub_rows), :]
        beta_c = beta_s[pl.ds(base, sub_rows), :]                       # (sub*Bt, state)
        gamma_c = gamma_s[pl.ds(base, sub_rows), :]
        # Off the serial chain: EUP exp + broadcasts, vectorized per sub-chunk.
        dta = jnp.exp(dt_c[:, :, None] * alpha3)                        # (sub*Bt, inner, state)
        dtb = (dt_c * xs_c)[:, :, None] * beta_c[:, None, :]            # (sub*Bt, inner, state)
        states = []
        for j in range(sub):                 # serial chain is the multiply-add only
            s = dta[j * Bt:(j + 1) * Bt] * s + dtb[j * Bt:(j + 1) * Bt]
            states.append(s)
        st = jnp.concatenate(states, axis=0)                            # (sub*Bt, inner, state)
        # One batched gamma lane-reduce per sub-chunk (off the serial path).
        y_c = jnp.sum(st * gamma_c[:, None, :], axis=-1)                # (sub*Bt, inner)
        y_s[pl.ds(base, sub_rows), :] = y_c
        return s

    s_fin = jax.lax.fori_loop(0, n_sub, subchunk, state_s[...])
    state_s[...] = s_fin                                                # carry to next chunk

    # Skip term, gate, output projection, residual.  The residual adds the
    # RMS-normed input, matching the torch module (input_tensor is reassigned
    # to norm(input_tensor) before the final "+ input_tensor").
    y = (y_s[...] + xs * delta_ref[0]) * zeta
    out = jnp.dot(y.astype(cd), outw_ref[...].astype(cd),
                  preferred_element_type=jnp.float32) + outb_ref[0] + xn
    o_ref[...] = out.reshape(Lc, Bt, E)


# ------------------------------- wrappers -----------------------------------

def _full_spec(a):
    return pl.BlockSpec(a.shape, lambda *_, nd=a.ndim: (0,) * nd)


def mamba_block(x3, p, *, lc=None, bt=None, sub=None, compute_dtype=jnp.float32):
    """x3: (L, B, E) time-major activations. Returns same shape."""
    L, B, E = x3.shape
    K, inner = p["conv_w"].shape
    state = p["ssm_w_beta"].shape[1]

    if bt is None:
        bt = 8 if B % 8 == 0 else B          # Bt multiple of 8 (or full B) for clean layout
    if lc is None:
        lc = L
        for cand in (16, 8):
            if L % cand == 0 and cand >= K - 1:
                lc = cand
                break
    if sub is None:
        sub = min(8, lc)
        while lc % sub:
            sub -= 1
    assert B % bt == 0 and L % lc == 0 and lc % sub == 0
    assert lc >= K - 1, "sequence chunk must cover the conv receptive field"

    grid = (B // bt, L // lc)                # (parallel batch tiles, arbitrary seq chunks)

    # Hoisted out of the kernel: invariant tensors computed once per forward.
    alpha = -jnp.exp(p["alpha_log"])                        # (inner, state)
    w_dt = p["ssm_w_dt"] @ p["dt_w"]                        # fused tiny-K dt projection

    weights = (p["rms_w"], p["in_w_x"], p["in_b_x"], p["in_w_z"], p["in_b_z"],
               p["conv_w"], p["conv_b"], w_dt, p["dt_b"], p["ssm_w_beta"],
               p["ssm_w_gamma"], alpha, p["delta"], p["out_w"], p["out_b"])

    x_spec = pl.BlockSpec((lc, bt, E), lambda b, l: (l, b, 0))
    kernel = functools.partial(_mamba_block_kernel, sub=sub, compute_dtype=compute_dtype)

    return pl.pallas_call(
        kernel,
        out_shape=jax.ShapeDtypeStruct((L, B, E), jnp.float32),
        grid=grid,
        in_specs=[x_spec] + [_full_spec(w) for w in weights],
        out_specs=pl.BlockSpec((lc, bt, E), lambda b, l: (l, b, 0)),
        scratch_shapes=[
            pltpu.VMEM((lc * bt, inner), jnp.float32),       # xs (SSM input)
            pltpu.VMEM((lc * bt, inner), jnp.float32),       # dt
            pltpu.VMEM((lc * bt, state), jnp.float32),       # beta
            pltpu.VMEM((lc * bt, state), jnp.float32),       # gamma
            pltpu.VMEM((lc * bt, inner), jnp.float32),       # scan output
            pltpu.VMEM((bt, inner, state), jnp.float32),     # carried SSM state
            pltpu.VMEM(((K - 1) * bt, inner), jnp.float32),  # carried conv history
        ],
        input_output_aliases={0: 0},         # reuse the activation HBM buffer per layer
        compiler_params=pltpu.CompilerParams(
            dimension_semantics=("parallel", "arbitrary"),
            vmem_limit_bytes=48 * 1024 * 1024),
    )(x3, *weights)


def mamba_forward(x, mp, layer_params, compute_dtype=jnp.float32):
    # Tiny model-level MLP + embedding stay in plain XLA (a Pallas launch for a
    # few hundred FLOPs is pure overhead).
    h = x @ mp["mlp_w1"] + mp["mlp_b1"][0]
    h = h * jax.nn.sigmoid(h)
    h = h @ mp["mlp_w2"] + mp["mlp_b2"][0]                            # (B, F)
    # TODO(synk): models.decoder.Embedding/DeEmbedding source not provided; implemented
    # as per-scalar Linear(1->E) embed and Linear(E->1) de-embed (embed_depth unused).
    z = h[:, :, None] * mp["embed_w"] + mp["embed_b"]                 # (B, F, E)

    # Time-major (L, B, E): each chunk's GEMMs see a fused M dimension and each
    # scan step reads a contiguous (Bt, feat) row block.
    z3 = jnp.transpose(z, (1, 0, 2))
    for p in layer_params:
        z3 = mamba_block(z3, p, compute_dtype=compute_dtype)          # Pallas

    zn = z3 * jax.lax.rsqrt(jnp.mean(z3 * z3, -1, keepdims=True) + 1e-8) * mp["final_rms_w"]
    y = jnp.einsum('lbe,e->lb', zn, mp["deembed_w"]) + mp["deembed_b"]
    return y.T                                                        # (B, F)


# --------------------------- pure-JAX reference ------------------------------

def _ref_block(x, p):
    B, L, _ = x.shape
    K, inner = p["conv_w"].shape
    state = p["alpha_log"].shape[1]
    xn = x * jax.lax.rsqrt(jnp.mean(x * x, -1, keepdims=True) + 1e-8) * p["rms_w"][0]
    xh = xn @ p["in_w_x"] + p["in_b_x"][0]
    zeta = xn @ p["in_w_z"] + p["in_b_z"][0]
    xp_ = jnp.concatenate([jnp.zeros((B, K - 1, inner), jnp.float32), xh], axis=1)
    acc = jnp.zeros((B, L, inner), jnp.float32)
    for k in range(K):
        acc = acc + xp_[:, k:k + L, :] * p["conv_w"][k]
    xc = acc + p["conv_b"][0]
    xs = xc * jax.nn.sigmoid(xc)
    dt = jax.nn.softplus((xs @ p["ssm_w_dt"]) @ p["dt_w"] + p["dt_b"][0])
    beta = xs @ p["ssm_w_beta"]
    gamma = xs @ p["ssm_w_gamma"]
    alpha = -jnp.exp(p["alpha_log"])
    dtA = jnp.exp(jnp.einsum('bld,dn->bldn', dt, alpha))
    dtB = jnp.einsum('bld,bln,bld->bldn', dt, beta, xs)
    s = jnp.zeros((B, inner, state), jnp.float32)
    ys = []
    for i in range(L):
        s = dtA[:, i] * s + dtB[:, i]
        ys.append(jnp.einsum('bdn,bn->bd', s, gamma[:, i]))
    y = jnp.stack(ys, axis=1) + xs * p["delta"][0]
    y = y * zeta
    return y @ p["out_w"] + p["out_b"][0] + xn


def ref_forward(x, mp, layer_params):
    h = x @ mp["mlp_w1"] + mp["mlp_b1"][0]
    h = h * jax.nn.sigmoid(h)
    h = h @ mp["mlp_w2"] + mp["mlp_b2"][0]
    z = h[:, :, None] * mp["embed_w"] + mp["embed_b"]
    for p in layer_params:
        z = _ref_block(z, p)
    zn = z * jax.lax.rsqrt(jnp.mean(z * z, -1, keepdims=True) + 1e-8) * mp["final_rms_w"]
    return jnp.einsum('bfe,e->bf', zn, mp["deembed_w"]) + mp["deembed_b"]


# ------------------------------ param init -----------------------------------

def init_params(key, cfg):
    E, inner = cfg["embed_dim"], cfg["inner_dim"]
    K, dts, state = cfg["kernel_size"], cfg["dt_size"], cfg["state_dim"]
    hid, inp, outp = cfg["hidden_size"], cfg["input_size"], cfg["output_size"]
    assert inner == state, "torch split([dt, inner, inner]) requires state_dim == inner_dim"

    def w(k, shape, scale=0.2):
        return scale * jax.random.normal(k, shape, jnp.float32)

    keys = iter(jax.random.split(key, 128))
    mp = {
        "mlp_w1": w(next(keys), (inp, hid)), "mlp_b1": w(next(keys), (1, hid), 0.05),
        "mlp_w2": w(next(keys), (hid, outp)), "mlp_b2": w(next(keys), (1, outp), 0.05),
        "embed_w": w(next(keys), (E,)), "embed_b": w(next(keys), (E,), 0.05),
        "deembed_w": w(next(keys), (E,)), "deembed_b": w(next(keys), (), 0.05),
        "final_rms_w": jnp.ones((E,), jnp.float32),
    }
    layers = []
    alpha_log = jnp.log(jnp.tile(jnp.arange(1, state + 1, dtype=jnp.float32)[None, :],
                                 (inner, 1)))                        # (inner, state)
    for _ in range(cfg["n_layers"]):
        layers.append({
            "rms_w": jnp.ones((1, E), jnp.float32),
            # lane-aligned splits of the fused torch weights:
            "in_w_x": w(next(keys), (E, inner)), "in_b_x": w(next(keys), (1, inner), 0.05),
            "in_w_z": w(next(keys), (E, inner)), "in_b_z": w(next(keys), (1, inner), 0.05),
            "conv_w": w(next(keys), (K, inner)), "conv_b": w(next(keys), (1, inner), 0.05),
            "ssm_w_dt": w(next(keys), (inner, dts)),
            "ssm_w_beta": w(next(keys), (inner, state)),
            "ssm_w_gamma": w(next(keys), (inner, state)),
            "dt_w": w(next(keys), (dts, inner)), "dt_b": w(next(keys), (1, inner), 0.05),
            "alpha_log": alpha_log,
            "delta": jnp.ones((1, inner), jnp.float32),
            "out_w": w(next(keys), (inner, E)), "out_b": w(next(keys), (1, E), 0.05),
        })
    return mp, layers


# --------------------------------- main ---------------------------------------

if __name__ == "__main__":
    cfg = dict(embed_dim=8, inner_dim=8, kernel_size=3, dt_size=4, state_dim=8,
               n_layers=2, hidden_size=16, input_size=6, output_size=32, embed_depth=2)
    batch = 16   # -> 2 batch tiles of 8 ("parallel"), seq 32 -> 2 chunks of 16, 2 sub-chunks of 8

    root = jax.random.PRNGKey(0)
    k_param, k_x = jax.random.split(root)
    mp, layer_params = init_params(k_param, cfg)
    x = jax.random.normal(k_x, (batch, cfg["input_size"]), jnp.float32)

    fwd = jax.jit(lambda xi: mamba_forward(xi, mp, layer_params))
    out = jax.block_until_ready(fwd(x))
    assert out.shape == (batch, cfg["output_size"])

    ref = jax.block_until_ready(ref_forward(x, mp, layer_params))
    np.testing.assert_allclose(np.asarray(out), np.asarray(ref), rtol=2e-3, atol=2e-3)

    print("KERNEL_OK")
</pallas_src>

<mosaic_0001>
module attributes {stable_mosaic.version = 11 : i64} {
  func.func @_mamba_block_kernel(%arg0: i32, %arg1: i32, %arg2: memref<16x8x8xf32, #tpu.memory_space<vmem>>, %arg3: memref<1x8xf32, #tpu.memory_space<vmem>>, %arg4: memref<8x8xf32, #tpu.memory_space<vmem>>, %arg5: memref<1x8xf32, #tpu.memory_space<vmem>>, %arg6: memref<8x8xf32, #tpu.memory_space<vmem>>, %arg7: memref<1x8xf32, #tpu.memory_space<vmem>>, %arg8: memref<3x8xf32, #tpu.memory_space<vmem>>, %arg9: memref<1x8xf32, #tpu.memory_space<vmem>>, %arg10: memref<8x8xf32, #tpu.memory_space<vmem>>, %arg11: memref<1x8xf32, #tpu.memory_space<vmem>>, %arg12: memref<8x8xf32, #tpu.memory_space<vmem>>, %arg13: memref<8x8xf32, #tpu.memory_space<vmem>>, %arg14: memref<8x8xf32, #tpu.memory_space<vmem>>, %arg15: memref<1x8xf32, #tpu.memory_space<vmem>>, %arg16: memref<8x8xf32, #tpu.memory_space<vmem>>, %arg17: memref<1x8xf32, #tpu.memory_space<vmem>>, %arg18: memref<16x8x8xf32, #tpu.memory_space<vmem>>, %arg19: memref<128x8xf32, #tpu.memory_space<vmem>>, %arg20: memref<128x8xf32, #tpu.memory_space<vmem>>, %arg21: memref<128x8xf32, #tpu.memory_space<vmem>>, %arg22: memref<128x8xf32, #tpu.memory_space<vmem>>, %arg23: memref<128x8xf32, #tpu.memory_space<vmem>>, %arg24: memref<8x8x8xf32, #tpu.memory_space<vmem>>, %arg25: memref<16x8xf32, #tpu.memory_space<vmem>>) attributes {dimension_semantics = [#tpu.dimension_semantics<parallel>, #tpu.dimension_semantics<arbitrary>], iteration_bounds = array<i64: 2, 2>, scalar_prefetch = 0 : i64, scratch_operands = 7 : i64, tpu.core_type = #tpu.core_type<tc>, window_params = [{transform_indices = @transform_0, window_bounds = array<i64: 16, 8, 8>}, {pipeline_mode = #tpu.pipeline_mode<synchronous>, transform_indices = @transform_1, window_bounds = array<i64: 1, 8>}, {pipeline_mode = #tpu.pipeline_mode<synchronous>, transform_indices = @transform_2, window_bounds = array<i64: 8, 8>}, {pipeline_mode = #tpu.pipeline_mode<synchronous>, transform_indices = @transform_3, window_bounds = array<i64: 1, 8>}, {pipeline_mode = #tpu.pipeline_mode<synchronous>, transform_indices = @transform_4, window_bounds = array<i64: 8, 8>}, {pipeline_mode = #tpu.pipeline_mode<synchronous>, transform_indices = @transform_5, window_bounds = array<i64: 1, 8>}, {pipeline_mode = #tpu.pipeline_mode<synchronous>, transform_indices = @transform_6, window_bounds = array<i64: 3, 8>}, {pipeline_mode = #tpu.pipeline_mode<synchronous>, transform_indices = @transform_7, window_bounds = array<i64: 1, 8>}, {pipeline_mode = #tpu.pipeline_mode<synchronous>, transform_indices = @transform_8, window_bounds = array<i64: 8, 8>}, {pipeline_mode = #tpu.pipeline_mode<synchronous>, transform_indices = @transform_9, window_bounds = array<i64: 1, 8>}, {pipeline_mode = #tpu.pipeline_mode<synchronous>, transform_indices = @transform_10, window_bounds = array<i64: 8, 8>}, {pipeline_mode = #tpu.pipeline_mode<synchronous>, transform_indices = @transform_11, window_bounds = array<i64: 8, 8>}, {pipeline_mode = #tpu.pipeline_mode<synchronous>, transform_indices = @transform_12, window_bounds = array<i64: 8, 8>}, {pipeline_mode = #tpu.pipeline_mode<synchronous>, transform_indices = @transform_13, window_bounds = array<i64: 1, 8>}, {pipeline_mode = #tpu.pipeline_mode<synchronous>, transform_indices = @transform_14, window_bounds = array<i64: 8, 8>}, {pipeline_mode = #tpu.pipeline_mode<synchronous>, transform_indices = @transform_15, window_bounds = array<i64: 1, 8>}, {transform_indices = @transform_16, window_bounds = array<i64: 16, 8, 8>}]} {
    %c0_i32 = arith.constant 0 : i32
    %0 = arith.cmpi eq, %arg1, %c0_i32 : i32
    %1 = arith.extui %0 : i1 to i32
    %c0_i32_0 = arith.constant 0 : i32
    %2 = arith.cmpi ne, %1, %c0_i32_0 : i32
    scf.if %2 {
      %cst_71 = arith.constant 0.000000e+00 : f32
      %122 = vector.broadcast %cst_71 : f32 to vector<8x8x8xf32>
      %c0_72 = arith.constant 0 : index
      %c0_73 = arith.constant 0 : index
      %c0_74 = arith.constant 0 : index
      %123 = vector.load %arg24[%c0_72, %c0_73, %c0_74] : memref<8x8x8xf32, #tpu.memory_space<vmem>>, vector<8x8x8xf32>
      tpu.vector_store %arg24[%c0_72, %c0_73, %c0_74], %122 {strides = array<i32>} : memref<8x8x8xf32, #tpu.memory_space<vmem>>, vector<8x8x8xf32>,
      %cst_75 = arith.constant 0.000000e+00 : f32
      %124 = vector.broadcast %cst_75 : f32 to vector<16x8xf32>
      %c0_76 = arith.constant 0 : index
      %c0_77 = arith.constant 0 : index
      %125 = vector.load %arg25[%c0_76, %c0_77] : memref<16x8xf32, #tpu.memory_space<vmem>>, vector<16x8xf32>
      tpu.vector_store %arg25[%c0_76, %c0_77], %124 {strides = array<i32>} : memref<16x8xf32, #tpu.memory_space<vmem>>, vector<16x8xf32>,
    } else {
    }
    %c0 = arith.constant 0 : index
    %c0_1 = arith.constant 0 : index
    %c0_2 = arith.constant 0 : index
    %3 = vector.load %arg2[%c0, %c0_1, %c0_2] : memref<16x8x8xf32, #tpu.memory_space<vmem>>, vector<16x8x8xf32>
    %4 = vector.shape_cast %3 : vector<16x8x8xf32> to vector<128x8xf32>
    %5 = arith.mulf %4, %4 : vector<128x8xf32>
    %cst = arith.constant dense<0.000000e+00> : vector<128xf32>
    %6 = vector.multi_reduction <add>, %5, %cst [1] : vector<128x8xf32> to vector<128xf32>
    %7 = vector.shape_cast %6 : vector<128xf32> to vector<128x1xf32>
    %cst_3 = arith.constant 8.000000e+00 : f32
    %8 = vector.broadcast %cst_3 : f32 to vector<128x1xf32>
    %9 = arith.divf %7, %8 : vector<128x1xf32>
    %cst_4 = arith.constant 9.99999993E-9 : f32
    %10 = vector.broadcast %cst_4 : f32 to vector<128x1xf32>
    %11 = arith.addf %9, %10 : vector<128x1xf32>
    %12 = math.rsqrt %11 : vector<128x1xf32>
    %13 = vector.broadcast %12 : vector<128x1xf32> to vector<128x8xf32>
    %14 = arith.mulf %4, %13 : vector<128x8xf32>
    %c0_5 = arith.constant 0 : index
    %c0_6 = arith.constant 0 : index
    %15 = vector.load %arg3[%c0_5, %c0_6] : memref<1x8xf32, #tpu.memory_space<vmem>>, vector<1x8xf32>
    %16 = vector.shape_cast %15 : vector<1x8xf32> to vector<8xf32>
    %17 = vector.shape_cast %16 : vector<8xf32> to vector<1x8xf32>
    %18 = vector.broadcast %17 : vector<1x8xf32> to vector<128x8xf32>
    %19 = arith.mulf %14, %18 : vector<128x8xf32>
    %c0_7 = arith.constant 0 : index
    %c0_8 = arith.constant 0 : index
    %20 = vector.load %arg4[%c0_7, %c0_8] : memref<8x8xf32, #tpu.memory_space<vmem>>, vector<8x8xf32>
    %cst_9 = arith.constant dense<0.000000e+00> : vector<128x8xf32>
    %21 = tpu.matmul %19, %20, %cst_9 {dimension_numbers = #tpu.dot_dimension_numbers<[1], [0], [0], [1], [0, 0, 1, 1], [], []>} : vector<128x8xf32>, vector<8x8xf32>, vector<128x8xf32> -> vector<128x8xf32>
    %c0_10 = arith.constant 0 : index
    %c0_11 = arith.constant 0 : index
    %22 = vector.load %arg5[%c0_10, %c0_11] : memref<1x8xf32, #tpu.memory_space<vmem>>, vector<1x8xf32>
    %23 = vector.shape_cast %22 : vector<1x8xf32> to vector<8xf32>
    %24 = vector.shape_cast %23 : vector<8xf32> to vector<1x8xf32>
    %25 = vector.broadcast %24 : vector<1x8xf32> to vector<128x8xf32>
    %26 = arith.addf %21, %25 : vector<128x8xf32>
    %c0_12 = arith.constant 0 : index
    %c0_13 = arith.constant 0 : index
    %27 = vector.load %arg6[%c0_12, %c0_13] : memref<8x8xf32, #tpu.memory_space<vmem>>, vector<8x8xf32>
    %cst_14 = arith.constant dense<0.000000e+00> : vector<128x8xf32>
    %28 = tpu.matmul %19, %27, %cst_14 {dimension_numbers = #tpu.dot_dimension_numbers<[1], [0], [0], [1], [0, 0, 1, 1], [], []>} : vector<128x8xf32>, vector<8x8xf32>, vector<128x8xf32> -> vector<128x8xf32>
    %c0_15 = arith.constant 0 : index
    %c0_16 = arith.constant 0 : index
    %29 = vector.load %arg7[%c0_15, %c0_16] : memref<1x8xf32, #tpu.memory_space<vmem>>, vector<1x8xf32>
    %30 = vector.shape_cast %29 : vector<1x8xf32> to vector<8xf32>
    %31 = vector.shape_cast %30 : vector<8xf32> to vector<1x8xf32>
    %32 = vector.broadcast %31 : vector<1x8xf32> to vector<128x8xf32>
    %33 = arith.addf %28, %32 : vector<128x8xf32>
    %c0_17 = arith.constant 0 : index
    %c0_18 = arith.constant 0 : index
    %34 = vector.load %arg25[%c0_17, %c0_18] : memref<16x8xf32, #tpu.memory_space<vmem>>, vector<16x8xf32>
    %35 = tpu.concatenate %34, %26 in 0 : vector<16x8xf32>, vector<128x8xf32> -> vector<144x8xf32>
    %36 = vector.extract_strided_slice %35 {offsets = [0, 0], sizes = [128, 8], strides = [1, 1]} : vector<144x8xf32> to vector<128x8xf32>
    %c0_19 = arith.constant 0 : index
    %c0_20 = arith.constant 0 : index
    %37 = vector.load %arg8[%c0_19, %c0_20] : memref<3x8xf32, #tpu.memory_space<vmem>>, vector<1x8xf32>
    %38 = vector.shape_cast %37 : vector<1x8xf32> to vector<8xf32>
    %39 = vector.shape_cast %38 : vector<8xf32> to vector<1x8xf32>
    %40 = vector.broadcast %39 : vector<1x8xf32> to vector<128x8xf32>
    %41 = arith.mulf %36, %40 : vector<128x8xf32>
    %42 = vector.extract_strided_slice %35 {offsets = [8, 0], sizes = [128, 8], strides = [1, 1]} : vector<144x8xf32> to vector<128x8xf32>
    %c1 = arith.constant 1 : index
    %c0_21 = arith.constant 0 : index
    %43 = vector.load %arg8[%c1, %c0_21] : memref<3x8xf32, #tpu.memory_space<vmem>>, vector<1x8xf32>
    %44 = vector.shape_cast %43 : vector<1x8xf32> to vector<8xf32>
    %45 = vector.shape_cast %44 : vector<8xf32> to vector<1x8xf32>
    %46 = vector.broadcast %45 : vector<1x8xf32> to vector<128x8xf32>
    %47 = arith.mulf %42, %46 : vector<128x8xf32>
    %48 = arith.addf %41, %47 : vector<128x8xf32>
    %49 = vector.extract_strided_slice %35 {offsets = [16, 0], sizes = [128, 8], strides = [1, 1]} : vector<144x8xf32> to vector<128x8xf32>
    %c2 = arith.constant 2 : index
    %c0_22 = arith.constant 0 : index
    %50 = vector.load %arg8[%c2, %c0_22] : memref<3x8xf32, #tpu.memory_space<vmem>>, vector<1x8xf32>
    %51 = vector.shape_cast %50 : vector<1x8xf32> to vector<8xf32>
    %52 = vector.shape_cast %51 : vector<8xf32> to vector<1x8xf32>
    %53 = vector.broadcast %52 : vector<1x8xf32> to vector<128x8xf32>
    %54 = arith.mulf %49, %53 : vector<128x8xf32>
    %55 = arith.addf %48, %54 : vector<128x8xf32>
    %c0_23 = arith.constant 0 : index
    %c0_24 = arith.constant 0 : index
    %56 = vector.load %arg9[%c0_23, %c0_24] : memref<1x8xf32, #tpu.memory_space<vmem>>, vector<1x8xf32>
    %57 = vector.shape_cast %56 : vector<1x8xf32> to vector<8xf32>
    %58 = vector.shape_cast %57 : vector<8xf32> to vector<1x8xf32>
    %59 = vector.broadcast %58 : vector<1x8xf32> to vector<128x8xf32>
    %60 = arith.addf %55, %59 : vector<128x8xf32>
    %61 = vector.extract_strided_slice %26 {offsets = [112, 0], sizes = [16, 8], strides = [1, 1]} : vector<128x8xf32> to vector<16x8xf32>
    %c0_25 = arith.constant 0 : index
    %c0_26 = arith.constant 0 : index
    %62 = vector.load %arg25[%c0_25, %c0_26] : memref<16x8xf32, #tpu.memory_space<vmem>>, vector<16x8xf32>
    tpu.vector_store %arg25[%c0_25, %c0_26], %61 {strides = array<i32>} : memref<16x8xf32, #tpu.memory_space<vmem>>, vector<16x8xf32>,
    %63 = arith.negf %60 : vector<128x8xf32>
    %64 = math.exp %63 : vector<128x8xf32>
    %cst_27 = arith.constant 1.000000e+00 : f32
    %65 = vector.broadcast %cst_27 : f32 to vector<128x8xf32>
    %66 = arith.addf %65, %64 : vector<128x8xf32>
    %67 = arith.divf %65, %66 : vector<128x8xf32>
    %68 = arith.mulf %60, %67 : vector<128x8xf32>
    %c0_28 = arith.constant 0 : index
    %c0_29 = arith.constant 0 : index
    %69 = vector.load %arg10[%c0_28, %c0_29] : memref<8x8xf32, #tpu.memory_space<vmem>>, vector<8x8xf32>
    %cst_30 = arith.constant dense<0.000000e+00> : vector<128x8xf32>
    %70 = tpu.matmul %68, %69, %cst_30 {dimension_numbers = #tpu.dot_dimension_numbers<[1], [0], [0], [1], [0, 0, 1, 1], [], []>} : vector<128x8xf32>, vector<8x8xf32>, vector<128x8xf32> -> vector<128x8xf32>
    %c0_31 = arith.constant 0 : index
    %c0_32 = arith.constant 0 : index
    %71 = vector.load %arg11[%c0_31, %c0_32] : memref<1x8xf32, #tpu.memory_space<vmem>>, vector<1x8xf32>
    %72 = vector.shape_cast %71 : vector<1x8xf32> to vector<8xf32>
    %73 = vector.shape_cast %72 : vector<8xf32> to vector<1x8xf32>
    %74 = vector.broadcast %73 : vector<1x8xf32> to vector<128x8xf32>
    %75 = arith.addf %70, %74 : vector<128x8xf32>
    %cst_33 = arith.constant 0.000000e+00 : f32
    %76 = vector.broadcast %cst_33 : f32 to vector<128x8xf32>
    %77 = arith.maximumf %75, %76 : vector<128x8xf32>
    %78 = vector.broadcast %cst_33 : f32 to vector<128x8xf32>
    %79 = arith.subf %75, %78 : vector<128x8xf32>
    %80 = arith.cmpf one, %79, %79 : vector<128x8xf32>
    %81 = vector.broadcast %cst_33 : f32 to vector<128x8xf32>
    %82 = arith.addf %75, %81 : vector<128x8xf32>
    %83 = math.absf %79 : vector<128x8xf32>
    %cst_34 = arith.constant 0.000000e+00 : f32
    %84 = vector.broadcast %cst_34 : f32 to vector<128x8xf32>
    %85 = arith.subf %84, %83 : vector<128x8xf32>
    %86 = math.exp %85 : vector<128x8xf32>
    %87 = math.log1p %86 : vector<128x8xf32>
    %88 = arith.addf %77, %87 : vector<128x8xf32>
    %89 = arith.select %80, %82, %88 : vector<128x8xi1>, vector<128x8xf32>
    %c0_35 = arith.constant 0 : index
    %c0_36 = arith.constant 0 : index
    %90 = vector.load %arg12[%c0_35, %c0_36] : memref<8x8xf32, #tpu.memory_space<vmem>>, vector<8x8xf32>
    %cst_37 = arith.constant dense<0.000000e+00> : vector<128x8xf32>
    %91 = tpu.matmul %68, %90, %cst_37 {dimension_numbers = #tpu.dot_dimension_numbers<[1], [0], [0], [1], [0, 0, 1, 1], [], []>} : vector<128x8xf32>, vector<8x8xf32>, vector<128x8xf32> -> vector<128x8xf32>
    %c0_38 = arith.constant 0 : index
    %c0_39 = arith.constant 0 : index
    %92 = vector.load %arg13[%c0_38, %c0_39] : memref<8x8xf32, #tpu.memory_space<vmem>>, vector<8x8xf32>
    %cst_40 = arith.constant dense<0.000000e+00> : vector<128x8xf32>
    %93 = tpu.matmul %68, %92, %cst_40 {dimension_numbers = #tpu.dot_dimension_numbers<[1], [0], [0], [1], [0, 0, 1, 1], [], []>} : vector<128x8xf32>, vector<8x8xf32>, vector<128x8xf32> -> vector<128x8xf32>
    %c0_41 = arith.constant 0 : index
    %c0_42 = arith.constant 0 : index
    %94 = vector.load %arg19[%c0_41, %c0_42] : memref<128x8xf32, #tpu.memory_space<vmem>>, vector<128x8xf32>
    tpu.vector_store %arg19[%c0_41, %c0_42], %68 {strides = array<i32>} : memref<128x8xf32, #tpu.memory_space<vmem>>, vector<128x8xf32>,
    %c0_43 = arith.constant 0 : index
    %c0_44 = arith.constant 0 : index
    %95 = vector.load %arg20[%c0_43, %c0_44] : memref<128x8xf32, #tpu.memory_space<vmem>>, vector<128x8xf32>
    tpu.vector_store %arg20[%c0_43, %c0_44], %89 {strides = array<i32>} : memref<128x8xf32, #tpu.memory_space<vmem>>, vector<128x8xf32>,
    %c0_45 = arith.constant 0 : index
    %c0_46 = arith.constant 0 : index
    %96 = vector.load %arg21[%c0_45, %c0_46] : memref<128x8xf32, #tpu.memory_space<vmem>>, vector<128x8xf32>
    tpu.vector_store %arg21[%c0_45, %c0_46], %91 {strides = array<i32>} : memref<128x8xf32, #tpu.memory_space<vmem>>, vector<128x8xf32>,
    %c0_47 = arith.constant 0 : index
    %c0_48 = arith.constant 0 : index
    %97 = vector.load %arg22[%c0_47, %c0_48] : memref<128x8xf32, #tpu.memory_space<vmem>>, vector<128x8xf32>
    tpu.vector_store %arg22[%c0_47, %c0_48], %93 {strides = array<i32>} : memref<128x8xf32, #tpu.memory_space<vmem>>, vector<128x8xf32>,
    %c0_49 = arith.constant 0 : index
    %c0_50 = arith.constant 0 : index
    %98 = vector.load %arg14[%c0_49, %c0_50] : memref<8x8xf32, #tpu.memory_space<vmem>>, vector<8x8xf32>
    %99 = vector.shape_cast %98 : vector<8x8xf32> to vector<1x8x8xf32>
    %c0_51 = arith.constant 0 : index
    %c0_52 = arith.constant 0 : index
    %c0_53 = arith.constant 0 : index
    %100 = vector.load %arg24[%c0_51, %c0_52, %c0_53] : memref<8x8x8xf32, #tpu.memory_space<vmem>>, vector<8x8x8xf32>
    %c0_i32_54 = arith.constant 0 : i32
    %c2_i32 = arith.constant 2 : i32
    %101 = arith.addi %c0_i32_54, %c2_i32 : i32
    %c1_i32 = arith.constant 1 : i32
    %102 = scf.for %arg26 = %c0_i32_54 to %101 step %c1_i32 iter_args(%arg27 = %100) -> (vector<8x8x8xf32>)  : i32 {
      %c64_i32 = arith.constant 64 : i32
      %122 = arith.muli %arg26, %c64_i32 : i32
      %123 = tpu.assume_multiple %122, 64 : i32
      %124 = arith.index_cast %123 : i32 to index
      %c0_71 = arith.constant 0 : index
      %125 = vector.load %arg20[%124, %c0_71] : memref<128x8xf32, #tpu.memory_space<vmem>>, vector<64x8xf32>
      %126 = arith.index_cast %123 : i32 to index
      %c0_72 = arith.constant 0 : index
      %127 = vector.load %arg19[%126, %c0_72] : memref<128x8xf32, #tpu.memory_space<vmem>>, vector<64x8xf32>
      %128 = arith.index_cast %123 : i32 to index
      %c0_73 = arith.constant 0 : index
      %129 = vector.load %arg21[%128, %c0_73] : memref<128x8xf32, #tpu.memory_space<vmem>>, vector<64x8xf32>
      %130 = arith.index_cast %123 : i32 to index
      %c0_74 = arith.constant 0 : index
      %131 = vector.load %arg22[%130, %c0_74] : memref<128x8xf32, #tpu.memory_space<vmem>>, vector<64x8xf32>
      %132 = vector.shape_cast %125 : vector<64x8xf32> to vector<64x8x1xf32>
      %133 = vector.broadcast %132 : vector<64x8x1xf32> to vector<64x8x8xf32>
      %134 = vector.broadcast %99 : vector<1x8x8xf32> to vector<64x8x8xf32>
      %135 = arith.mulf %133, %134 : vector<64x8x8xf32>
      %136 = math.exp %135 : vector<64x8x8xf32>
      %137 = arith.mulf %125, %127 : vector<64x8xf32>
      %138 = vector.shape_cast %137 : vector<64x8xf32> to vector<64x8x1xf32>
      %139 = vector.shape_cast %129 : vector<64x8xf32> to vector<64x1x8xf32>
      %140 = vector.broadcast %138 : vector<64x8x1xf32> to vector<64x8x8xf32>
      %141 = vector.broadcast %139 : vector<64x1x8xf32> to vector<64x8x8xf32>
      %142 = arith.mulf %140, %141 : vector<64x8x8xf32>
      %143 = vector.extract_strided_slice %136 {offsets = [0, 0, 0], sizes = [8, 8, 8], strides = [1, 1, 1]} : vector<64x8x8xf32> to vector<8x8x8xf32>
      %144 = arith.mulf %143, %arg27 : vector<8x8x8xf32>
      %145 = vector.extract_strided_slice %142 {offsets = [0, 0, 0], sizes = [8, 8, 8], strides = [1, 1, 1]} : vector<64x8x8xf32> to vector<8x8x8xf32>
      %146 = arith.addf %144, %145 : vector<8x8x8xf32>
      %147 = vector.extract_strided_slice %136 {offsets = [8, 0, 0], sizes = [8, 8, 8], strides = [1, 1, 1]} : vector<64x8x8xf32> to vector<8x8x8xf32>
      %148 = arith.mulf %147, %146 : vector<8x8x8xf32>
      %149 = vector.extract_strided_slice %142 {offsets = [8, 0, 0], sizes = [8, 8, 8], strides = [1, 1, 1]} : vector<64x8x8xf32> to vector<8x8x8xf32>
      %150 = arith.addf %148, %149 : vector<8x8x8xf32>
      %151 = vector.extract_strided_slice %136 {offsets = [16, 0, 0], sizes = [8, 8, 8], strides = [1, 1, 1]} : vector<64x8x8xf32> to vector<8x8x8xf32>
      %152 = arith.mulf %151, %150 : vector<8x8x8xf32>
      %153 = vector.extract_strided_slice %142 {offsets = [16, 0, 0], sizes = [8, 8, 8], strides = [1, 1, 1]} : vector<64x8x8xf32> to vector<8x8x8xf32>
      %154 = arith.addf %152, %153 : vector<8x8x8xf32>
      %155 = vector.extract_strided_slice %136 {offsets = [24, 0, 0], sizes = [8, 8, 8], strides = [1, 1, 1]} : vector<64x8x8xf32> to vector<8x8x8xf32>
      %156 = arith.mulf %155, %154 : vector<8x8x8xf32>
      %157 = vector.extract_strided_slice %142 {offsets = [24, 0, 0], sizes = [8, 8, 8], strides = [1, 1, 1]} : vector<64x8x8xf32> to vector<8x8x8xf32>
      %158 = arith.addf %156, %157 : vector<8x8x8xf32>
      %159 = vector.extract_strided_slice %136 {offsets = [32, 0, 0], sizes = [8, 8, 8], strides = [1, 1, 1]} : vector<64x8x8xf32> to vector<8x8x8xf32>
      %160 = arith.mulf %159, %158 : vector<8x8x8xf32>
      %161 = vector.extract_strided_slice %142 {offsets = [32, 0, 0], sizes = [8, 8, 8], strides = [1, 1, 1]} : vector<64x8x8xf32> to vector<8x8x8xf32>
      %162 = arith.addf %160, %161 : vector<8x8x8xf32>
      %163 = vector.extract_strided_slice %136 {offsets = [40, 0, 0], sizes = [8, 8, 8], strides = [1, 1, 1]} : vector<64x8x8xf32> to vector<8x8x8xf32>
      %164 = arith.mulf %163, %162 : vector<8x8x8xf32>
      %165 = vector.extract_strided_slice %142 {offsets = [40, 0, 0], sizes = [8, 8, 8], strides = [1, 1, 1]} : vector<64x8x8xf32> to vector<8x8x8xf32>
      %166 = arith.addf %164, %165 : vector<8x8x8xf32>
      %167 = vector.extract_strided_slice %136 {offsets = [48, 0, 0], sizes = [8, 8, 8], strides = [1, 1, 1]} : vector<64x8x8xf32> to vector<8x8x8xf32>
      %168 = arith.mulf %167, %166 : vector<8x8x8xf32>
      %169 = vector.extract_strided_slice %142 {offsets = [48, 0, 0], sizes = [8, 8, 8], strides = [1, 1, 1]} : vector<64x8x8xf32> to vector<8x8x8xf32>
      %170 = arith.addf %168, %169 : vector<8x8x8xf32>
      %171 = vector.extract_strided_slice %136 {offsets = [56, 0, 0], sizes = [8, 8, 8], strides = [1, 1, 1]} : vector<64x8x8xf32> to vector<8x8x8xf32>
      %172 = arith.mulf %171, %170 : vector<8x8x8xf32>
      %173 = vector.extract_strided_slice %142 {offsets = [56, 0, 0], sizes = [8, 8, 8], strides = [1, 1, 1]} : vector<64x8x8xf32> to vector<8x8x8xf32>
      %174 = arith.addf %172, %173 : vector<8x8x8xf32>
      %175 = tpu.concatenate %146, %150, %154, %158, %162, %166, %170, %174 in 0 : vector<8x8x8xf32>, vector<8x8x8xf32>, vector<8x8x8xf32>, vector<8x8x8xf32>, vector<8x8x8xf32>, vector<8x8x8xf32>, vector<8x8x8xf32>, vector<8x8x8xf32> -> vector<64x8x8xf32>
      %176 = vector.shape_cast %131 : vector<64x8xf32> to vector<64x1x8xf32>
      %177 = vector.broadcast %176 : vector<64x1x8xf32> to vector<64x8x8xf32>
      %178 = arith.mulf %175, %177 : vector<64x8x8xf32>
      %cst_75 = arith.constant dense<0.000000e+00> : vector<64x8xf32>
      %179 = vector.multi_reduction <add>, %178, %cst_75 [2] : vector<64x8x8xf32> to vector<64x8xf32>
      %180 = arith.index_cast %123 : i32 to index
      %c0_76 = arith.constant 0 : index
      %181 = vector.load %arg23[%180, %c0_76] : memref<128x8xf32, #tpu.memory_space<vmem>>, vector<64x8xf32>
      tpu.vector_store %arg23[%180, %c0_76], %179 {strides = array<i32>} : memref<128x8xf32, #tpu.memory_space<vmem>>, vector<64x8xf32>,
      scf.yield %174 : vector<8x8x8xf32>
    }
    %c2_i32_55 = arith.constant 2 : i32
    %c0_56 = arith.constant 0 : index
    %c0_57 = arith.constant 0 : index
    %c0_58 = arith.constant 0 : index
    %103 = vector.load %arg24[%c0_56, %c0_57, %c0_58] : memref<8x8x8xf32, #tpu.memory_space<vmem>>, vector<8x8x8xf32>
    tpu.vector_store %arg24[%c0_56, %c0_57, %c0_58], %102 {strides = array<i32>} : memref<8x8x8xf32, #tpu.memory_space<vmem>>, vector<8x8x8xf32>,
    %c0_59 = arith.constant 0 : index
    %c0_60 = arith.constant 0 : index
    %104 = vector.load %arg23[%c0_59, %c0_60] : memref<128x8xf32, #tpu.memory_space<vmem>>, vector<128x8xf32>
    %c0_61 = arith.constant 0 : index
    %c0_62 = arith.constant 0 : index
    %105 = vector.load %arg15[%c0_61, %c0_62] : memref<1x8xf32, #tpu.memory_space<vmem>>, vector<1x8xf32>
    %106 = vector.shape_cast %105 : vector<1x8xf32> to vector<8xf32>
    %107 = vector.shape_cast %106 : vector<8xf32> to vector<1x8xf32>
    %108 = vector.broadcast %107 : vector<1x8xf32> to vector<128x8xf32>
    %109 = arith.mulf %68, %108 : vector<128x8xf32>
    %110 = arith.addf %104, %109 : vector<128x8xf32>
    %111 = arith.mulf %110, %33 : vector<128x8xf32>
    %c0_63 = arith.constant 0 : index
    %c0_64 = arith.constant 0 : index
    %112 = vector.load %arg16[%c0_63, %c0_64] : memref<8x8xf32, #tpu.memory_space<vmem>>, vector<8x8xf32>
    %cst_65 = arith.constant dense<0.000000e+00> : vector<128x8xf32>
    %113 = tpu.matmul %111, %112, %cst_65 {dimension_numbers = #tpu.dot_dimension_numbers<[1], [0], [0], [1], [0, 0, 1, 1], [], []>} : vector<128x8xf32>, vector<8x8xf32>, vector<128x8xf32> -> vector<128x8xf32>
    %c0_66 = arith.constant 0 : index
    %c0_67 = arith.constant 0 : index
    %114 = vector.load %arg17[%c0_66, %c0_67] : memref<1x8xf32, #tpu.memory_space<vmem>>, vector<1x8xf32>
    %115 = vector.shape_cast %114 : vector<1x8xf32> to vector<8xf32>
    %116 = vector.shape_cast %115 : vector<8xf32> to vector<1x8xf32>
    %117 = vector.broadcast %116 : vector<1x8xf32> to vector<128x8xf32>
    %118 = arith.addf %113, %117 : vector<128x8xf32>
    %119 = arith.addf %118, %19 : vector<128x8xf32>
    %120 = vector.shape_cast %119 : vector<128x8xf32> to vector<16x8x8xf32>
    %c0_68 = arith.constant 0 : index
    %c0_69 = arith.constant 0 : index
    %c0_70 = arith.constant 0 : index
    %121 = vector.load %arg18[%c0_68, %c0_69, %c0_70] : memref<16x8x8xf32, #tpu.memory_space<vmem>>, vector<16x8x8xf32>
    tpu.vector_store %arg18[%c0_68, %c0_69, %c0_70], %120 {strides = array<i32>} : memref<16x8x8xf32, #tpu.memory_space<vmem>>, vector<16x8x8xf32>,
    return
  }
  func.func @transform_0(%arg0: i32, %arg1: i32) -> (i32, i32, i32) {
    %c0_i32 = arith.constant 0 : i32
    %c0_i32_0 = arith.constant 0 : i32
    return %arg1, %arg0, %c0_i32 : i32, i32, i32
  }
  func.func @transform_1(%arg0: i32, %arg1: i32) -> (i32, i32) {
    %c0_i32 = arith.constant 0 : i32
    %c0_i32_0 = arith.constant 0 : i32
    %c0_i32_1 = arith.constant 0 : i32
    return %c0_i32, %c0_i32_0 : i32, i32
  }
  func.func @transform_2(%arg0: i32, %arg1: i32) -> (i32, i32) {
    %c0_i32 = arith.constant 0 : i32
    %c0_i32_0 = arith.constant 0 : i32
    %c0_i32_1 = arith.constant 0 : i32
    return %c0_i32, %c0_i32_0 : i32, i32
  }
  func.func @transform_3(%arg0: i32, %arg1: i32) -> (i32, i32) {
    %c0_i32 = arith.constant 0 : i32
    %c0_i32_0 = arith.constant 0 : i32
    %c0_i32_1 = arith.constant 0 : i32
    return %c0_i32, %c0_i32_0 : i32, i32
  }
  func.func @transform_4(%arg0: i32, %arg1: i32) -> (i32, i32) {
    %c0_i32 = arith.constant 0 : i32
    %c0_i32_0 = arith.constant 0 : i32
    %c0_i32_1 = arith.constant 0 : i32
    return %c0_i32, %c0_i32_0 : i32, i32
  }
  func.func @transform_5(%arg0: i32, %arg1: i32) -> (i32, i32) {
    %c0_i32 = arith.constant 0 : i32
    %c0_i32_0 = arith.constant 0 : i32
    %c0_i32_1 = arith.constant 0 : i32
    return %c0_i32, %c0_i32_0 : i32, i32
  }
  func.func @transform_6(%arg0: i32, %arg1: i32) -> (i32, i32) {
    %c0_i32 = arith.constant 0 : i32
    %c0_i32_0 = arith.constant 0 : i32
    %c0_i32_1 = arith.constant 0 : i32
    return %c0_i32, %c0_i32_0 : i32, i32
  }
  func.func @transform_7(%arg0: i32, %arg1: i32) -> (i32, i32) {
    %c0_i32 = arith.constant 0 : i32
    %c0_i32_0 = arith.constant 0 : i32
    %c0_i32_1 = arith.constant 0 : i32
    return %c0_i32, %c0_i32_0 : i32, i32
  }
  func.func @transform_8(%arg0: i32, %arg1: i32) -> (i32, i32) {
    %c0_i32 = arith.constant 0 : i32
    %c0_i32_0 = arith.constant 0 : i32
    %c0_i32_1 = arith.constant 0 : i32
    return %c0_i32, %c0_i32_0 : i32, i32
  }
  func.func @transform_9(%arg0: i32, %arg1: i32) -> (i32, i32) {
    %c0_i32 = arith.constant 0 : i32
    %c0_i32_0 = arith.constant 0 : i32
    %c0_i32_1 = arith.constant 0 : i32
    return %c0_i32, %c0_i32_0 : i32, i32
  }
  func.func @transform_10(%arg0: i32, %arg1: i32) -> (i32, i32) {
    %c0_i32 = arith.constant 0 : i32
    %c0_i32_0 = arith.constant 0 : i32
    %c0_i32_1 = arith.constant 0 : i32
    return %c0_i32, %c0_i32_0 : i32, i32
  }
  func.func @transform_11(%arg0: i32, %arg1: i32) -> (i32, i32) {
    %c0_i32 = arith.constant 0 : i32
    %c0_i32_0 = arith.constant 0 : i32
    %c0_i32_1 = arith.constant 0 : i32
    return %c0_i32, %c0_i32_0 : i32, i32
  }
  func.func @transform_12(%arg0: i32, %arg1: i32) -> (i32, i32) {
    %c0_i32 = arith.constant 0 : i32
    %c0_i32_0 = arith.constant 0 : i32
    %c0_i32_1 = arith.constant 0 : i32
    return %c0_i32, %c0_i32_0 : i32, i32
  }
  func.func @transform_13(%arg0: i32, %arg1: i32) -> (i32, i32) {
    %c0_i32 = arith.constant 0 : i32
    %c0_i32_0 = arith.constant 0 : i32
    %c0_i32_1 = arith.constant 0 : i32
    return %c0_i32, %c0_i32_0 : i32, i32
  }
  func.func @transform_14(%arg0: i32, %arg1: i32) -> (i32, i32) {
    %c0_i32 = arith.constant 0 : i32
    %c0_i32_0 = arith.constant 0 : i32
    %c0_i32_1 = arith.constant 0 : i32
    return %c0_i32, %c0_i32_0 : i32, i32
  }
  func.func @transform_15(%arg0: i32, %arg1: i32) -> (i32, i32) {
    %c0_i32 = arith.constant 0 : i32
    %c0_i32_0 = arith.constant 0 : i32
    %c0_i32_1 = arith.constant 0 : i32
    return %c0_i32, %c0_i32_0 : i32, i32
  }
  func.func @transform_16(%arg0: i32, %arg1: i32) -> (i32, i32, i32) {
    %c0_i32 = arith.constant 0 : i32
    %c0_i32_0 = arith.constant 0 : i32
    return %arg1, %arg0, %c0_i32 : i32, i32, i32
  }
}

</mosaic_0001>

<bundles_post_ra>
// kernel: _lambda_.2
= control target key start
LH: loop header
LB: loop body
LE: loop exit
PB: predicated region body
PF: predicated region fallthrough
CT: control target
= control target key end

     0   :  { %s10844_s0 = inlined_call_operand.vmem [shape: f32[32,16,8], index: 0, kind: input, shape index: {}, may-alias: {0,16}]   ;;  %s10845_s1 = inlined_call_operand.vmem [shape: f32[1,8], index: 1, kind: input, shape index: {}, may-alias: {1,13}]   ;;  %s10846_s2 = inlined_call_operand.vmem [shape: f32[8,8], index: 2, kind: input, shape index: {}]   ;;  %s10847_s3 = inlined_call_operand.vmem [shape: f32[1,8], index: 3, kind: input, shape index: {}]   ;;  %s10848_s4 = inlined_call_operand.vmem [shape: f32[8,8], index: 4, kind: input, shape index: {}]   ;;  %s10849_s5 = inlined_call_operand.vmem [shape: f32[1,8], index: 5, kind: input, shape index: {}]   ;;  %s10850_s6 = inlined_call_operand.vmem [shape: f32[3,8], index: 6, kind: input, shape index: {}]   ;;  %s10851_s7 = inlined_call_operand.vmem [shape: f32[1,8], index: 7, kind: input, shape index: {}]   ;;  %s10852_s8 = inlined_call_operand.vmem [shape: f32[8,8], index: 8, kind: input, shape index: {}]   ;;  %s10853_s9 = inlined_call_operand.vmem [shape: f32[1,8], index: 9, kind: input, shape index: {}]   ;;  %s10854_s10 = inlined_call_operand.vmem [shape: f32[8,8], index: 10, kind: input, shape index: {}]   ;;  %s10855_s11 = inlined_call_operand.vmem [shape: f32[8,8], index: 11, kind: input, shape index: {}]   ;;  %s10856_s12 = inlined_call_operand.vmem [shape: f32[8,8], index: 12, kind: input, shape index: {}]   ;;  %s10857_s13 = inlined_call_operand.vmem [shape: f32[1,8], index: 13, kind: input, shape index: {}, may-alias: {1,13}]   ;;  %s10858_s14 = inlined_call_operand.vmem [shape: f32[8,8], index: 14, kind: input, shape index: {}]   ;;  %s10859_s15 = inlined_call_operand.vmem [shape: f32[1,8], index: 15, kind: input, shape index: {}]   ;;  %s10860_s16 = inlined_call_operand.vmem [shape: f32[32,16,8], index: 16, kind: output, shape index: {}, may-alias: {0,16}]  }
   0x1   :  { %10944 = sst [smem:[#allocation169_spill]] %s10844_s0 }
   0x2   :  { %10945 = sst [smem:[#allocation170_spill]] %s10857_s13 }
   0x3   :  { %10946 = sst [smem:[#allocation171_spill]] %s10858_s14 }
   0x4   :  { %10947 = sst [smem:[#allocation172_spill]] %s10859_s15 }
   0x5   :  { %10948 = sst [smem:[#allocation173_spill]] %s10860_s16 }
   0x6   :  { %s7271_s21 = smov 0   ;;  %s7273_s22 = smov 0  }
   0x7   :  { %s7275_s23 = smov 0   ;;  %s7277_s24 = smov 0  }
   0x8   :  { %s7279_s25 = smov 0   ;;  %s7281_s26 = smov 0  }
   0x9   :  { %s7283_s27 = smov 0  }
   0xa LB: > { %10949 = sst [smem:[#allocation11_spill]] %s7134_s24  ;;  %s35_s28 = sadd.s32 1, %s7138_s25  ;;  %s7146_s27 = sphi %s7283_s27, %s26_s27   ;;  %s7142_s26 = sphi %s7281_s26, %s11458_s26   ;;  %s7138_s25 = sphi %s7279_s25, %s11457_s25   ;;  %s7134_s24 = sphi %s7277_s24, %s11456_s24   ;;  %s7130_s23 = sphi %s7275_s23, %s11455_s23   ;;  %s7126_s22 = sphi %s7273_s22, %s11454_s22   ;;  %s7122_s21 = sphi %s7271_s21, %s11453_s21  }
   0xb   : > { %p36_p0 = scmp.ge.s32.totalorder %s35_s28, 2  ;;  %s38_s29 = sadd.s32 1, %s7142_s26 }
   0xc   : > { %s6221_s30 = sadd.s32 4294967295, %s7146_s27   ;;  %p54_p1 = scmp.ne.s32.totalorder %s7126_s22, %s7122_s21 }
   0xd   : > { %s11460_s28 = smov (%p36_p0, %s35_s28), 0  ;;  %s11462_s29 = smov (!%p36_p0, %s38_s29), %s7142_s26 }
   0xe   : > { %10950 = sst [smem:[#allocation12_spill]] %s11460_s28  ;;  %p55_p2 = scmp.eq.s32.totalorder %s7146_s27, 0 }
   0xf   : > { %p40_p3 = scmp.ge.s32.totalorder %s11462_s29, 2  ;;  %p401_p4 = scmp.eq.s32.totalorder %s6221_s30, 3 }
  0x10   : > { %s42_s0 = ssub.s32 %s7138_s25, %s11460_s28  ;;  %p56_p5 = por %p55_p2, %p54_p1 }
  0x11   : > { %s11464_s29 = smov (%p40_p3, %s11462_s29), 0  ;;  %p7319_p6 = por %p401_p4, %p54_p1 }
  0x12   : > { %10951 = sst [smem:[#allocation13_spill]] %s11464_s29  ;;  %s43_s18 = ssub.s32 %s7142_s26, %s11464_s29 }
  0x13   : > { %s10952_s17 = scalar_select %p7319_p6, 1, 0 }
  0x14   : > { %s44_s19 = sor.u32 %s43_s18, %s42_s0  ;;  %s47_s20 = sadd.s32 1, %s7126_s22 }
  0x15   : > { %10953 = sst [smem:[#allocation14_spill]] %s10952_s17  ;;  %p45_p7 = scmp.eq.s32.totalorder %s44_s19, 0 }
  0x16   : > { %p6224_p8 = scmp.ge.s32.totalorder %s7146_s27, 4 }
  0x17   : > { %s7327_s16 = scalar_select %p45_p7, %s7126_s22, %s47_s20  }
  0x18   : > { %468 = sbr.rel (%p6224_p8) target bundleno = 49 (0x31), region = 76 }
  0x1f   : > { %471 = sbr.rel (!%p56_p5) target bundleno = 49 (0x31), region = 80  ;;  %s473_s30 = sand.u32 (%p56_p5), 1, %s7126_s22  }
  0x20   : > { %s6362_s28 = sshll.u32 (%p56_p5), %s7138_s25, 5  ;;  %s6225_s24 = sshll.u32 (%p56_p5), %s473_s30, 7 }
  0x21   : > { %s478_s15 = sadd.s32 (%p56_p5), %s7142_s26, %s6362_s28  ;;  %s10954_s29 = sld [smem:[#allocation169_spill]] (%p56_p5) }
  0x22   : > { %s6228_s13 = sshll.u32 (%p56_p5), %s478_s15, 3  ;;  %s475_s18 = scalar_lea.vmem (%p56_p5), [#allocation9], %s6225_s24 }
  0x27   : > { %s7336_s0 = scalar_lea.vmem %s10954_s29, %s6228_s13 }
  0x28   : > { %v538_v0 = vld [vmem:[%s7336_s0] sm:$0xff]  ;;  %v540_v1 = vld [vmem:[%s7336_s0 + $0x10] sm:$0xff] }
  0x29   : > { %v542_v2 = vld [vmem:[%s7336_s0 + $0x20] sm:$0xff]  ;;  %539 = vst [vmem:[%s475_s18] sm:$0xff] %v538_v0  ;;  %541 = vst [vmem:[%s475_s18 + $0x8] sm:$0xff] %v540_v1  ;;  %v544_v3 = vld [vmem:[%s7336_s0 + $0x30] sm:$0xff] }
  0x2a   : > { %543 = vst [vmem:[%s475_s18 + $0x10] sm:$0xff] %v542_v2  ;;  %v546_v4 = vld [vmem:[%s7336_s0 + $0x40] sm:$0xff]  ;;  %v548_v5 = vld [vmem:[%s7336_s0 + $0x50] sm:$0xff]  ;;  %545 = vst [vmem:[%s475_s18 + $0x18] sm:$0xff] %v544_v3 }
  0x2b   : > { %547 = vst [vmem:[%s475_s18 + $0x20] sm:$0xff] %v546_v4  ;;  %549 = vst [vmem:[%s475_s18 + $0x28] sm:$0xff] %v548_v5  ;;  %v550_v6 = vld [vmem:[%s7336_s0 + $0x60] sm:$0xff]  ;;  %v552_v7 = vld [vmem:[%s7336_s0 + $0x70] sm:$0xff] }
  0x2c   : > { %v554_v8 = vld [vmem:[%s7336_s0 + $0x80] sm:$0xff]  ;;  %551 = vst [vmem:[%s475_s18 + $0x30] sm:$0xff] %v550_v6  ;;  %553 = vst [vmem:[%s475_s18 + $0x38] sm:$0xff] %v552_v7  ;;  %v556_v9 = vld [vmem:[%s7336_s0 + $0x90] sm:$0xff] }
  0x2d   : > { %555 = vst [vmem:[%s475_s18 + $0x40] sm:$0xff] %v554_v8  ;;  %v558_v10 = vld [vmem:[%s7336_s0 + $0xa0] sm:$0xff]  ;;  %v560_v11 = vld [vmem:[%s7336_s0 + $0xb0] sm:$0xff]  ;;  %557 = vst [vmem:[%s475_s18 + $0x48] sm:$0xff] %v556_v9 }
  0x2e   : > { %559 = vst [vmem:[%s475_s18 + $0x50] sm:$0xff] %v558_v10  ;;  %561 = vst [vmem:[%s475_s18 + $0x58] sm:$0xff] %v560_v11  ;;  %v562_v12 = vld [vmem:[%s7336_s0 + $0xc0] sm:$0xff]  ;;  %v564_v13 = vld [vmem:[%s7336_s0 + $0xd0] sm:$0xff] }
  0x2f   : > { %v566_v14 = vld [vmem:[%s7336_s0 + $0xe0] sm:$0xff]  ;;  %563 = vst [vmem:[%s475_s18 + $0x60] sm:$0xff] %v562_v12  ;;  %565 = vst [vmem:[%s475_s18 + $0x68] sm:$0xff] %v564_v13  ;;  %v568_v15 = vld [vmem:[%s7336_s0 + $0xf0] sm:$0xff] }
  0x30   : > { %567 = vst [vmem:[%s475_s18 + $0x70] sm:$0xff] %v566_v14  ;;  %569 = vst [vmem:[%s475_s18 + $0x78] sm:$0xff] %v568_v15 }
  0x31 PF: > { %p6229_p9 = scmp.ge.s32.totalorder %s7146_s27, 1  ;;  %p574_p10 = scmp.lt.s32.totalorder %s7146_s27, 5 }
  0x33   : > { %p575_p11 = pnand %p6229_p9, %p574_p10 }
  0x35   : > { %578 = sbr.rel (%p575_p11) target bundleno = 1668 (0x684), region = 118 }
  0x3c   : > { %s581_s13 = sand.u32 1, %s7122_s21   ;;  %p6232_p12 = scmp.ne.s32.totalorder %s7130_s23, 0 }
  0x3d   : > { %s6230_s14 = sshll.u32 %s581_s13, 7  ;;  %vm635_vm0 = vcmask (!%p6232_p12), 64512   ;;  %v7184_v16 = vmov (!%p6232_p12), 0.0  }
  0x3e   : > { %s7357_s15 = scalar_lea.vmem [#allocation9], %s6230_s14  ;;  %s7359_s24 = scalar_lea.vmem [#allocation10], %s6230_s14  ;;  %636 = vst.msk [vmem:[#allocation7] sm:$0xff] (!%p6232_p12), %vm635_vm0, %v7184_v16  ;;  %637 = vst.msk [vmem:[#allocation7 + $0x8] sm:$0xff] (!%p6232_p12), %vm635_vm0, %v7184_v16 }
  0x3f   : > { %634 = sbr.rel (%p6232_p12) target bundleno = 70 (0x46), region = 126  ;;  %638 = vst.msk [vmem:[#allocation7 + $0x10] sm:$0xff] (!%p6232_p12), %vm635_vm0, %v7184_v16  ;;  %639 = vst.msk [vmem:[#allocation7 + $0x18] sm:$0xff] (!%p6232_p12), %vm635_vm0, %v7184_v16 }
  0x40   : > { %640 = vst.msk [vmem:[#allocation7 + $0x20] sm:$0xff] (!%p6232_p12), %vm635_vm0, %v7184_v16  ;;  %641 = vst.msk [vmem:[#allocation7 + $0x28] sm:$0xff] (!%p6232_p12), %vm635_vm0, %v7184_v16 }
  0x41   : > { %642 = vst.msk [vmem:[#allocation7 + $0x30] sm:$0xff] (!%p6232_p12), %vm635_vm0, %v7184_v16  ;;  %643 = vst.msk [vmem:[#allocation7 + $0x38] sm:$0xff] (!%p6232_p12), %vm635_vm0, %v7184_v16 }
  0x42   : > { %644 = vst.msk [vmem:[#allocation8] sm:$0xff] (!%p6232_p12), %vm635_vm0, %v7184_v16  ;;  %645 = vst.msk [vmem:[#allocation8 + $0x8] sm:$0xff] (!%p6232_p12), %vm635_vm0, %v7184_v16 }
  0x46 PF: > { %v7363_v17 = vld [vmem:[%s7357_s15] sm:$0xff]  ;;  %vm678_vm1 = vcmask 64512   ;;  %v7366_v18 = vld [vmem:[%s7357_s15 + $0x10] sm:$0xff]  ;;  %v7369_v19 = vld [vmem:[%s7357_s15 + $0x8] sm:$0xff]  ;;  %s8360_s19 = smov 0  }
  0x47   : > { %v662_v20 = vmul.f32 %v7363_v17, %v7363_v17  ;;  %v664_v21 = vmul.f32 %v7366_v18, %v7366_v18  ;;  %v663_v22 = vmul.f32 %v7369_v19, %v7369_v19  ;;  %v7378_v23 = vld [vmem:[%s7357_s15 + $0x18] sm:$0xff]  ;;  %v7383_v25 = vld [vmem:[%s7357_s15 + $0x20] sm:$0xff]  ;;  %v7386_v26 = vld [vmem:[%s7357_s15 + $0x28] sm:$0xff] }
  0x48   : > { %v665_v24 = vmul.f32 %v7378_v23, %v7378_v23  ;;  %v666_v31 = vmul.f32 %v7383_v25, %v7383_v25  ;;  %v667_v32 = vmul.f32 %v7386_v26, %v7386_v26  ;;  %v7397_v33 = vld [vmem:[%s7357_s15 + $0x30] sm:$0xff]  ;;  %v7400_v34 = vld [vmem:[%s7357_s15 + $0x38] sm:$0xff]  ;;  %v7409_v39 = vld [vmem:[%s7357_s15 + $0x40] sm:$0xff] }
  0x49   : > { %v679_v27 = vsel %vm678_vm1, %v662_v20, 0.0  ;;  %v685_v28 = vsel %vm678_vm1, %v664_v21, 0.0  ;;  %v682_v29 = vsel %vm678_vm1, %v663_v22, 0.0  ;;  %v668_v37 = vmul.f32 %v7397_v33, %v7397_v33  ;;  %v7412_v40 = vld [vmem:[%s7357_s15 + $0x48] sm:$0xff]  ;;  %v7421_v45 = vld [vmem:[%s7357_s15 + $0x50] sm:$0xff]  ;;  %v7424_v46 = vld [vmem:[%s7357_s15 + $0x58] sm:$0xff] }
  0x4a   : > { %680 = vadd.xlane.f32.xlu0 %v679_v27  ;;  %686 = vadd.xlane.f32.xlu1 %v685_v28  ;;  %v688_v30 = vsel %vm678_vm1, %v665_v24, 0.0  ;;  %v691_v35 = vsel %vm678_vm1, %v666_v31, 0.0  ;;  %v694_v36 = vsel %vm678_vm1, %v667_v32, 0.0  ;;  %v669_v38 = vmul.f32 %v7400_v34, %v7400_v34  ;;  %v7433_v51 = vld [vmem:[%s7357_s15 + $0x60] sm:$0xff]  ;;  %v7436_v52 = vld [vmem:[%s7357_s15 + $0x68] sm:$0xff]  ;;  %v7445_v57 = vld [vmem:[%s7357_s15 + $0x70] sm:$0xff] }
  0x4b   : > { %v697_v41 = vsel %vm678_vm1, %v668_v37, 0.0  ;;  %v670_v43 = vmul.f32 %v7409_v39, %v7409_v39  ;;  %v671_v44 = vmul.f32 %v7412_v40, %v7412_v40  ;;  %v672_v49 = vmul.f32 %v7421_v45, %v7421_v45  ;;  %v7448_v58 = vld [vmem:[%s7357_s15 + $0x78] sm:$0xff]  ;;  %v815_v1 = vld [vmem:[%s10846_s2] sm:$0xff] }
  0x4c   : > { %v700_v42 = vsel %vm678_vm1, %v669_v38, 0.0  ;;  %v673_v50 = vmul.f32 %v7424_v46, %v7424_v46  ;;  %v674_v55 = vmul.f32 %v7433_v51, %v7433_v51  ;;  %v675_v56 = vmul.f32 %v7436_v52, %v7436_v52  ;;  %v1016_v2 = vld [vmem:[%s10848_s4] sm:$0xff]  ;;  %6466 = vmatprep.subr.mxu0 %v815_v1 }
  0x4d   : > { %v703_v47 = vsel %vm678_vm1, %v670_v43, 0.0  ;;  %v706_v48 = vsel %vm678_vm1, %v671_v44, 0.0  ;;  %v709_v53 = vsel %vm678_vm1, %v672_v49, 0.0  ;;  %v676_v61 = vmul.f32 %v7445_v57, %v7445_v57  ;;  %6492 = vmatprep.subr.mxu1 %v1016_v2  ;;  %6467 = vmatpush3.msra.mxu0 %v815_v1 }
  0x4e   : > { %683 = vadd.xlane.f32.xlu0 %v682_v29  ;;  %689 = vadd.xlane.f32.xlu1 %v688_v30  ;;  %v712_v54 = vsel %vm678_vm1, %v673_v50, 0.0  ;;  %v715_v59 = vsel %vm678_vm1, %v674_v55, 0.0  ;;  %v718_v60 = vsel %vm678_vm1, %v675_v56, 0.0  ;;  %v677_v62 = vmul.f32 %v7448_v58, %v7448_v58 }
  0x4f   : > { %v721_v63 = vsel %vm678_vm1, %v676_v61, 0.0  ;;  %6493 = vmatpush3.msra.mxu1 %v1016_v2 }
  0x50   : > { %v724_v0 = vsel %vm678_vm1, %v677_v62, 0.0 }
  0x52   : > { %692 = vadd.xlane.f32.xlu0 %v691_v35  ;;  %695 = vadd.xlane.f32.xlu1 %v694_v36  ;;  %v7467_v36 = vld [vmem:[%s10845_s1] ss:$0 sm:$0xff] }
  0x56   : > { %698 = vadd.xlane.f32.xlu0 %v697_v41  ;;  %701 = vadd.xlane.f32.xlu1 %v700_v42 }
  0x5a   : > { %704 = vadd.xlane.f32.xlu0 %v703_v47  ;;  %707 = vadd.xlane.f32.xlu1 %v706_v48 }
  0x5e   : > { %710 = vadd.xlane.f32.xlu0 %v709_v53  ;;  %713 = vadd.xlane.f32.xlu1 %v712_v54 }
  0x62   : > { %716 = vadd.xlane.f32.xlu0 %v715_v59  ;;  %719 = vadd.xlane.f32.xlu1 %v718_v60 }
  0x66   : > { %722 = vadd.xlane.f32.xlu0 %v721_v63  ;;  %725 = vadd.xlane.f32.xlu1 %v724_v0 }
  0xd7   : > { %v681_v3 = vpop.xlane.xlu0 %680  ;;  %v687_v4 = vpop.xlane.xlu1 %686 }
  0xd8   : > { %v728_v5 = vmul.f32 0.125, %v681_v3  ;;  %v730_v6 = vmul.f32 0.125, %v687_v4 }
  0xda   : > { %v744_v7 = vadd.f32 1e-08, %v728_v5  ;;  %v746_v8 = vadd.f32 1e-08, %v730_v6 }
  0xdb   : > { %v684_v9 = vpop.xlane.xlu0 %683  ;;  %v690_v10 = vpop.xlane.xlu1 %689 }
  0xdc   : > { %6752 = vrsqrt.f32 %v744_v7  ;;  %v729_v11 = vmul.f32 0.125, %v684_v9  ;;  %v731_v12 = vmul.f32 0.125, %v690_v10 }
  0xdd   : > { %6754 = vrsqrt.f32 %v746_v8 }
  0xde   : > { %v745_v13 = vadd.f32 1e-08, %v729_v11  ;;  %v747_v14 = vadd.f32 1e-08, %v731_v12 }
  0xdf   : > { %v693_v15 = vpop.xlane.xlu0 %692  ;;  %v696_v16 = vpop.xlane.xlu1 %695 }
  0xe0   : > { %6756 = vrsqrt.f32 %v745_v13  ;;  %v732_v20 = vmul.f32 0.125, %v693_v15  ;;  %v733_v21 = vmul.f32 0.125, %v696_v16 }
  0xe1   : > { %6758 = vrsqrt.f32 %v747_v14 }
  0xe2   : > { %v748_v22 = vadd.f32 1e-08, %v732_v20  ;;  %v749_v24 = vadd.f32 1e-08, %v733_v21 }
  0xe3   : > { %v699_v27 = vpop.xlane.xlu0 %698  ;;  %v702_v28 = vpop.xlane.xlu1 %701 }
  0xe4   : > { %6760 = vrsqrt.f32 %v748_v22  ;;  %v734_v29 = vmul.f32 0.125, %v699_v27  ;;  %v735_v30 = vmul.f32 0.125, %v702_v28 }
  0xe5   : > { %6762 = vrsqrt.f32 %v749_v24 }
  0xe6   : > { %v6753_v31 = vpop.eup %6752  ;;  %v750_v32 = vadd.f32 1e-08, %v734_v29  ;;  %v751_v35 = vadd.f32 1e-08, %v735_v30 }
  0xe7   : > { %v6755_v37 = vpop.eup %6754  ;;  %v705_v38 = vpop.xlane.xlu0 %704  ;;  %v776_v42 = vmul.f32 %v6753_v31, %v7363_v17 }
  0xe8   : > { %v708_v41 = vpop.xlane.xlu1 %707  ;;  %6764 = vrsqrt.f32 %v750_v32  ;;  %v736_v43 = vmul.f32 0.125, %v705_v38  ;;  %v778_v47 = vmul.f32 %v6755_v37, %v7366_v18 }
  0xe9   : > { %v737_v44 = vmul.f32 0.125, %v708_v41  ;;  %6766 = vrsqrt.f32 %v751_v35  ;;  %v7472_v48 = vmul.f32 %v7467_v36, %v776_v42 }
  0xea   : > { %v6757_v49 = vpop.eup %6756  ;;  %v752_v50 = vadd.f32 1e-08, %v736_v43  ;;  %v7480_v18 = vmul.f32 %v7467_v36, %v778_v47 }
  0xeb   : > { %10955 = vst [vmem:[#allocation15_spill] sm:$0xff] %v7472_v48  ;;  %v753_v53 = vadd.f32 1e-08, %v737_v44  ;;  %v6759_v54 = vpop.eup %6758  ;;  %6468 = vmatprep.mubr.msk.f32.mxu0 %vm678_vm1, %v7472_v48  ;;  %6494 = vmatprep.mubr.msk.f32.mxu1 %vm678_vm1, %v7472_v48  ;;  %v711_v17 = vpop.xlane.xlu0 %710  ;;  %v777_v56 = vmul.f32 %v6757_v49, %v7369_v19 }
  0xec   : > { %v714_v55 = vpop.xlane.xlu1 %713  ;;  %10956 = vst [vmem:[#allocation16_spill] sm:$0xff] %v7480_v18  ;;  %6768 = vrsqrt.f32 %v752_v50  ;;  %v738_v59 = vmul.f32 0.125, %v711_v17  ;;  %v779_v61 = vmul.f32 %v6759_v54, %v7378_v23  ;;  %v7612_v54 = vld [vmem:[%s10850_s6] ss:$0 sm:$0xff]  ;;  %v7617_v17 = vld [vmem:[%s10850_s6 + $0x1] ss:$0 sm:$0xff] }
  0xed   : > { %v739_v60 = vmul.f32 0.125, %v714_v55  ;;  %6770 = vrsqrt.f32 %v753_v53  ;;  %v7484_v62 = vmul.f32 %v7467_v36, %v777_v56  ;;  %v1169_v55 = vld [vmem:[#allocation8] sm:$0xff]  ;;  %v1170_v56 = vld [vmem:[#allocation8 + $0x8] sm:$0xff] }
  0xee   : > { %v6761_v63 = vpop.eup %6760  ;;  %v754_v0 = vadd.f32 1e-08, %v738_v59  ;;  %v7491_v4 = vmul.f32 %v7467_v36, %v779_v61  ;;  %v7622_v59 = vld [vmem:[%s10847_s3] ss:$0 sm:$0xff]  ;;  %v1176_v61 = vmul.f32 %v7612_v54, %v1169_v55 }
  0xef   : > { %10957 = vst [vmem:[#allocation17_spill] sm:$0xff] %v7484_v62  ;;  %v755_v1 = vadd.f32 1e-08, %v739_v60  ;;  %v6763_v2 = vpop.eup %6762  ;;  %6469 = vmatmul.mubr.msk.f32.vlgmr.msra.gmra.mrb[0].mxu0 %vm678_vm1, %v7484_v62  ;;  %6495 = vmatmul.mubr.msk.f32.vlgmr.msra.gmra.mrb[0].mxu1 %vm678_vm1, %v7484_v62  ;;  %v717_v19 = vpop.xlane.xlu0 %716  ;;  %v780_v23 = vmul.f32 %v6761_v63, %v7383_v25  ;;  %v7627_v60 = vld [vmem:[%s10849_s5] ss:$0 sm:$0xff]  ;;  %v1197_v63 = vmul.f32 %v7617_v17, %v1170_v56 }
  0xf0   : > { %v720_v3 = vpop.xlane.xlu1 %719  ;;  %10958 = vst [vmem:[#allocation18_spill] sm:$0xff] %v7491_v4  ;;  %6772 = vrsqrt.f32 %v754_v0  ;;  %6471 = vmatprep.mubr.msk.f32.mxu0 %vm678_vm1, %v7480_v18  ;;  %6497 = vmatprep.mubr.msk.f32.mxu1 %vm678_vm1, %v7480_v18  ;;  %v740_v5 = vmul.f32 0.125, %v717_v19  ;;  %v781_v7 = vmul.f32 %v6763_v2, %v7386_v26  ;;  %v7635_v19 = vld [vmem:[%s10850_s6 + $0x2] ss:$0 sm:$0xff] }
  0xf1   : > { %v741_v6 = vmul.f32 0.125, %v720_v3  ;;  %6774 = vrsqrt.f32 %v755_v1  ;;  %v7500_v8 = vmul.f32 %v7467_v36, %v780_v23 }
  0xf2   : > { %v6765_v9 = vpop.eup %6764  ;;  %v756_v10 = vadd.f32 1e-08, %v740_v5  ;;  %v7507_v14 = vmul.f32 %v7467_v36, %v781_v7  ;;  %v1177_v7 = vmul.f32 %v7612_v54, %v1170_v56 }
  0xf3   : > { %10959 = vst [vmem:[#allocation19_spill] sm:$0xff] %v7500_v8  ;;  %v757_v11 = vadd.f32 1e-08, %v741_v6  ;;  %v6767_v12 = vpop.eup %6766  ;;  %6472 = vmatmul.mubr.msk.f32.gmra.mrb[2].mxu0 %vm678_vm1, %v7491_v4  ;;  %6498 = vmatmul.mubr.msk.f32.gmra.mrb[2].mxu1 %vm678_vm1, %v7491_v4  ;;  %v723_v25 = vpop.xlane.xlu0 %722  ;;  %v782_v26 = vmul.f32 %v6765_v9, %v7397_v33  ;;  %v1213_v9 = vadd.f32 %v1197_v63, %v1176_v61 }
  0xf4   : > { %v726_v13 = vpop.xlane.xlu1 %725  ;;  %10960 = vst [vmem:[#allocation20_spill] sm:$0xff] %v7507_v14  ;;  %6776 = vrsqrt.f32 %v756_v10  ;;  %6474 = vmatprep.mubr.msk.f32.mxu0 %vm678_vm1, %v7500_v8  ;;  %6500 = vmatprep.mubr.msk.f32.mxu1 %vm678_vm1, %v7500_v8  ;;  %v742_v15 = vmul.f32 0.125, %v723_v25  ;;  %v783_v20 = vmul.f32 %v6767_v12, %v7400_v34 }
  0xf5   : > { %v743_v16 = vmul.f32 0.125, %v726_v13  ;;  %6778 = vrsqrt.f32 %v757_v11  ;;  %v7516_v21 = vmul.f32 %v7467_v36, %v782_v26 }
  0xf6   : > { %v6769_v22 = vpop.eup %6768  ;;  %v758_v24 = vadd.f32 1e-08, %v742_v15  ;;  %v7523_v33 = vmul.f32 %v7467_v36, %v783_v20  ;;  %v7653_v20 = vld [vmem:[%s10851_s7] ss:$0 sm:$0xff] }
  0xf7   : > { %10961 = vst [vmem:[#allocation21_spill] sm:$0xff] %v7516_v21  ;;  %v759_v27 = vadd.f32 1e-08, %v743_v16  ;;  %v6771_v28 = vpop.eup %6770  ;;  %6475 = vmatmul.mubr.msk.f32.gmra.mrb[4].mxu0 %vm678_vm1, %v7507_v14  ;;  %6501 = vmatmul.mubr.msk.f32.gmra.mrb[4].mxu1 %vm678_vm1, %v7507_v14  ;;  %v784_v29 = vmul.f32 %v6769_v22, %v7409_v39 }
  0xf8   : > { %10962 = vst [vmem:[#allocation22_spill] sm:$0xff] %v7523_v33  ;;  %6780 = vrsqrt.f32 %v758_v24  ;;  %6477 = vmatprep.mubr.msk.f32.mxu0 %vm678_vm1, %v7516_v21  ;;  %6503 = vmatprep.mubr.msk.f32.mxu1 %vm678_vm1, %v7516_v21  ;;  %v785_v34 = vmul.f32 %v6771_v28, %v7412_v40 }
  0xf9   : > { %6782 = vrsqrt.f32 %v759_v27  ;;  %v7532_v30 = vmul.f32 %v7467_v36, %v784_v29 }
  0xfa   : > { %v6773_v31 = vpop.eup %6772  ;;  %v7539_v39 = vmul.f32 %v7467_v36, %v785_v34 }
  0xfb   : > { %10963 = vst [vmem:[#allocation23_spill] sm:$0xff] %v7532_v30  ;;  %v6775_v32 = vpop.eup %6774  ;;  %6478 = vmatmul.mubr.msk.f32.gmra.mrb[6].mxu0 %vm678_vm1, %v7523_v33  ;;  %6504 = vmatmul.mubr.msk.f32.gmra.mrb[6].mxu1 %vm678_vm1, %v7523_v33  ;;  %v786_v35 = vmul.f32 %v6773_v31, %v7421_v45 }
  0xfc   : > { %10964 = vst [vmem:[#allocation24_spill] sm:$0xff] %v7539_v39  ;;  %6480 = vmatprep.mubr.msk.f32.mxu0 %vm678_vm1, %v7532_v30  ;;  %6506 = vmatprep.mubr.msk.f32.mxu1 %vm678_vm1, %v7532_v30  ;;  %v787_v40 = vmul.f32 %v6775_v32, %v7424_v46 }
  0xfd   : > { %v7548_v37 = vmul.f32 %v7467_v36, %v786_v35 }
  0xfe   : > { %v6777_v38 = vpop.eup %6776  ;;  %v7555_v45 = vmul.f32 %v7467_v36, %v787_v40 }
  0xff   : > { %10965 = vst [vmem:[#allocation25_spill] sm:$0xff] %v7548_v37  ;;  %v6779_v41 = vpop.eup %6778  ;;  %6481 = vmatmul.mubr.msk.f32.gmra.mrb[8].mxu0 %vm678_vm1, %v7539_v39  ;;  %6507 = vmatmul.mubr.msk.f32.gmra.mrb[8].mxu1 %vm678_vm1, %v7539_v39  ;;  %v788_v42 = vmul.f32 %v6777_v38, %v7433_v51 }
 0x100   : > { %10966 = vst [vmem:[#allocation26_spill] sm:$0xff] %v7555_v45  ;;  %6483 = vmatprep.mubr.msk.f32.mxu0 %vm678_vm1, %v7548_v37  ;;  %6509 = vmatprep.mubr.msk.f32.mxu1 %vm678_vm1, %v7548_v37  ;;  %v789_v46 = vmul.f32 %v6779_v41, %v7436_v52 }
 0x101   : > { %v7564_v43 = vmul.f32 %v7467_v36, %v788_v42 }
 0x102   : > { %v6781_v44 = vpop.eup %6780  ;;  %v7571_v51 = vmul.f32 %v7467_v36, %v789_v46 }
 0x103   : > { %10967 = vst [vmem:[#allocation27_spill] sm:$0xff] %v7564_v43  ;;  %v6783_v47 = vpop.eup %6782  ;;  %6484 = vmatmul.mubr.msk.f32.gmra.mrb[10].mxu0 %vm678_vm1, %v7555_v45  ;;  %6510 = vmatmul.mubr.msk.f32.gmra.mrb[10].mxu1 %vm678_vm1, %v7555_v45  ;;  %v790_v49 = vmul.f32 %v6781_v44, %v7445_v57  ;;  %v1403_v57 = vld [vmem:[%s10852_s8] sm:$0xff] }
 0x104   : > { %10968 = vst [vmem:[#allocation28_spill] sm:$0xff] %v7571_v51  ;;  %6486 = vmatprep.mubr.msk.f32.mxu0 %vm678_vm1, %v7564_v43  ;;  %6512 = vmatprep.mubr.msk.f32.mxu1 %vm678_vm1, %v7564_v43  ;;  %v791_v52 = vmul.f32 %v6783_v47, %v7448_v58  ;;  %v1892_v58 = vld [vmem:[%s10854_s10] sm:$0xff] }
 0x105   : > { %v7580_v50 = vmul.f32 %v7467_v36, %v790_v49  ;;  %6518 = vmatprep.subr.mxu0 %v1403_v57  ;;  %6544 = vmatprep.subr.mxu1 %v1892_v58 }
 0x106   : > { %v7587_v53 = vmul.f32 %v7467_v36, %v791_v52  ;;  %6519 = vmatpush3.msra.mxu0 %v1403_v57  ;;  %6545 = vmatpush3.msra.mxu1 %v1892_v58  ;;  %v7606_v36 = vld [vmem:[%s10855_s11] sm:$0xff] }
 0x107   : > { %10969 = vst [vmem:[#allocation29_spill] sm:$0xff] %v7580_v50  ;;  %6487 = vmatmul.mubr.msk.f32.gmra.mrb[12].mxu0 %vm678_vm1, %v7571_v51  ;;  %6513 = vmatmul.mubr.msk.f32.gmra.mrb[12].mxu1 %vm678_vm1, %v7571_v51 }
 0x108   : > { %10970 = vst [vmem:[#allocation30_spill] sm:$0xff] %v7587_v53  ;;  %6489 = vmatprep.mubr.msk.f32.mxu0 %vm678_vm1, %v7580_v50  ;;  %6515 = vmatprep.mubr.msk.f32.mxu1 %vm678_vm1, %v7580_v50 }
 0x109   : > { %6570 = vmatprep.subr.mxu0 %v7606_v36 }
 0x10b   : > { %6490 = vmatmul.mubr.msk.f32.gmra.mrb[14].mxu0 %vm678_vm1, %v7587_v53  ;;  %6516 = vmatmul.mubr.msk.f32.gmra.mrb[14].mxu1 %vm678_vm1, %v7587_v53 }
 0x1c2   : > { %v6470_v0 = vpop.f32.mrb[0].mxu0  ;;  %v6496_v1 = vpop.f32.mrb[0].mxu1 }
 0x1c3   : > { %v943_v2 = vadd.f32 %v6470_v0, %v7622_v59  ;;  %v7638_v3 = vadd.f32 %v6496_v1, %v7627_v60  ;;  %v937_v23 = vpop.f32.mrb[1].mxu0  ;;  %v1090_v5 = vpop.f32.mrb[1].mxu1 }
 0x1c4   : > { %v938_v6 = vadd.f32 %v7622_v59, %v937_v23  ;;  %v7643_v10 = vadd.f32 %v7627_v60, %v1090_v5 }
 0x1c5   : > { %10971 = vst [vmem:[#allocation31_spill] sm:$0xff] %v7638_v3  ;;  %v1199_v11 = vmul.f32 %v7617_v17, %v943_v2  ;;  %v1235_v16 = vmul.f32 %v7635_v19, %v943_v2  ;;  %v1179_v35 = vmul.f32 %v7612_v54, %v943_v2 }
 0x1c6   : > { %10972 = vst [vmem:[#allocation32_spill] sm:$0xff] %v7643_v10  ;;  %v1178_v12 = vmul.f32 %v7612_v54, %v938_v6  ;;  %v1198_v25 = vmul.f32 %v7617_v17, %v938_v6  ;;  %v1234_v13 = vmul.f32 %v7635_v19, %v938_v6  ;;  %v6473_v26 = vpop.f32.mrb[2].mxu0  ;;  %v6499_v15 = vpop.f32.mrb[2].mxu1 }
 0x1c7   : > { %v953_v22 = vadd.f32 %v6473_v26, %v7622_v59  ;;  %v7657_v24 = vadd.f32 %v6499_v15, %v7627_v60  ;;  %v947_v27 = vpop.f32.mrb[3].mxu0  ;;  %v1100_v28 = vpop.f32.mrb[3].mxu1 }
 0x1c8   : > { %v1214_v29 = vadd.f32 %v1198_v25, %v1177_v7  ;;  %v1215_v34 = vadd.f32 %v1199_v11, %v1178_v12  ;;  %v1250_v31 = vadd.f32 %v1234_v13, %v1213_v9  ;;  %v948_v32 = vadd.f32 %v7622_v59, %v947_v27 }
 0x1c9   : > { %10973 = vst [vmem:[#allocation33_spill] sm:$0xff] %v7657_v24  ;;  %v1181_v40 = vmul.f32 %v7612_v54, %v953_v22  ;;  %v1201_v38 = vmul.f32 %v7617_v17, %v953_v22  ;;  %v7664_v41 = vadd.f32 %v7627_v60, %v1100_v28  ;;  %v1237_v57 = vmul.f32 %v7635_v19, %v953_v22 }
 0x1ca   : > { %v1251_v42 = vadd.f32 %v1235_v16, %v1214_v29  ;;  %v7667_v46 = vadd.f32 %v7653_v20, %v1250_v31  ;;  %v1180_v44 = vmul.f32 %v7612_v54, %v948_v32  ;;  %v1200_v47 = vmul.f32 %v7617_v17, %v948_v32  ;;  %v6476_v49 = vpop.f32.mrb[4].mxu0  ;;  %v6502_v52 = vpop.f32.mrb[4].mxu1 }
 0x1cb   : > { %10974 = vst [vmem:[#allocation34_spill] sm:$0xff] %v7664_v41  ;;  %v1236_v58 = vmul.f32 %v7635_v19, %v948_v32  ;;  %v963_v55 = vadd.f32 %v6476_v49, %v7622_v59  ;;  %v7675_v56 = vadd.f32 %v6502_v52, %v7627_v60  ;;  %v957_v61 = vpop.f32.mrb[5].mxu0  ;;  %v1110_v63 = vpop.f32.mrb[5].mxu1 }
 0x1cc   : > { %v7678_v0 = vadd.f32 %v7653_v20, %v1251_v42  ;;  %v6272_v1 = vmul.f32 -1.442695, %v7667_v46  ;;  %v1216_v2 = vadd.f32 %v1200_v47, %v1179_v35  ;;  %v1217_v23 = vadd.f32 %v1201_v38, %v1180_v44 }
 0x1cd   : > { %10975 = vst [vmem:[#allocation35_spill] sm:$0xff] %v7675_v56  ;;  %v1252_v5 = vadd.f32 %v1236_v58, %v1215_v34  ;;  %v1183_v6 = vmul.f32 %v7612_v54, %v963_v55  ;;  %v1203_v7 = vmul.f32 %v7617_v17, %v963_v55  ;;  %v1239_v9 = vmul.f32 %v7635_v19, %v963_v55 }
 0x1ce   : > { %6784 = vpow2.f32 %v6272_v1  ;;  %v6273_v11 = vmul.f32 -1.442695, %v7678_v0  ;;  %v7685_v12 = vadd.f32 %v1237_v57, %v1216_v2  ;;  %v958_v25 = vadd.f32 %v7622_v59, %v957_v61  ;;  %v6479_v13 = vpop.f32.mrb[6].mxu0  ;;  %v6505_v26 = vpop.f32.mrb[6].mxu1 }
 0x1cf   : > { %v7689_v15 = vadd.f32 %v7653_v20, %v1252_v5  ;;  %v7692_v16 = vadd.f32 %v7627_v60, %v1110_v63  ;;  %v973_v22 = vadd.f32 %v6479_v13, %v7622_v59  ;;  %v7696_v27 = vadd.f32 %v6505_v26, %v7627_v60  ;;  %v967_v28 = vpop.f32.mrb[7].mxu0  ;;  %v1120_v29 = vpop.f32.mrb[7].mxu1 }
 0x1d0   : > { %6786 = vpow2.f32 %v6273_v11  ;;  %v1182_v34 = vmul.f32 %v7612_v54, %v958_v25  ;;  %v1202_v31 = vmul.f32 %v7617_v17, %v958_v25  ;;  %v1238_v32 = vmul.f32 %v7635_v19, %v958_v25 }
 0x1d1   : > { %10976 = vst [vmem:[#allocation36_spill] sm:$0xff] %v7692_v16  ;;  %10977 = vst [vmem:[#allocation37_spill] sm:$0xff] %v7696_v27  ;;  %v6274_v35 = vmul.f32 -1.442695, %v7689_v15  ;;  %v1185_v38 = vmul.f32 %v7612_v54, %v973_v22  ;;  %v1205_v42 = vmul.f32 %v7617_v17, %v973_v22  ;;  %v1241_v44 = vmul.f32 %v7635_v19, %v973_v22 }
 0x1d2   : > { %v1218_v47 = vadd.f32 %v1202_v31, %v1181_v40  ;;  %v1219_v49 = vadd.f32 %v1203_v7, %v1182_v34  ;;  %v1254_v52 = vadd.f32 %v1238_v32, %v1217_v23  ;;  %v968_v57 = vadd.f32 %v7622_v59, %v967_v28  ;;  %v6482_v58 = vpop.f32.mrb[8].mxu0  ;;  %v6508_v55 = vpop.f32.mrb[8].mxu1 }
 0x1d3   : > { %6788 = vpow2.f32 %v6274_v35  ;;  %v7707_v61 = vadd.f32 %v7627_v60, %v1120_v29  ;;  %v983_v63 = vadd.f32 %v6482_v58, %v7622_v59  ;;  %v7711_v1 = vadd.f32 %v6508_v55, %v7627_v60  ;;  %v977_v2 = vpop.f32.mrb[9].mxu0  ;;  %v1130_v5 = vpop.f32.mrb[9].mxu1 }
 0x1d4   : > { %v7713_v11 = vadd.f32 %v1239_v9, %v1218_v47  ;;  %v7716_v40 = vadd.f32 %v7653_v20, %v1254_v52  ;;  %v1184_v23 = vmul.f32 %v7612_v54, %v968_v57  ;;  %v1204_v7 = vmul.f32 %v7617_v17, %v968_v57 }
 0x1d5   : > { %10978 = vst [vmem:[#allocation38_spill] sm:$0xff] %v7707_v61  ;;  %10979 = vst [vmem:[#allocation39_spill] sm:$0xff] %v7711_v1  ;;  %v1240_v25 = vmul.f32 %v7635_v19, %v968_v57  ;;  %v1187_v13 = vmul.f32 %v7612_v54, %v983_v63  ;;  %v1207_v26 = vmul.f32 %v7617_v17, %v983_v63 }
 0x1d6   : > { %v1243_v22 = vmul.f32 %v7635_v19, %v983_v63  ;;  %v6276_v28 = vmul.f32 -1.442695, %v7716_v40  ;;  %v1220_v29 = vadd.f32 %v1204_v7, %v1183_v6  ;;  %v1221_v9 = vadd.f32 %v1205_v42, %v1184_v23  ;;  %v6485_v31 = vpop.f32.mrb[10].mxu0  ;;  %v6511_v32 = vpop.f32.mrb[10].mxu1 }
 0x1d7   : > { %v978_v34 = vadd.f32 %v7622_v59, %v977_v2  ;;  %v1256_v35 = vadd.f32 %v1240_v25, %v1219_v49  ;;  %v7727_v47 = vadd.f32 %v7627_v60, %v1130_v5  ;;  %v993_v52 = vadd.f32 %v6485_v31, %v7622_v59  ;;  %v987_v58 = vpop.f32.mrb[11].mxu0  ;;  %v1140_v55 = vpop.f32.mrb[11].mxu1 }
 0x1d8   : > { %v7731_v57 = vadd.f32 %v6511_v32, %v7627_v60  ;;  %v6785_v63 = vpop.eup %6784  ;;  %6790 = vpow2.f32 %v6276_v28  ;;  %v7733_v50 = vadd.f32 %v1241_v44, %v1220_v29 }
 0x1d9   : > { %10980 = vst [vmem:[#allocation40_spill] sm:$0xff] %v7727_v47  ;;  %v1186_v6 = vmul.f32 %v7612_v54, %v978_v34  ;;  %v1206_v42 = vmul.f32 %v7617_v17, %v978_v34  ;;  %v1339_v2 = vadd.f32 1.0, %v6785_v63  ;;  %v7738_v49 = vadd.f32 %v7653_v20, %v1256_v35 }
 0x1da   : > { %10981 = vst [vmem:[#allocation41_spill] sm:$0xff] %v7731_v57  ;;  %v1242_v5 = vmul.f32 %v7635_v19, %v978_v34  ;;  %v1189_v23 = vmul.f32 %v7612_v54, %v993_v52  ;;  %v6787_v7 = vpop.eup %6786  ;;  %v1209_v32 = vmul.f32 %v7617_v17, %v993_v52  ;;  %v1245_v44 = vmul.f32 %v7635_v19, %v993_v52  ;;  %v6488_v28 = vpop.f32.mrb[12].mxu0 }
 0x1db   : > { %v1222_v25 = vadd.f32 %v1206_v42, %v1185_v38  ;;  %v1223_v31 = vadd.f32 %v1207_v26, %v1186_v6  ;;  %v6514_v29 = vpop.f32.mrb[12].mxu1  ;;  %v1340_v53 = vadd.f32 1.0, %v6787_v7  ;;  %6792 = vrcp.f32 %v1339_v2  ;;  %v997_v35 = vpop.f32.mrb[13].mxu0 }
 0x1dc   : > { %v6278_v63 = vmul.f32 -1.442695, %v7738_v49  ;;  %v1258_v43 = vadd.f32 %v1242_v5, %v1221_v9  ;;  %v1150_v51 = vpop.f32.mrb[13].mxu1  ;;  %v988_v34 = vadd.f32 %v7622_v59, %v987_v58  ;;  %v7749_v38 = vadd.f32 %v7627_v60, %v1140_v55 }
 0x1dd   : > { %v7745_v37 = vadd.f32 %v1243_v22, %v1222_v25  ;;  %v1003_v26 = vadd.f32 %v6488_v28, %v7622_v59  ;;  %v6789_v6 = vpop.eup %6788  ;;  %6794 = vrcp.f32 %v1340_v53  ;;  %v7756_v42 = vadd.f32 %v6514_v29, %v7627_v60 }
 0x1de   : > { %10982 = vst [vmem:[#allocation42_spill] sm:$0xff] %v7749_v38  ;;  %v7753_v52 = vadd.f32 %v7653_v20, %v1258_v43  ;;  %v998_v9 = vadd.f32 %v7622_v59, %v997_v35  ;;  %v1341_v2 = vadd.f32 1.0, %v6789_v6  ;;  %6796 = vpow2.f32 %v6278_v63  ;;  %v6491_v55 = vpop.f32.mrb[14].mxu0  ;;  %v6517_v5 = vpop.f32.mrb[14].mxu1 }
 0x1df   : > { %10983 = vst [vmem:[#allocation43_spill] sm:$0xff] %v7756_v42  ;;  %v1188_v22 = vmul.f32 %v7612_v54, %v988_v34  ;;  %v1208_v58 = vmul.f32 %v7617_v17, %v988_v34  ;;  %v1244_v53 = vmul.f32 %v7635_v19, %v988_v34  ;;  %v1191_v43 = vmul.f32 %v7612_v54, %v1003_v26  ;;  %v1007_v28 = vpop.f32.mrb[15].mxu0  ;;  %v1160_v29 = vpop.f32.mrb[15].mxu1 }
 0x1e0   : > { %v6280_v7 = vmul.f32 -1.442695, %v7753_v52  ;;  %v1211_v25 = vmul.f32 %v7617_v17, %v1003_v26  ;;  %6798 = vrcp.f32 %v1341_v2  ;;  %v1247_v63 = vmul.f32 %v7635_v19, %v1003_v26 }
 0x1e1   : > { %v1224_v35 = vadd.f32 %v1208_v58, %v1187_v13  ;;  %v1225_v6 = vadd.f32 %v1209_v32, %v1188_v22  ;;  %v1260_v45 = vadd.f32 %v1244_v53, %v1223_v31  ;;  %v1190_v30 = vmul.f32 %v7612_v54, %v998_v9 }
 0x1e2   : > { %6800 = vpow2.f32 %v6280_v7  ;;  %v1210_v39 = vmul.f32 %v7617_v17, %v998_v9  ;;  %v6791_v21 = vpop.eup %6790  ;;  %v1246_v34 = vmul.f32 %v7635_v19, %v998_v9  ;;  %v7770_v8 = vadd.f32 %v7627_v60, %v1150_v51 }
 0x1e3   : > { %v1261_v33 = vadd.f32 %v1245_v44, %v1224_v35  ;;  %v1013_v14 = vadd.f32 %v6491_v55, %v7622_v59  ;;  %v1343_v2 = vadd.f32 1.0, %v6791_v21  ;;  %v7774_v13 = vadd.f32 %v7653_v20, %v1260_v45 }
 0x1e4   : > { %10984 = vst [vmem:[#allocation44_spill] sm:$0xff] %v7770_v8  ;;  %v1226_v32 = vadd.f32 %v1210_v39, %v1189_v23  ;;  %v1227_v26 = vadd.f32 %v1211_v25, %v1190_v30  ;;  %v1262_v31 = vadd.f32 %v1246_v34, %v1225_v6  ;;  %v7779_v44 = vadd.f32 %v6517_v5, %v7627_v60 }
 0x1e5   : > { %v1249_v54 = vmul.f32 %v7635_v19, %v1013_v14  ;;  %1290 = vst.msk [vmem:[#allocation8 + $0x8] sm:$0xff] %vm678_vm1, %v1013_v14  ;;  %v1008_v9 = vadd.f32 %v7622_v59, %v1007_v28  ;;  %v6793_v51 = vpop.eup %6792  ;;  %6802 = vrcp.f32 %v1343_v2  ;;  %v6282_v22 = vmul.f32 -1.442695, %v7774_v13 }
 0x1e6   : > { %10985 = vst [vmem:[#allocation45_spill] sm:$0xff] %v7779_v44  ;;  %v1263_v21 = vadd.f32 %v1247_v63, %v1226_v32  ;;  %v7784_v45 = vadd.f32 %v7627_v60, %v1160_v29  ;;  %v7787_v30 = vadd.f32 %v7653_v20, %v1262_v31  ;;  %v7793_v23 = vmul.f32 %v6793_v51, %v7667_v46 }
 0x1e7   : > { %v1212_v39 = vmul.f32 %v7617_v17, %v1008_v9  ;;  %v1248_v14 = vmul.f32 %v7635_v19, %v1008_v9  ;;  %1289 = vst.msk [vmem:[#allocation8] sm:$0xff] %vm678_vm1, %v1008_v9  ;;  %v6795_v59 = vpop.eup %6794  ;;  %6804 = vpow2.f32 %v6282_v22  ;;  %v7797_v58 = vadd.f32 %v7653_v20, %v7685_v12 }
 0x1e8   : > { %10986 = vst [vmem:[#allocation46_spill] sm:$0xff] %v7784_v45  ;;  %10987 = vst [vmem:[#allocation47_spill] sm:$0xff] %v7793_v23  ;;  %v7801_v60 = vadd.f32 %v7653_v20, %v7713_v11  ;;  %v7805_v17 = vadd.f32 %v7653_v20, %v7733_v50  ;;  %v6797_v19 = vpop.eup %6796  ;;  %v7808_v55 = vmul.f32 %v6795_v59, %v7678_v0  ;;  %v6284_v46 = vmul.f32 -1.442695, %v7787_v30 }
 0x1e9   : > { %v1228_v5 = vadd.f32 %v1212_v39, %v1191_v43  ;;  %v1264_v7 = vadd.f32 %v1248_v14, %v1227_v26  ;;  %6520 = vmatprep.mubr.msk.f32.mxu0 %vm678_vm1, %v7793_v23  ;;  %2184 = vst.msk [vmem:[#allocation2] sm:$0xff] %vm678_vm1, %v7793_v23  ;;  %6546 = vmatprep.mubr.msk.f32.mxu1 %vm678_vm1, %v7793_v23  ;;  %v1345_v12 = vadd.f32 1.0, %v6797_v19  ;;  %v6275_v50 = vmul.f32 -1.442695, %v7797_v58 }
 0x1ea   : > { %10988 = vst [vmem:[#allocation48_spill] sm:$0xff] %v7808_v55  ;;  %v6277_v11 = vmul.f32 -1.442695, %v7801_v60  ;;  %v7821_v0 = vadd.f32 %v7653_v20, %v7745_v37  ;;  %v6799_v53 = vpop.eup %6798  ;;  %2185 = vst.msk [vmem:[#allocation2 + $0x8] sm:$0xff] %vm678_vm1, %v7808_v55  ;;  %6806 = vpow2.f32 %v6284_v46  ;;  %6521 = vmatmul.mubr.msk.f32.vlgmr.msra.gmra.mrb[16].mxu0 %vm678_vm1, %v7808_v55  ;;  %6547 = vmatmul.mubr.msk.f32.vlgmr.msra.gmra.mrb[16].mxu1 %vm678_vm1, %v7808_v55  ;;  %v6279_v29 = vmul.f32 -1.442695, %v7805_v17 }
 0x1eb   : > { %v1265_v43 = vadd.f32 %v1249_v54, %v1228_v5  ;;  %v7826_v25 = vadd.f32 %v7653_v20, %v1264_v7  ;;  %6808 = vrcp.f32 %v1345_v12  ;;  %v7833_v37 = vmul.f32 %v6799_v53, %v7689_v15  ;;  %6571 = vmatpush3.msra.mxu0 %v7606_v36 }
 0x1ec   : > { %v6801_v28 = vpop.eup %6800  ;;  %v7838_v35 = vadd.f32 %v7653_v20, %v1261_v33  ;;  %6810 = vpow2.f32 %v6275_v50  ;;  %v7842_v34 = vadd.f32 %v7653_v20, %v1263_v21  ;;  %v6281_v33 = vmul.f32 -1.442695, %v7821_v0 }
 0x1ed   : > { %10989 = vst [vmem:[#allocation49_spill] sm:$0xff] %v7833_v37  ;;  %v1347_v6 = vadd.f32 1.0, %v6801_v28  ;;  %v6286_v63 = vmul.f32 -1.442695, %v7826_v25  ;;  %6523 = vmatprep.mubr.msk.f32.mxu0 %vm678_vm1, %v7833_v37  ;;  %2186 = vst.msk [vmem:[#allocation2 + $0x10] sm:$0xff] %vm678_vm1, %v7833_v37  ;;  %6549 = vmatprep.mubr.msk.f32.mxu1 %vm678_vm1, %v7833_v37  ;;  %6812 = vpow2.f32 %v6277_v11  ;;  %v7852_v36 = vadd.f32 %v7653_v20, %v1265_v43 }
 0x1ee   : > { %v6283_v15 = vmul.f32 -1.442695, %v7838_v35  ;;  %v6285_v32 = vmul.f32 -1.442695, %v7842_v34 }
 0x1ef   : > { %6814 = vrcp.f32 %v1347_v6  ;;  %v6803_v2 = vpop.eup %6802  ;;  %v6287_v54 = vmul.f32 -1.442695, %v7852_v36 }
 0x1f0   : > { %6816 = vpow2.f32 %v6286_v63  ;;  %v7857_v26 = vmul.f32 %v6803_v2, %v7716_v40 }
 0x1f1   : > { %6818 = vpow2.f32 %v6279_v29  ;;  %v6805_v31 = vpop.eup %6804 }
 0x1f2   : > { %10990 = vst [vmem:[#allocation50_spill] sm:$0xff] %v7857_v26  ;;  %6820 = vpow2.f32 %v6281_v33  ;;  %v1349_v9 = vadd.f32 1.0, %v6805_v31  ;;  %2188 = vst.msk [vmem:[#allocation2 + $0x20] sm:$0xff] %vm678_vm1, %v7857_v26 }
 0x1f3   : > { %6822 = vpow2.f32 %v6283_v15 }
 0x1f4   : > { %6824 = vpow2.f32 %v6285_v32  ;;  %v6807_v20 = vpop.eup %6806 }
 0x1f5   : > { %6826 = vrcp.f32 %v1349_v9  ;;  %v6809_v51 = vpop.eup %6808  ;;  %v1351_v22 = vadd.f32 1.0, %v6807_v20 }
 0x1f6   : > { %6828 = vpow2.f32 %v6287_v54  ;;  %v6811_v21 = vpop.eup %6810  ;;  %v7863_v40 = vmul.f32 %v6809_v51, %v7738_v49 }
 0x1f7   : > { %v6813_v39 = vpop.eup %6812  ;;  %6830 = vrcp.f32 %v1351_v22  ;;  %v1342_v14 = vadd.f32 1.0, %v6811_v21 }
 0x1f8   : > { %10991 = vst [vmem:[#allocation51_spill] sm:$0xff] %v7863_v40  ;;  %v1344_v19 = vadd.f32 1.0, %v6813_v39  ;;  %2190 = vst.msk [vmem:[#allocation2 + $0x30] sm:$0xff] %vm678_vm1, %v7863_v40  ;;  %v8013_v39 = vld [vmem:[#allocation7 + $0x8] sm:$0xff]  }
 0x1f9   : > { %v6815_v59 = vpop.eup %6814  ;;  %6832 = vrcp.f32 %v1342_v14  ;;  %v8015_v14 = vld [vmem:[#allocation7 + $0x10] sm:$0xff]  }
 0x1fa   : > { %v6817_v46 = vpop.eup %6816  ;;  %v7868_v5 = vmul.f32 %v6815_v59, %v7753_v52  ;;  %6834 = vrcp.f32 %v1344_v19  ;;  %v8017_v59 = vld [vmem:[#allocation7 + $0x18] sm:$0xff]   ;;  %v8019_v19 = vld [vmem:[#allocation7 + $0x20] sm:$0xff]  }
 0x1fb   : > { %v6819_v7 = vpop.eup %6818  ;;  %v1353_v12 = vadd.f32 1.0, %v6817_v46  ;;  %v8021_v46 = vld [vmem:[#allocation7 + $0x28] sm:$0xff]  }
 0x1fc   : > { %10992 = vst [vmem:[#allocation52_spill] sm:$0xff] %v7868_v5  ;;  %v6821_v50 = vpop.eup %6820  ;;  %v1346_v11 = vadd.f32 1.0, %v6819_v7  ;;  %2192 = vst.msk [vmem:[#allocation2 + $0x40] sm:$0xff] %vm678_vm1, %v7868_v5  ;;  %v8023_v7 = vld [vmem:[#allocation7 + $0x30] sm:$0xff]  }
 0x1fd   : > { %v6823_v49 = vpop.eup %6822  ;;  %6836 = vrcp.f32 %v1353_v12  ;;  %v1348_v53 = vadd.f32 1.0, %v6821_v50  ;;  %v8025_v12 = vld [vmem:[#allocation7 + $0x38] sm:$0xff]   ;;  %v8030_v50 = vld [vmem:[%s10853_s9] ss:$0 sm:$0xff] }
 0x1fe   : > { %v6825_v43 = vpop.eup %6824  ;;  %6838 = vrcp.f32 %v1346_v11  ;;  %v1350_v28 = vadd.f32 1.0, %v6823_v49 }
 0x1ff   : > { %v6827_v29 = vpop.eup %6826  ;;  %6840 = vrcp.f32 %v1348_v53  ;;  %v1352_v6 = vadd.f32 1.0, %v6825_v43 }
 0x200   : > { %v6829_v63 = vpop.eup %6828  ;;  %v7873_v52 = vmul.f32 %v6827_v29, %v7774_v13  ;;  %6842 = vrcp.f32 %v1350_v28 }
 0x201   : > { %6844 = vrcp.f32 %v1352_v6  ;;  %v1354_v33 = vadd.f32 1.0, %v6829_v63  ;;  %v6831_v15 = vpop.eup %6830 }
 0x202   : > { %10993 = vst [vmem:[#allocation53_spill] sm:$0xff] %v7873_v52  ;;  %2194 = vst.msk [vmem:[#allocation2 + $0x50] sm:$0xff] %vm678_vm1, %v7873_v52  ;;  %v7878_v2 = vmul.f32 %v6831_v15, %v7787_v30 }
 0x203   : > { %6846 = vrcp.f32 %v1354_v33  ;;  %v6833_v32 = vpop.eup %6832 }
 0x204   : > { %10994 = vst [vmem:[#allocation54_spill] sm:$0xff] %v7878_v2  ;;  %v6835_v31 = vpop.eup %6834  ;;  %v7881_v54 = vmul.f32 %v6833_v32, %v7797_v58  ;;  %2196 = vst.msk [vmem:[#allocation2 + $0x60] sm:$0xff] %vm678_vm1, %v7878_v2 }
 0x205   : > { %v7886_v13 = vmul.f32 %v6835_v31, %v7801_v60 }
 0x206   : > { %10995 = vst [vmem:[#allocation55_spill] sm:$0xff] %v7881_v54  ;;  %6524 = vmatmul.mubr.msk.f32.gmra.mrb[18].mxu0 %vm678_vm1, %v7881_v54  ;;  %2187 = vst.msk [vmem:[#allocation2 + $0x18] sm:$0xff] %vm678_vm1, %v7881_v54  ;;  %6550 = vmatmul.mubr.msk.f32.gmra.mrb[18].mxu1 %vm678_vm1, %v7881_v54 }
 0x207   : > { %10996 = vst [vmem:[#allocation56_spill] sm:$0xff] %v7886_v13  ;;  %v6837_v9 = vpop.eup %6836  ;;  %6526 = vmatprep.mubr.msk.f32.mxu0 %vm678_vm1, %v7857_v26  ;;  %6552 = vmatprep.mubr.msk.f32.mxu1 %vm678_vm1, %v7857_v26  ;;  %2189 = vst.msk [vmem:[#allocation2 + $0x28] sm:$0xff] %vm678_vm1, %v7886_v13 }
 0x208   : > { %v6839_v30 = vpop.eup %6838  ;;  %v7901_v58 = vmul.f32 %v6837_v9, %v7826_v25 }
 0x209   : > { %v6841_v60 = vpop.eup %6840  ;;  %v7904_v20 = vmul.f32 %v6839_v30, %v7805_v17 }
 0x20a   : > { %10997 = vst [vmem:[#allocation57_spill] sm:$0xff] %v7901_v58  ;;  %v6843_v51 = vpop.eup %6842  ;;  %v7907_v22 = vmul.f32 %v6841_v60, %v7821_v0  ;;  %2198 = vst.msk [vmem:[#allocation2 + $0x70] sm:$0xff] %vm678_vm1, %v7901_v58  ;;  %6527 = vmatmul.mubr.msk.f32.gmra.mrb[20].mxu0 %vm678_vm1, %v7886_v13  ;;  %6553 = vmatmul.mubr.msk.f32.gmra.mrb[20].mxu1 %vm678_vm1, %v7886_v13 }
 0x20b   : > { %10998 = vst [vmem:[#allocation58_spill] sm:$0xff] %v7904_v20  ;;  %v6845_v21 = vpop.eup %6844  ;;  %2191 = vst.msk [vmem:[#allocation2 + $0x38] sm:$0xff] %vm678_vm1, %v7904_v20  ;;  %v7918_v17 = vmul.f32 %v6843_v51, %v7838_v35  ;;  %6529 = vmatprep.mubr.msk.f32.mxu0 %vm678_vm1, %v7863_v40  ;;  %6555 = vmatprep.mubr.msk.f32.mxu1 %vm678_vm1, %v7863_v40 }
 0x20c   : > { %10999 = vst [vmem:[#allocation59_spill] sm:$0xff] %v7907_v22  ;;  %2193 = vst.msk [vmem:[#allocation2 + $0x48] sm:$0xff] %vm678_vm1, %v7907_v22  ;;  %v7927_v0 = vmul.f32 %v6845_v21, %v7842_v34  ;;  %v8009_v34 = vld [vmem:[%s10856_s12] sm:$0xff] }
 0x20d   : > { %11000 = vst [vmem:[#allocation60_spill] sm:$0xff] %v7918_v17  ;;  %v6847_v25 = vpop.eup %6846  ;;  %2195 = vst.msk [vmem:[#allocation2 + $0x58] sm:$0xff] %vm678_vm1, %v7918_v17 }
 0x20e   : > { %11001 = vst [vmem:[#allocation61_spill] sm:$0xff] %v7927_v0  ;;  %2197 = vst.msk [vmem:[#allocation2 + $0x68] sm:$0xff] %vm678_vm1, %v7927_v0  ;;  %v7934_v35 = vmul.f32 %v6847_v25, %v7852_v36  ;;  %6530 = vmatmul.mubr.msk.f32.gmra.mrb[22].mxu0 %vm678_vm1, %v7904_v20  ;;  %6556 = vmatmul.mubr.msk.f32.gmra.mrb[22].mxu1 %vm678_vm1, %v7904_v20  ;;  %v8011_v36 = vld [vmem:[#allocation7] sm:$0xff]  }
 0x20f   : > { %6532 = vmatprep.mubr.msk.f32.mxu0 %vm678_vm1, %v7868_v5  ;;  %6558 = vmatprep.mubr.msk.f32.mxu1 %vm678_vm1, %v7868_v5 }
 0x210   : > { %11002 = vst [vmem:[#allocation62_spill] sm:$0xff] %v7934_v35  ;;  %2199 = vst.msk [vmem:[#allocation2 + $0x78] sm:$0xff] %vm678_vm1, %v7934_v35 }
 0x212   : > { %6533 = vmatmul.mubr.msk.f32.gmra.mrb[24].mxu0 %vm678_vm1, %v7907_v22  ;;  %6559 = vmatmul.mubr.msk.f32.gmra.mrb[24].mxu1 %vm678_vm1, %v7907_v22 }
 0x213   : > { %6535 = vmatprep.mubr.msk.f32.mxu0 %vm678_vm1, %v7873_v52  ;;  %6561 = vmatprep.mubr.msk.f32.mxu1 %vm678_vm1, %v7873_v52 }
 0x216   : > { %6536 = vmatmul.mubr.msk.f32.gmra.mrb[26].mxu0 %vm678_vm1, %v7918_v17  ;;  %6562 = vmatmul.mubr.msk.f32.gmra.mrb[26].mxu1 %vm678_vm1, %v7918_v17 }
 0x217   : > { %6538 = vmatprep.mubr.msk.f32.mxu0 %vm678_vm1, %v7878_v2  ;;  %6564 = vmatprep.mubr.msk.f32.mxu1 %vm678_vm1, %v7878_v2 }
 0x21a   : > { %6539 = vmatmul.mubr.msk.f32.gmra.mrb[28].mxu0 %vm678_vm1, %v7927_v0  ;;  %6565 = vmatmul.mubr.msk.f32.gmra.mrb[28].mxu1 %vm678_vm1, %v7927_v0 }
 0x21b   : > { %6541 = vmatprep.mubr.msk.f32.mxu0 %vm678_vm1, %v7901_v58  ;;  %6567 = vmatprep.mubr.msk.f32.mxu1 %vm678_vm1, %v7901_v58 }
 0x21e   : > { %6542 = vmatmul.mubr.msk.f32.gmra.mrb[30].mxu0 %vm678_vm1, %v7934_v35  ;;  %6568 = vmatmul.mubr.msk.f32.gmra.mrb[30].mxu1 %vm678_vm1, %v7934_v35 }
 0x21f   : > { %6572 = vmatprep.mubr.msk.f32.mxu0 %vm678_vm1, %v7793_v23 }
 0x222   : > { %6573 = vmatmul.mubr.msk.f32.vlgmr.msra.gmra.mrb[32].mxu0 %vm678_vm1, %v7808_v55 }
 0x223   : > { %6575 = vmatprep.mubr.msk.f32.mxu0 %vm678_vm1, %v7833_v37 }
 0x226   : > { %6576 = vmatmul.mubr.msk.f32.gmra.mrb[34].mxu0 %vm678_vm1, %v7881_v54 }
 0x227   : > { %6578 = vmatprep.mubr.msk.f32.mxu0 %vm678_vm1, %v7857_v26 }
 0x22a   : > { %6579 = vmatmul.mubr.msk.f32.gmra.mrb[36].mxu0 %vm678_vm1, %v7886_v13 }
 0x22b   : > { %6581 = vmatprep.mubr.msk.f32.mxu0 %vm678_vm1, %v7863_v40 }
 0x22e   : > { %6582 = vmatmul.mubr.msk.f32.gmra.mrb[38].mxu0 %vm678_vm1, %v7904_v20 }
 0x22f   : > { %6584 = vmatprep.mubr.msk.f32.mxu0 %vm678_vm1, %v7868_v5 }
 0x232   : > { %6585 = vmatmul.mubr.msk.f32.gmra.mrb[40].mxu0 %vm678_vm1, %v7907_v22 }
 0x233   : > { %6587 = vmatprep.mubr.msk.f32.mxu0 %vm678_vm1, %v7873_v52 }
 0x236   : > { %6588 = vmatmul.mubr.msk.f32.gmra.mrb[42].mxu0 %vm678_vm1, %v7918_v17 }
 0x237   : > { %6590 = vmatprep.mubr.msk.f32.mxu0 %vm678_vm1, %v7878_v2 }
 0x23a   : > { %6591 = vmatmul.mubr.msk.f32.gmra.mrb[44].mxu0 %vm678_vm1, %v7927_v0 }
 0x23b   : > { %6593 = vmatprep.mubr.msk.f32.mxu0 %vm678_vm1, %v7901_v58 }
 0x23e   : > { %6594 = vmatmul.mubr.msk.f32.gmra.mrb[46].mxu0 %vm678_vm1, %v7934_v35 }
 0x2bd   : > { %v6522_v11 = vpop.f32.mrb[16].mxu0  ;;  %v6548_v49 = vpop.f32.mrb[16].mxu1 }
 0x2be   : > { %v8033_v53 = vadd.f32 %v6522_v11, %v8030_v50  ;;  %2217 = vst.msk [vmem:[#allocation4 + $0x8] sm:$0xff] %vm678_vm1, %v6548_v49  ;;  %v1525_v43 = vpop.f32.mrb[17].mxu0  ;;  %v1959_v28 = vpop.f32.mrb[17].mxu1 }
 0x2bf   : > { %v8037_v29 = vadd.f32 %v8030_v50, %v1525_v43  ;;  %2216 = vst.msk [vmem:[#allocation4] sm:$0xff] %vm678_vm1, %v1959_v28 }
 0x2c0   : > { %v1653_v6 = vand.u32 2147483647, %v8033_v53  ;;  %vm1621_vm4 = vcmp.ne.f32.partialorder %v8033_v53, %v8033_v53 }
 0x2c1   : > { %v1652_v63 = vand.u32 2147483647, %v8037_v29  ;;  %vm1620_vm5 = vcmp.ne.f32.partialorder %v8037_v29, %v8037_v29 }
 0x2c2   : > { %v1669_v33 = vsub.f32 0.0, %v1653_v6 }
 0x2c3   : > { %v1668_v15 = vsub.f32 0.0, %v1652_v63 }
 0x2c4   : > { %v1686_v32 = vmul.f32 1.442695, %v1669_v33 }
 0x2c5   : > { %v1684_v31 = vmul.f32 1.442695, %v1668_v15 }
 0x2c6   : > { %6848 = vpow2.f32 %v1686_v32  ;;  %v1605_v32 = vmax.f32 %v8033_v53, 0.0 }
 0x2c7   : > { %6850 = vpow2.f32 %v1684_v31 }
 0x2d0   : > { %v6849_v9 = vpop.eup %6848 }
 0x2d1   : > { %v6851_v30 = vpop.eup %6850  ;;  %v1725_v60 = vadd.f32 1.0, %v6849_v9  ;;  %v1728_v21 = vmul.f32 -0.5, %v6849_v9  ;;  %v1731_v11 = vand.u32 2147483647, %v6849_v9 }
 0x2d2   : > { %v1716_v51 = vadd.f32 1.0, %v6851_v30  ;;  %v1719_v25 = vmul.f32 -0.5, %v6851_v30  ;;  %v1722_v31 = vand.u32 2147483647, %v6851_v30 }
 0x2d3   : > { %6852 = vlog2.f32 %v1725_v60  ;;  %v1729_v28 = vadd.f32 1.0, %v1728_v21  ;;  %vm8052_vm2 = vcmp.lt.f32.partialorder %v1731_v11, 0.0004427343 }
 0x2d4   : > { %6854 = vlog2.f32 %v1716_v51  ;;  %v1720_v33 = vadd.f32 1.0, %v1719_v25  ;;  %vm1723_vm3 = vcmp.lt.f32.partialorder %v1722_v31, 0.0004427343 }
 0x2d6   : > { %v1721_v11 = vmul.f32 %v6851_v30, %v1720_v33 }
 0x2d9   : > { %v6525_v49 = vpop.f32.mrb[18].mxu0  ;;  %v6551_v43 = vpop.f32.mrb[18].mxu1 }
 0x2da   : > { %v8043_v18 = vadd.f32 %v6525_v49, %v8030_v50  ;;  %2219 = vst.msk [vmem:[#allocation4 + $0x18] sm:$0xff] %vm678_vm1, %v6551_v43  ;;  %v1535_v6 = vpop.f32.mrb[19].mxu0  ;;  %v1969_v63 = vpop.f32.mrb[19].mxu1 }
 0x2db   : > { %v8047_v15 = vadd.f32 %v8030_v50, %v1535_v6  ;;  %2218 = vst.msk [vmem:[#allocation4 + $0x10] sm:$0xff] %vm678_vm1, %v1969_v63  ;;  %v1730_v6 = vmul.f32 %v6849_v9, %v1729_v28  ;;  %v1604_v9 = vmax.f32 %v8037_v29, 0.0 }
 0x2dc   : > { %v1655_v60 = vand.u32 2147483647, %v8043_v18  ;;  %vm1623_vm6 = vcmp.ne.f32.partialorder %v8043_v18, %v8043_v18 }
 0x2dd   : > { %v6853_v51 = vpop.eup %6852  ;;  %v1654_v49 = vand.u32 2147483647, %v8047_v15  ;;  %v6528_v43 = vpop.f32.mrb[20].mxu0  ;;  %vm1622_vm8 = vcmp.ne.f32.partialorder %v8047_v15, %v8047_v15 }
 0x2de   : > { %v6554_v4 = vpop.f32.mrb[20].mxu1  ;;  %v6855_v25 = vpop.eup %6854  ;;  %v1727_v48 = vmul.f32 0.6931472, %v6853_v51  ;;  %v1671_v62 = vsub.f32 0.0, %v1655_v60  ;;  %v8058_v63 = vadd.f32 %v6528_v43, %v8030_v50 }
 0x2df   : > { %2221 = vst.msk [vmem:[#allocation4 + $0x28] sm:$0xff] %vm678_vm1, %v6554_v4  ;;  %v1545_v44 = vpop.f32.mrb[21].mxu0  ;;  %v1979_v45 = vpop.f32.mrb[21].mxu1  ;;  %v1718_v42 = vmul.f32 0.6931472, %v6855_v25  ;;  %v1670_v8 = vsub.f32 0.0, %v1654_v49 }
 0x2e0   : > { %v8062_v35 = vadd.f32 %v8030_v50, %v1545_v44  ;;  %2220 = vst.msk [vmem:[#allocation4 + $0x20] sm:$0xff] %vm678_vm1, %v1979_v45  ;;  %v1733_v51 = vsel %vm8052_vm2, %v1730_v6, %v1727_v48  ;;  %v1690_v28 = vmul.f32 1.442695, %v1671_v62  ;;  %v1657_v57 = vand.u32 2147483647, %v8058_v63 }
 0x2e1   : > { %v1861_v60 = vadd.f32 %v1733_v51, %v1605_v32  ;;  %v1724_v43 = vsel %vm1723_vm3, %v1721_v11, %v1718_v42  ;;  %v1688_v4 = vmul.f32 1.442695, %v1670_v8  ;;  %v6531_v25 = vpop.f32.mrb[22].mxu0  ;;  %v6557_v30 = vpop.f32.mrb[22].mxu1  ;;  %vm1625_vm11 = vcmp.ne.f32.partialorder %v8058_v63, %v8058_v63 }
 0x2e2   : > { %v1860_v44 = vadd.f32 %v1724_v43, %v1604_v9  ;;  %6856 = vpow2.f32 %v1690_v28  ;;  %2223 = vst.msk [vmem:[#allocation4 + $0x38] sm:$0xff] %vm678_vm1, %v6557_v30  ;;  %v1555_v48 = vpop.f32.mrb[23].mxu0  ;;  %v1989_v45 = vpop.f32.mrb[23].mxu1  ;;  %v1673_v8 = vsub.f32 0.0, %v1657_v57  ;;  %v1656_v42 = vand.u32 2147483647, %v8062_v35 }
 0x2e3   : > { %v1877_v62 = vsel %vm1621_vm4, %v8033_v53, %v1861_v60  ;;  %6858 = vpow2.f32 %v1688_v4  ;;  %2222 = vst.msk [vmem:[#allocation4 + $0x30] sm:$0xff] %vm678_vm1, %v1989_v45  ;;  %v8080_v32 = vadd.f32 %v6531_v25, %v8030_v50  ;;  %v8083_v31 = vadd.f32 %v8030_v50, %v1555_v48 }
 0x2e4   : > { %2201 = vst.msk [vmem:[#allocation3 + $0x8] sm:$0xff] %vm678_vm1, %v1877_v62  ;;  %v1876_v33 = vsel %vm1620_vm5, %v8037_v29, %v1860_v44  ;;  %v1694_v21 = vmul.f32 1.442695, %v1673_v8  ;;  %v1672_v53 = vsub.f32 0.0, %v1656_v42  ;;  %vm1624_vm12 = vcmp.ne.f32.partialorder %v8062_v35, %v8062_v35 }
 0x2e5   : > { %2200 = vst.msk [vmem:[#allocation3] sm:$0xff] %vm678_vm1, %v1876_v33  ;;  %v6534_v49 = vpop.f32.mrb[24].mxu0  ;;  %v6560_v57 = vpop.f32.mrb[24].mxu1  ;;  %v1659_v6 = vand.u32 2147483647, %v8080_v32  ;;  %vm1627_vm14 = vcmp.ne.f32.partialorder %v8080_v32, %v8080_v32  ;;  %vm1626_vm0 = vcmp.ne.f32.partialorder %v8083_v31, %v8083_v31 }
 0x2e6   : > { %2225 = vst.msk [vmem:[#allocation4 + $0x48] sm:$0xff] %vm678_vm1, %v6560_v57  ;;  %v1565_v11 = vpop.f32.mrb[25].mxu0  ;;  %v1999_v51 = vpop.f32.mrb[25].mxu1  ;;  %6860 = vpow2.f32 %v1694_v21  ;;  %v1692_v29 = vmul.f32 1.442695, %v1672_v53  ;;  %v8091_v60 = vadd.f32 %v6534_v49, %v8030_v50 }
 0x2e7   : > { %v1658_v9 = vand.u32 2147483647, %v8083_v31  ;;  %2224 = vst.msk [vmem:[#allocation4 + $0x40] sm:$0xff] %vm678_vm1, %v1999_v51  ;;  %v1675_v28 = vsub.f32 0.0, %v1659_v6  ;;  %v8094_v43 = vadd.f32 %v8030_v50, %v1565_v11 }
 0x2e8   : > { %6862 = vpow2.f32 %v1692_v29  ;;  %v1661_v48 = vand.u32 2147483647, %v8091_v60  ;;  %vm1629_vm5 = vcmp.ne.f32.partialorder %v8091_v60, %v8091_v60 }
 0x2e9   : > { %v1674_v4 = vsub.f32 0.0, %v1658_v9  ;;  %v6537_v25 = vpop.f32.mrb[26].mxu0  ;;  %v6563_v30 = vpop.f32.mrb[26].mxu1  ;;  %v1698_v44 = vmul.f32 1.442695, %v1675_v28 }
 0x2ea   : > { %2227 = vst.msk [vmem:[#allocation4 + $0x58] sm:$0xff] %vm678_vm1, %v6563_v30  ;;  %v1575_v45 = vpop.f32.mrb[27].mxu0  ;;  %v1660_v8 = vand.u32 2147483647, %v8094_v43  ;;  %v2009_v42 = vpop.f32.mrb[27].mxu1  ;;  %v1677_v21 = vsub.f32 0.0, %v1661_v48  ;;  %v8104_v28 = vadd.f32 %v6537_v25, %v8030_v50 }
 0x2eb   : > { %v1696_v62 = vmul.f32 1.442695, %v1674_v4  ;;  %6864 = vpow2.f32 %v1698_v44  ;;  %2226 = vst.msk [vmem:[#allocation4 + $0x50] sm:$0xff] %vm678_vm1, %v2009_v42  ;;  %v8125_v17 = vadd.f32 %v8030_v50, %v1575_v45 }
 0x2ec   : > { %v6857_v33 = vpop.eup %6856  ;;  %v1702_v51 = vmul.f32 1.442695, %v1677_v21  ;;  %v1676_v9 = vsub.f32 0.0, %v1660_v8 }
 0x2ed   : > { %v6859_v53 = vpop.eup %6858  ;;  %v1743_v49 = vadd.f32 1.0, %v6857_v33  ;;  %6866 = vpow2.f32 %v1696_v62  ;;  %v8100_v57 = vpop.f32.mrb[28].mxu0  ;;  %v1746_v29 = vmul.f32 -0.5, %v6857_v33  ;;  %v1749_v58 = vand.u32 2147483647, %v6857_v33 }
 0x2ee   : > { %v6566_v6 = vpop.f32.mrb[28].mxu1  ;;  %v1734_v11 = vadd.f32 1.0, %v6859_v53  ;;  %v8106_v4 = vpop.f32.mrb[29].mxu0  ;;  %v1737_v62 = vmul.f32 -0.5, %v6859_v53  ;;  %v1700_v8 = vmul.f32 1.442695, %v1676_v9 }
 0x2ef   : > { %2229 = vst.msk [vmem:[#allocation4 + $0x68] sm:$0xff] %vm678_vm1, %v6566_v6  ;;  %6868 = vlog2.f32 %v1743_v49  ;;  %v2019_v30 = vpop.f32.mrb[29].mxu1  ;;  %v1740_v1 = vand.u32 2147483647, %v6859_v53  ;;  %v1663_v49 = vand.u32 2147483647, %v8104_v28 }
 0x2f0   : > { %6870 = vlog2.f32 %v1734_v11  ;;  %2228 = vst.msk [vmem:[#allocation4 + $0x60] sm:$0xff] %vm678_vm1, %v2019_v30  ;;  %v6861_v42 = vpop.eup %6860  ;;  %v1747_v30 = vadd.f32 1.0, %v1746_v29  ;;  %vm8131_vm7 = vcmp.lt.f32.partialorder %v1749_v58, 0.0004427343  ;;  %v1662_v61 = vand.u32 2147483647, %v8125_v17 }
 0x2f1   : > { %6872 = vpow2.f32 %v1702_v51  ;;  %v8113_v25 = vpop.f32.mrb[30].mxu0  ;;  %v6569_v6 = vpop.f32.mrb[30].mxu1  ;;  %v1761_v38 = vadd.f32 1.0, %v6861_v42  ;;  %v1764_v0 = vmul.f32 -0.5, %v6861_v42  ;;  %v1738_v51 = vadd.f32 1.0, %v1737_v62 }
 0x2f2   : > { %2231 = vst.msk [vmem:[#allocation4 + $0x78] sm:$0xff] %vm678_vm1, %v6569_v6  ;;  %v8116_v48 = vpop.f32.mrb[31].mxu0  ;;  %v2029_v11 = vpop.f32.mrb[31].mxu1  ;;  %6874 = vpow2.f32 %v1700_v8  ;;  %v1767_v9 = vand.u32 2147483647, %v6861_v42  ;;  %v1679_v47 = vsub.f32 0.0, %v1663_v49  ;;  %v1748_v49 = vmul.f32 %v6857_v33, %v1747_v30 }
 0x2f3   : > { %v8118_v44 = vpop.eup %6862  ;;  %2230 = vst.msk [vmem:[#allocation4 + $0x70] sm:$0xff] %vm678_vm1, %v2029_v11  ;;  %6876 = vlog2.f32 %v1761_v38  ;;  %v1765_v2 = vadd.f32 1.0, %v1764_v0  ;;  %vm8141_vm9 = vcmp.lt.f32.partialorder %v1740_v1, 0.0004427343  ;;  %v1739_v38 = vmul.f32 %v6859_v53, %v1738_v51 }
 0x2f4   : > { %v1752_v21 = vadd.f32 1.0, %v8118_v44  ;;  %v1755_v58 = vmul.f32 -0.5, %v8118_v44  ;;  %vm8148_vm10 = vcmp.lt.f32.partialorder %v1767_v9, 0.0004427343  ;;  %v1758_v33 = vand.u32 2147483647, %v8118_v44 }
 0x2f5   : > { %v8127_v27 = vpop.eup %6864  ;;  %v6574_v62 = vpop.f32.mrb[32].mxu0  ;;  %v1766_v6 = vmul.f32 %v6861_v42, %v1765_v2  ;;  %v1706_v52 = vmul.f32 1.442695, %v1679_v47  ;;  %v8159_v51 = vadd.f32 %v8100_v57, %v8030_v50  ;;  %v8168_v42 = vadd.f32 %v8030_v50, %v8106_v4 }
 0x2f6   : > { %6878 = vlog2.f32 %v1752_v21  ;;  %v1779_v11 = vadd.f32 1.0, %v8127_v27  ;;  %2233 = vst.msk [vmem:[#allocation5 + $0x8] sm:$0xff] %vm678_vm1, %v6574_v62  ;;  %v2105_v21 = vpop.f32.mrb[33].mxu0  ;;  %v1782_v53 = vmul.f32 -0.5, %v8127_v27  ;;  %v1756_v47 = vadd.f32 1.0, %v1755_v58 }
 0x2f7   : > { %v8137_v8 = vpop.eup %6866  ;;  %2232 = vst.msk [vmem:[#allocation5] sm:$0xff] %vm678_vm1, %v2105_v21  ;;  %v11011_v58 = vmax.f32 %v8043_v18, 0.0  ;;  %vm8194_vm13 = vcmp.lt.f32.partialorder %v1758_v33, 0.0004427343 }
 0x2f8   : > { %v1770_v30 = vadd.f32 1.0, %v8137_v8  ;;  %6880 = vlog2.f32 %v1779_v11  ;;  %v1773_v11 = vmul.f32 -0.5, %v8137_v8  ;;  %v1776_v29 = vand.u32 2147483647, %v8137_v8 }
 0x2f9   : > { %v6869_v1 = vpop.eup %6868  ;;  %v6577_v22 = vpop.f32.mrb[34].mxu0  ;;  %v1783_v16 = vadd.f32 1.0, %v1782_v53 }
 0x2fa   : > { %v6871_v62 = vpop.eup %6870  ;;  %v1745_v56 = vmul.f32 0.6931472, %v6869_v1  ;;  %6882 = vlog2.f32 %v1770_v30  ;;  %2235 = vst.msk [vmem:[#allocation5 + $0x18] sm:$0xff] %vm678_vm1, %v6577_v22  ;;  %v2115_v9 = vpop.f32.mrb[35].mxu0 }
 0x2fb   : > { %v8162_v21 = vpop.eup %6872  ;;  %v1736_v2 = vmul.f32 0.6931472, %v6871_v62  ;;  %6884 = vpow2.f32 %v1706_v52  ;;  %2234 = vst.msk [vmem:[#allocation5 + $0x10] sm:$0xff] %vm678_vm1, %v2115_v9  ;;  %v1785_v22 = vand.u32 2147483647, %v8127_v27  ;;  %v11012_v9 = vmax.f32 %v8047_v15, 0.0 }
 0x2fc   : > { %v1751_v57 = vsel %vm8131_vm7, %v1748_v49, %v1745_v56  ;;  %v1797_v30 = vadd.f32 1.0, %v8162_v21  ;;  %v8176_v1 = vpop.eup %6874  ;;  %v1678_v56 = vsub.f32 0.0, %v1662_v61  ;;  %v1757_v61 = vmul.f32 %v8118_v44, %v1756_v47 }
 0x2fd   : > { %v1863_v52 = vadd.f32 %v1751_v57, %v11011_v58  ;;  %v1742_v4 = vsel %vm8141_vm9, %v1739_v38, %v1736_v2  ;;  %v6580_v49 = vpop.f32.mrb[36].mxu0  ;;  %v6877_v62 = vpop.eup %6876  ;;  %v1788_v20 = vadd.f32 1.0, %v8176_v1  ;;  %vm8206_vm15 = vcmp.lt.f32.partialorder %v1785_v22, 0.0004427343 }
 0x2fe   : > { %v1862_v5 = vadd.f32 %v1742_v4, %v11012_v9  ;;  %6886 = vlog2.f32 %v1797_v30  ;;  %2237 = vst.msk [vmem:[#allocation5 + $0x28] sm:$0xff] %vm678_vm1, %v6580_v49  ;;  %v2125_v57 = vpop.f32.mrb[37].mxu0  ;;  %v1763_v45 = vmul.f32 0.6931472, %v6877_v62  ;;  %v1800_v44 = vmul.f32 -0.5, %v8162_v21 }
 0x2ff   : > { %v1879_v38 = vsel %vm1623_vm6, %v8043_v18, %v1863_v52  ;;  %2236 = vst.msk [vmem:[#allocation5 + $0x20] sm:$0xff] %vm678_vm1, %v2125_v57  ;;  %6888 = vlog2.f32 %v1788_v20  ;;  %v11017_v22 = vmax.f32 %v8058_v63, 0.0  ;;  %v1784_v4 = vmul.f32 %v8127_v27, %v1783_v16 }
 0x300   : > { %v6879_v53 = vpop.eup %6878  ;;  %2203 = vst.msk [vmem:[#allocation3 + $0x18] sm:$0xff] %vm678_vm1, %v1879_v38  ;;  %v1878_v30 = vsel %vm1622_vm8, %v8047_v15, %v1862_v5  ;;  %v1769_v33 = vsel %vm8148_vm10, %v1766_v6, %v1763_v45  ;;  %v1774_v5 = vadd.f32 1.0, %v1773_v11  ;;  %v1704_v15 = vmul.f32 1.442695, %v1678_v56 }
 0x301   : > { %2202 = vst.msk [vmem:[#allocation3 + $0x10] sm:$0xff] %vm678_vm1, %v1878_v30  ;;  %v1754_v47 = vmul.f32 0.6931472, %v6879_v53  ;;  %v6583_v58 = vpop.f32.mrb[38].mxu0  ;;  %v1865_v52 = vadd.f32 %v1769_v33, %v11017_v22  ;;  %v1791_v56 = vmul.f32 -0.5, %v8176_v1  ;;  %v1801_v38 = vadd.f32 1.0, %v1800_v44 }
 0x302   : > { %vm8219_vm2 = vcmp.lt.f32.partialorder %v1776_v29, 0.0004427343  ;;  %v1803_v20 = vand.u32 2147483647, %v8162_v21  ;;  %2239 = vst.msk [vmem:[#allocation5 + $0x38] sm:$0xff] %vm678_vm1, %v6583_v58  ;;  %v6881_v0 = vpop.eup %6880  ;;  %6890 = vpow2.f32 %v1704_v15  ;;  %v11020_v29 = vmax.f32 %v8062_v35, 0.0 }
 0x303   : > { %v2135_v6 = vpop.f32.mrb[39].mxu0  ;;  %v1760_v11 = vsel %vm8194_vm13, %v1757_v61, %v1754_v47  ;;  %v1665_v62 = vand.u32 2147483647, %v8159_v51  ;;  %v1881_v27 = vsel %vm1625_vm11, %v8058_v63, %v1865_v52  ;;  %v1781_v57 = vmul.f32 0.6931472, %v6881_v0 }
 0x304   : > { %2238 = vst.msk [vmem:[#allocation5 + $0x30] sm:$0xff] %vm678_vm1, %v2135_v6  ;;  %v6883_v16 = vpop.eup %6882  ;;  %v1864_v9 = vadd.f32 %v1760_v11, %v11020_v29  ;;  %2205 = vst.msk [vmem:[#allocation3 + $0x28] sm:$0xff] %vm678_vm1, %v1881_v27  ;;  %v1775_v2 = vmul.f32 %v8137_v8, %v1774_v5  ;;  %v1664_v30 = vand.u32 2147483647, %v8168_v42  ;;  %vm8247_vm3 = vcmp.lt.f32.partialorder %v1803_v20, 0.0004427343 }
 0x305   : > { %v8236_v45 = vpop.eup %6884  ;;  %v1772_v61 = vmul.f32 0.6931472, %v6883_v16  ;;  %v1681_v53 = vsub.f32 0.0, %v1665_v62  ;;  %v6586_v33 = vpop.f32.mrb[40].mxu0  ;;  %v1787_v47 = vsel %vm8206_vm15, %v1784_v4, %v1781_v57  ;;  %v11023_v5 = vmax.f32 %v8080_v32, 0.0 }
 0x306   : > { %v1880_v63 = vsel %vm1624_vm12, %v8062_v35, %v1864_v9  ;;  %v1815_v15 = vadd.f32 1.0, %v8236_v45  ;;  %2241 = vst.msk [vmem:[#allocation5 + $0x48] sm:$0xff] %vm678_vm1, %v6586_v33  ;;  %v2145_v8 = vpop.f32.mrb[41].mxu0  ;;  %v1792_v22 = vadd.f32 1.0, %v1791_v56  ;;  %v11024_v4 = vmax.f32 %v8083_v31, 0.0 }
 0x307   : > { %2204 = vst.msk [vmem:[#allocation3 + $0x20] sm:$0xff] %vm678_vm1, %v1880_v63  ;;  %v1867_v58 = vadd.f32 %v1787_v47, %v11023_v5  ;;  %v1778_v35 = vsel %vm8219_vm2, %v1775_v2, %v1772_v61  ;;  %v1710_v18 = vmul.f32 1.442695, %v1681_v53  ;;  %2240 = vst.msk [vmem:[#allocation5 + $0x40] sm:$0xff] %vm678_vm1, %v2145_v8  ;;  %v1794_v6 = vand.u32 2147483647, %v8176_v1 }
 0x308   : > { %v6887_v52 = vpop.eup %6886  ;;  %v1866_v20 = vadd.f32 %v1778_v35, %v11024_v4  ;;  %6892 = vlog2.f32 %v1815_v15  ;;  %v1680_v0 = vsub.f32 0.0, %v1664_v30  ;;  %v1802_v49 = vmul.f32 %v8162_v21, %v1801_v38 }
 0x309   : > { %v1883_v11 = vsel %vm1627_vm14, %v8080_v32, %v1867_v58  ;;  %v1799_v62 = vmul.f32 0.6931472, %v6887_v52  ;;  %6894 = vpow2.f32 %v1710_v18  ;;  %v6589_v56 = vpop.f32.mrb[42].mxu0  ;;  %v6889_v16 = vpop.eup %6888  ;;  %v1818_v29 = vmul.f32 -0.5, %v8236_v45 }
 0x30a   : > { %2207 = vst.msk [vmem:[#allocation3 + $0x38] sm:$0xff] %vm678_vm1, %v1883_v11  ;;  %v1882_v27 = vsel %vm1626_vm0, %v8083_v31, %v1866_v20  ;;  %v1708_v9 = vmul.f32 1.442695, %v1680_v0  ;;  %v8275_v57 = vadd.f32 %v8113_v25, %v8030_v50  ;;  %2243 = vst.msk [vmem:[#allocation5 + $0x58] sm:$0xff] %vm678_vm1, %v6589_v56  ;;  %v2155_v32 = vpop.f32.mrb[43].mxu0  ;;  %v1793_v61 = vmul.f32 %v8176_v1, %v1792_v22 }
 0x30b   : > { %2206 = vst.msk [vmem:[#allocation3 + $0x30] sm:$0xff] %vm678_vm1, %v1882_v27  ;;  %v1805_v21 = vsel %vm8247_vm3, %v1802_v49, %v1799_v62  ;;  %v1790_v38 = vmul.f32 0.6931472, %v6889_v16  ;;  %v8284_v31 = vadd.f32 %v8030_v50, %v8116_v48  ;;  %2242 = vst.msk [vmem:[#allocation5 + $0x50] sm:$0xff] %vm678_vm1, %v2155_v32  ;;  %v11025_v25 = vmax.f32 %v8091_v60, 0.0 }
 0x30c   : > { %v1612_v53 = vmax.f32 %v8094_v43, 0.0  ;;  %vm1795_vm4 = vcmp.lt.f32.partialorder %v1794_v6, 0.0004427343  ;;  %6896 = vpow2.f32 %v1708_v9  ;;  %v6891_v30 = vpop.eup %6890  ;;  %v1667_v1 = vand.u32 2147483647, %v8275_v57 }
 0x30d   : > { %v1869_v2 = vadd.f32 %v1805_v21, %v11025_v25  ;;  %v1796_v33 = vsel %vm1795_vm4, %v1793_v61, %v1790_v38  ;;  %v6592_v63 = vpop.f32.mrb[44].mxu0  ;;  %v1819_v47 = vadd.f32 1.0, %v1818_v29  ;;  %v1806_v44 = vadd.f32 1.0, %v6891_v30 }
 0x30e   : > { %v1868_v48 = vadd.f32 %v1796_v33, %v1612_v53  ;;  %2245 = vst.msk [vmem:[#allocation5 + $0x68] sm:$0xff] %vm678_vm1, %v6592_v63  ;;  %v2165_v15 = vpop.f32.mrb[45].mxu0  ;;  %vm1628_vm6 = vcmp.ne.f32.partialorder %v8094_v43, %v8094_v43  ;;  %v1683_v8 = vsub.f32 0.0, %v1667_v1  ;;  %v1666_v5 = vand.u32 2147483647, %v8284_v31 }
 0x30f   : > { %v1885_v50 = vsel %vm1629_vm5, %v8091_v60, %v1869_v2  ;;  %2244 = vst.msk [vmem:[#allocation5 + $0x60] sm:$0xff] %vm678_vm1, %v2165_v15  ;;  %v1821_v60 = vand.u32 2147483647, %v8236_v45  ;;  %6898 = vlog2.f32 %v1806_v44  ;;  %v1820_v4 = vmul.f32 %v8236_v45, %v1819_v47 }
 0x310   : > { %2209 = vst.msk [vmem:[#allocation3 + $0x48] sm:$0xff] %vm678_vm1, %v1885_v50  ;;  %v1884_v58 = vsel %vm1628_vm6, %v8094_v43, %v1868_v48  ;;  %v1714_v35 = vmul.f32 1.442695, %v1683_v8  ;;  %v1682_v22 = vsub.f32 0.0, %v1666_v5  ;;  %v1809_v11 = vmul.f32 -0.5, %v6891_v30 }
 0x311   : > { %2208 = vst.msk [vmem:[#allocation3 + $0x40] sm:$0xff] %vm678_vm1, %v1884_v58  ;;  %v6595_v18 = vpop.f32.mrb[46].mxu0  ;;  %v1615_v43 = vmax.f32 %v8104_v28, 0.0  ;;  %vm1822_vm7 = vcmp.lt.f32.partialorder %v1821_v60, 0.0004427343  ;;  %vm1631_vm8 = vcmp.ne.f32.partialorder %v8104_v28, %v8104_v28  ;;  %v1614_v2 = vmax.f32 %v8125_v17, 0.0 }
 0x312   : > { %v6893_v52 = vpop.eup %6892  ;;  %2247 = vst.msk [vmem:[#allocation5 + $0x78] sm:$0xff] %vm678_vm1, %v6595_v18  ;;  %v2175_v20 = vpop.f32.mrb[47].mxu0  ;;  %6900 = vpow2.f32 %v1714_v35  ;;  %v1712_v62 = vmul.f32 1.442695, %v1682_v22  ;;  %v1810_v45 = vadd.f32 1.0, %v1809_v11  ;;  %vm1630_vm10 = vcmp.ne.f32.partialorder %v8125_v17, %v8125_v17 }
 0x313   : > { %v6895_v6 = vpop.eup %6894  ;;  %v1817_v0 = vmul.f32 0.6931472, %v6893_v52  ;;  %2246 = vst.msk [vmem:[#allocation5 + $0x70] sm:$0xff] %vm678_vm1, %v2175_v20  ;;  %v1812_v32 = vand.u32 2147483647, %v6891_v30  ;;  %v1617_v35 = vmax.f32 %v8159_v51, 0.0  ;;  %vm1633_vm12 = vcmp.ne.f32.partialorder %v8159_v51, %v8159_v51 }
 0x314   : > { %v1833_v49 = vadd.f32 1.0, %v6895_v6  ;;  %6902 = vpow2.f32 %v1712_v62  ;;  %v1836_v21 = vmul.f32 -0.5, %v6895_v6  ;;  %v1811_v25 = vmul.f32 %v6891_v30, %v1810_v45 }
 0x315   : > { %v1823_v56 = vsel %vm1822_vm7, %v1820_v4, %v1817_v0  ;;  %vm1813_vm9 = vcmp.lt.f32.partialorder %v1812_v32, 0.0004427343  ;;  %v1839_v48 = vand.u32 2147483647, %v6895_v6  ;;  %vm1632_vm14 = vcmp.ne.f32.partialorder %v8168_v42, %v8168_v42 }
 0x316   : > { %v6897_v16 = vpop.eup %6896  ;;  %v1871_v27 = vadd.f32 %v1823_v56, %v1615_v43  ;;  %6904 = vlog2.f32 %v1833_v49  ;;  %v1837_v63 = vadd.f32 1.0, %v1836_v21  ;;  %vm1635_vm0 = vcmp.ne.f32.partialorder %v8275_v57, %v8275_v57 }
 0x317   : > { %v1824_v29 = vadd.f32 1.0, %v6897_v16  ;;  %v1827_v53 = vmul.f32 -0.5, %v6897_v16  ;;  %v1830_v58 = vand.u32 2147483647, %v6897_v16  ;;  %vm1840_vm11 = vcmp.lt.f32.partialorder %v1839_v48, 0.0004427343 }
 0x318   : > { %v1887_v9 = vsel %vm1631_vm8, %v8104_v28, %v1871_v27  ;;  %v1838_v5 = vmul.f32 %v6895_v6, %v1837_v63  ;;  %vm1634_vm3 = vcmp.ne.f32.partialorder %v8284_v31, %v8284_v31 }
 0x319   : > { %2211 = vst.msk [vmem:[#allocation3 + $0x58] sm:$0xff] %vm678_vm1, %v1887_v9  ;;  %6906 = vlog2.f32 %v1824_v29  ;;  %v6899_v38 = vpop.eup %6898  ;;  %v1828_v8 = vadd.f32 1.0, %v1827_v53  ;;  %vm1831_vm13 = vcmp.lt.f32.partialorder %v1830_v58, 0.0004427343 }
 0x31a   : > { %v1808_v61 = vmul.f32 0.6931472, %v6899_v38 }
 0x31b   : > { %v1829_v0 = vmul.f32 %v6897_v16, %v1828_v8 }
 0x31c   : > { %v6901_v33 = vpop.eup %6900  ;;  %v1814_v1 = vsel %vm1813_vm9, %v1811_v25, %v1808_v61 }
 0x31d   : > { %v1870_v50 = vadd.f32 %v1814_v1, %v1614_v2  ;;  %v1851_v47 = vadd.f32 1.0, %v6901_v33  ;;  %v1854_v52 = vmul.f32 -0.5, %v6901_v33  ;;  %v1857_v56 = vand.u32 2147483647, %v6901_v33 }
 0x31e   : > { %v6903_v44 = vpop.eup %6902 }
 0x31f   : > { %v1886_v15 = vsel %vm1630_vm10, %v8125_v17, %v1870_v50  ;;  %6908 = vlog2.f32 %v1851_v47  ;;  %v1842_v60 = vadd.f32 1.0, %v6903_v44  ;;  %v1616_v17 = vmax.f32 %v8168_v42, 0.0 }
 0x320   : > { %v6905_v28 = vpop.eup %6904  ;;  %2210 = vst.msk [vmem:[#allocation3 + $0x50] sm:$0xff] %vm678_vm1, %v1886_v15  ;;  %v1845_v62 = vmul.f32 -0.5, %v6903_v44  ;;  %v1855_v49 = vadd.f32 1.0, %v1854_v52  ;;  %v1848_v32 = vand.u32 2147483647, %v6903_v44 }
 0x321   : > { %v1835_v30 = vmul.f32 0.6931472, %v6905_v28  ;;  %6910 = vlog2.f32 %v1842_v60  ;;  %vm1858_vm15 = vcmp.lt.f32.partialorder %v1857_v56, 0.0004427343 }
 0x322   : > { %v1846_v45 = vadd.f32 1.0, %v1845_v62  ;;  %v1856_v9 = vmul.f32 %v6901_v33, %v1855_v49  ;;  %vm1849_vm2 = vcmp.lt.f32.partialorder %v1848_v32, 0.0004427343 }
 0x323   : > { %v6907_v22 = vpop.eup %6906  ;;  %v1841_v18 = vsel %vm1840_vm11, %v1838_v5, %v1835_v30 }
 0x324   : > { %v1873_v4 = vadd.f32 %v1841_v18, %v1617_v35  ;;  %v1826_v20 = vmul.f32 0.6931472, %v6907_v22  ;;  %v1847_v2 = vmul.f32 %v6903_v44, %v1846_v45 }
 0x326   : > { %v1889_v6 = vsel %vm1633_vm12, %v8159_v51, %v1873_v4  ;;  %v1832_v11 = vsel %vm1831_vm13, %v1829_v0, %v1826_v20  ;;  %v1619_v51 = vmax.f32 %v8275_v57, 0.0 }
 0x327   : > { %2213 = vst.msk [vmem:[#allocation3 + $0x68] sm:$0xff] %vm678_vm1, %v1889_v6  ;;  %v1872_v43 = vadd.f32 %v1832_v11, %v1616_v17 }
 0x329   : > { %v1888_v16 = vsel %vm1632_vm14, %v8168_v42, %v1872_v43  ;;  %v6909_v27 = vpop.eup %6908  ;;  %v1618_v42 = vmax.f32 %v8284_v31, 0.0 }
 0x32a   : > { %2212 = vst.msk [vmem:[#allocation3 + $0x60] sm:$0xff] %vm678_vm1, %v1888_v16  ;;  %v1853_v29 = vmul.f32 0.6931472, %v6909_v27 }
 0x32b   : > { %v6911_v21 = vpop.eup %6910 }
 0x32c   : > { %v1859_v38 = vsel %vm1858_vm15, %v1856_v9, %v1853_v29  ;;  %v1844_v25 = vmul.f32 0.6931472, %v6911_v21 }
 0x32d   : > { %v1875_v61 = vadd.f32 %v1859_v38, %v1619_v51 }
 0x32e   : > { %v1850_v1 = vsel %vm1849_vm2, %v1847_v2, %v1844_v25 }
 0x32f   : > { %v1891_v53 = vsel %vm1635_vm0, %v8275_v57, %v1875_v61  ;;  %v1874_v33 = vadd.f32 %v1850_v1, %v1618_v42 }
 0x330   : > { %2215 = vst.msk [vmem:[#allocation3 + $0x78] sm:$0xff] %vm678_vm1, %v1891_v53 }
 0x331   : > { %v1890_v63 = vsel %vm1634_vm3, %v8284_v31, %v1874_v33 }
 0x332   : > { %2214 = vst.msk [vmem:[#allocation3 + $0x70] sm:$0xff] %vm678_vm1, %v1890_v63 }
 0x333 LB: >> { %v2308_v57 = vlaneseq  ;;  %s8390_s20 = sshll.u32 %s7182_s19, 6  ;;  %v7185_v23 = vmov 1966171168   ;;  %vm5614_vm4 = vcmask 1041409   ;;  %vm5616_vm5 = vcmask 1042434   ;;  %s2262_s19 = sadd.s32 1, %s7182_s19   ;;  %s7182_s19 = sphi %s8360_s19, %s2262_s19   ;;  %v7178_v36 = vphi %v8011_v36, %v11396_v36   ;;  %v7174_v39 = vphi %v8013_v39, %v11395_v39   ;;  %v7170_v14 = vphi %v8015_v14, %v11394_v14   ;;  %v7166_v59 = vphi %v8017_v59, %v11393_v59   ;;  %v7162_v19 = vphi %v8019_v19, %v11392_v19   ;;  %v7158_v46 = vphi %v8021_v46, %v11391_v46   ;;  %v7154_v7 = vphi %v8023_v7, %v11390_v7   ;;  %v7150_v12 = vphi %v8025_v12, %v11389_v12  }
 0x334   : >> { %s8395_s30 = scalar_lea.vmem [#allocation3], %s8390_s20  ;;  %s8577_s0 = scalar_lea.vmem [#allocation2], %s8390_s20  ;;  %vm5618_vm6 = vcmask 1043459   ;;  %vm5620_vm7 = vcmask 1044484   ;;  %vm5622_vm8 = vcmask 1045509   ;;  %vm5624_vm9 = vcmask 1046534  }
 0x335   : >> { %v8392_v31 = vshrl.u32 %v2308_v57, 7  ;;  %v5357_v50 = vand.u32 127, %v2308_v57  ;;  %v2285_v40 = vld [vmem:[%s8577_s0 + $0x18] sm:$0xff]  ;;  %s8700_s18 = scalar_lea.vmem [#allocation4], %s8390_s20  ;;  %s8743_s13 = scalar_lea.vmem [#allocation5], %s8390_s20  ;;  %vm5626_vm10 = vcmask 1047559  }
 0x336   : >> { %s10481_s14 = scalar_lea.vmem [#allocation6], %s8390_s20  ;;  %p2259_p13 = scmp.ge.s32.totalorder %s2262_s19, 2  }
 0x337   : >> { %v8401_v47 = vsub.s32 0, %v8392_v31  ;;  %v8404_v44 = vsub.s32 2, %v8392_v31  ;;  %v8407_v28 = vsub.s32 %v5357_v50, %v8392_v31  ;;  %v8410_v15 = vsub.s32 3, %v8392_v31  ;;  %s11397_s28 = sld [smem:[#allocation171_spill]] (%p2259_p13)  ;;  %s11398_s19 = sld [smem:[#allocation170_spill]] (%p2259_p13) }
 0x338   : >> { %v8413_v8 = vsub.s32 1, %v8392_v31  ;;  %v8424_v35 = vsub.s32 5, %v8392_v31  ;;  %v8427_v22 = vsub.s32 4, %v8392_v31  ;;  %v8434_v4 = vsub.s32 7, %v8392_v31 }
 0x339   : >> { %v8398_v48 = vld [vmem:[%s8395_s30] sm:$0xff]  ;;  %11026 = vst [vmem:[#allocation63_spill] sm:$0xff] %v8407_v28  ;;  %v8437_v20 = vsub.s32 6, %v8392_v31  ;;  %v8444_v6 = vld [vmem:[%s8395_s30 + $0x8] sm:$0xff]  ;;  %v8463_v29 = vld [vmem:[%s8395_s30 + $0x10] sm:$0xff] }
 0x33a   : >> { %v2325_v30 = vrot.slane %v8398_v48, %v8404_v44  ;;  %v2311_v5 = vrot.slane %v8398_v48, %v8401_v47  ;;  %v2332_v58 = vrot.slane %v8398_v48, %v8410_v15  ;;  %v2318_v60 = vrot.slane %v8398_v48, %v8413_v8  ;;  %v8482_v42 = vld [vmem:[%s8395_s30 + $0x18] sm:$0xff] }
 0x33b   : >> { %v2346_v18 = vrot.slane %v8398_v48, %v8424_v35  ;;  %v2339_v52 = vrot.slane %v8398_v48, %v8427_v22  ;;  %v2360_v0 = vrot.slane %v8398_v48, %v8434_v4  ;;  %v2353_v17 = vrot.slane %v8398_v48, %v8437_v20 }
 0x33c   : >> { %2327 = vbcast.lane.b32.xlu1 %v2325_v30, 256  ;;  %2313 = vbcast.lane.b32.xlu0 %v2311_v5, 256  ;;  %v2374_v11 = vrot.slane %v8444_v6, %v8413_v8  ;;  %v2367_v62 = vrot.slane %v8444_v6, %v8401_v47  ;;  %v2388_v43 = vrot.slane %v8444_v6, %v8410_v15 }
 0x33d   : >> { %v2381_v49 = vrot.slane %v8444_v6, %v8404_v44  ;;  %v2402_v56 = vrot.slane %v8444_v6, %v8424_v35  ;;  %v2395_v16 = vrot.slane %v8444_v6, %v8427_v22  ;;  %v2416_v27 = vrot.slane %v8444_v6, %v8434_v4 }
 0x33e   : >> { %v2409_v45 = vrot.slane %v8444_v6, %v8437_v20  ;;  %v2430_v9 = vrot.slane %v8463_v29, %v8413_v8  ;;  %v2423_v32 = vrot.slane %v8463_v29, %v8401_v47  ;;  %v2444_v51 = vrot.slane %v8463_v29, %v8410_v15 }
 0x33f   : >> { %v2437_v21 = vrot.slane %v8463_v29, %v8404_v44  ;;  %v2458_v38 = vrot.slane %v8463_v29, %v8424_v35  ;;  %v2451_v61 = vrot.slane %v8463_v29, %v8427_v22  ;;  %v2472_v25 = vrot.slane %v8463_v29, %v8434_v4 }
 0x340   : >> { %2334 = vbcast.lane.b32.xlu1 %v2332_v58, 256  ;;  %2320 = vbcast.lane.b32.xlu0 %v2318_v60, 256  ;;  %v2465_v2 = vrot.slane %v8463_v29, %v8437_v20  ;;  %v2486_v53 = vrot.slane %v8482_v42, %v8413_v8  ;;  %v2479_v1 = vrot.slane %v8482_v42, %v8401_v47  ;;  %v8501_v58 = vld [vmem:[%s8395_s30 + $0x20] sm:$0xff] }
 0x341   : >> { %v2500_v33 = vrot.slane %v8482_v42, %v8410_v15  ;;  %v2493_v63 = vrot.slane %v8482_v42, %v8404_v44  ;;  %v2514_v57 = vrot.slane %v8482_v42, %v8424_v35  ;;  %v2507_v50 = vrot.slane %v8482_v42, %v8427_v22 }
 0x342   : >> { %v2528_v30 = vrot.slane %v8482_v42, %v8434_v4  ;;  %v2521_v5 = vrot.slane %v8482_v42, %v8437_v20  ;;  %v2542_v60 = vrot.slane %v8501_v58, %v8413_v8  ;;  %v2951_v54 = vmul.f32 %v2285_v40, %v8482_v42 }
 0x344   : >> { %2348 = vbcast.lane.b32.xlu1 %v2346_v18, 256  ;;  %2341 = vbcast.lane.b32.xlu0 %v2339_v52, 256  ;;  %v2535_v18 = vrot.slane %v8501_v58, %v8401_v47  ;;  %v2556_v52 = vrot.slane %v8501_v58, %v8410_v15  ;;  %v3127_v55 = vrot.slane %v2951_v54, %v8401_v47 }
 0x345   : >> { %v3141_v40 = vrot.slane %v2951_v54, %v8404_v44 }
 0x348   : >> { %2362 = vbcast.lane.b32.xlu1 %v2360_v0, 256  ;;  %2355 = vbcast.lane.b32.xlu0 %v2353_v17, 256  ;;  %v2549_v0 = vrot.slane %v8501_v58, %v8404_v44  ;;  %v2570_v17 = vrot.slane %v8501_v58, %v8424_v35 }
 0x34c   : >> { %2376 = vbcast.lane.b32.xlu1 %v2374_v11, 256  ;;  %2369 = vbcast.lane.b32.xlu0 %v2367_v62, 256  ;;  %v2563_v11 = vrot.slane %v8501_v58, %v8427_v22  ;;  %v2584_v62 = vrot.slane %v8501_v58, %v8434_v4 }
 0x350   : >> { %2390 = vbcast.lane.b32.xlu1 %v2388_v43, 256  ;;  %2383 = vbcast.lane.b32.xlu0 %v2381_v49, 256  ;;  %v2577_v43 = vrot.slane %v8501_v58, %v8437_v20  ;;  %v8520_v49 = vld [vmem:[%s8395_s30 + $0x28] sm:$0xff] }
 0x354   : >> { %2404 = vbcast.lane.b32.xlu1 %v2402_v56, 256  ;;  %2397 = vbcast.lane.b32.xlu0 %v2395_v16, 256  ;;  %v2598_v56 = vrot.slane %v8520_v49, %v8413_v8  ;;  %v2591_v16 = vrot.slane %v8520_v49, %v8401_v47 }
 0x358   : >> { %2418 = vbcast.lane.b32.xlu1 %v2416_v27, 256  ;;  %2411 = vbcast.lane.b32.xlu0 %v2409_v45, 256  ;;  %v2612_v27 = vrot.slane %v8520_v49, %v8410_v15  ;;  %v2605_v45 = vrot.slane %v8520_v49, %v8404_v44 }
 0x35c   : >> { %2432 = vbcast.lane.b32.xlu1 %v2430_v9, 256  ;;  %2425 = vbcast.lane.b32.xlu0 %v2423_v32, 256  ;;  %v2626_v9 = vrot.slane %v8520_v49, %v8424_v35  ;;  %v2619_v32 = vrot.slane %v8520_v49, %v8427_v22 }
 0x360   : >> { %2446 = vbcast.lane.b32.xlu1 %v2444_v51, 256  ;;  %2439 = vbcast.lane.b32.xlu0 %v2437_v21, 256  ;;  %v2640_v51 = vrot.slane %v8520_v49, %v8434_v4  ;;  %v2633_v21 = vrot.slane %v8520_v49, %v8437_v20 }
 0x364   : >> { %2460 = vbcast.lane.b32.xlu1 %v2458_v38, 256  ;;  %2453 = vbcast.lane.b32.xlu0 %v2451_v61, 256  ;;  %v8539_v38 = vld [vmem:[%s8395_s30 + $0x30] sm:$0xff] }
 0x365   : >> { %v2654_v61 = vrot.slane %v8539_v38, %v8413_v8 }
 0x368   : >> { %2474 = vbcast.lane.b32.xlu1 %v2472_v25, 256  ;;  %2467 = vbcast.lane.b32.xlu0 %v2465_v2, 256  ;;  %v2647_v25 = vrot.slane %v8539_v38, %v8401_v47  ;;  %v2668_v2 = vrot.slane %v8539_v38, %v8410_v15 }
 0x36c   : >> { %2488 = vbcast.lane.b32.xlu1 %v2486_v53, 256  ;;  %2481 = vbcast.lane.b32.xlu0 %v2479_v1, 256  ;;  %v2661_v53 = vrot.slane %v8539_v38, %v8404_v44  ;;  %v2682_v1 = vrot.slane %v8539_v38, %v8424_v35 }
 0x370   : >> { %2502 = vbcast.lane.b32.xlu1 %v2500_v33, 256  ;;  %2495 = vbcast.lane.b32.xlu0 %v2493_v63, 256  ;;  %v2675_v33 = vrot.slane %v8539_v38, %v8427_v22  ;;  %v2696_v63 = vrot.slane %v8539_v38, %v8434_v4 }
 0x374   : >> { %2516 = vbcast.lane.b32.xlu1 %v2514_v57, 256  ;;  %2509 = vbcast.lane.b32.xlu0 %v2507_v50, 256  ;;  %v2689_v57 = vrot.slane %v8539_v38, %v8437_v20  ;;  %v8558_v50 = vld [vmem:[%s8395_s30 + $0x38] sm:$0xff] }
 0x378   : >> { %2530 = vbcast.lane.b32.xlu1 %v2528_v30, 256  ;;  %2523 = vbcast.lane.b32.xlu0 %v2521_v5, 256  ;;  %v2710_v30 = vrot.slane %v8558_v50, %v8413_v8  ;;  %v2703_v5 = vrot.slane %v8558_v50, %v8401_v47 }
 0x37c   : >> { %2544 = vbcast.lane.b32.xlu1 %v2542_v60, 256  ;;  %2537 = vbcast.lane.b32.xlu0 %v2535_v18, 256  ;;  %v2724_v60 = vrot.slane %v8558_v50, %v8410_v15  ;;  %v2717_v18 = vrot.slane %v8558_v50, %v8404_v44 }
 0x380   : >> { %2558 = vbcast.lane.b32.xlu1 %v2556_v52, 256  ;;  %2551 = vbcast.lane.b32.xlu0 %v2549_v0, 256 }
 0x384   : >> { %2572 = vbcast.lane.b32.xlu1 %v2570_v17, 256  ;;  %2565 = vbcast.lane.b32.xlu0 %v2563_v11, 256  ;;  %v2738_v17 = vrot.slane %v8558_v50, %v8424_v35  ;;  %v2731_v11 = vrot.slane %v8558_v50, %v8427_v22 }
 0x388   : >> { %2586 = vbcast.lane.b32.xlu1 %v2584_v62, 256  ;;  %2579 = vbcast.lane.b32.xlu0 %v2577_v43, 256  ;;  %v2282_v62 = vld [vmem:[%s8577_s0] sm:$0xff] }
 0x38c   : >> { %2600 = vbcast.lane.b32.xlu1 %v2598_v56, 256  ;;  %2593 = vbcast.lane.b32.xlu0 %v2591_v16, 256  ;;  %v2752_v16 = vrot.slane %v8558_v50, %v8434_v4 }
 0x390   : >> { %2614 = vbcast.lane.b32.xlu1 %v2612_v27, 256  ;;  %2607 = vbcast.lane.b32.xlu0 %v2605_v45, 256  ;;  %v2745_v27 = vrot.slane %v8558_v50, %v8437_v20  ;;  %v2948_v45 = vmul.f32 %v2282_v62, %v8398_v48 }
 0x392   : >> { %v2973_v48 = vrot.slane %v2948_v45, %v8404_v44 }
 0x394   : >> { %2628 = vbcast.lane.b32.xlu1 %v2626_v9, 256  ;;  %2621 = vbcast.lane.b32.xlu0 %v2619_v32, 256 }
 0x398   : >> { %2642 = vbcast.lane.b32.xlu1 %v2640_v51, 256  ;;  %2635 = vbcast.lane.b32.xlu0 %v2633_v21, 256  ;;  %v2966_v51 = vrot.slane %v2948_v45, %v8413_v8  ;;  %v2959_v21 = vrot.slane %v2948_v45, %v8401_v47 }
 0x39c   : >> { %2656 = vbcast.lane.b32.xlu1 %v2654_v61, 256  ;;  %2649 = vbcast.lane.b32.xlu0 %v2647_v25, 256 }
 0x3a0   : >> { %2670 = vbcast.lane.b32.xlu1 %v2668_v2, 256  ;;  %2663 = vbcast.lane.b32.xlu0 %v2661_v53, 256  ;;  %v2980_v2 = vrot.slane %v2948_v45, %v8410_v15 }
 0x3a4   : >> { %2684 = vbcast.lane.b32.xlu1 %v2682_v1, 256  ;;  %2677 = vbcast.lane.b32.xlu0 %v2675_v33, 256  ;;  %v2994_v33 = vrot.slane %v2948_v45, %v8424_v35 }
 0x3a8   : >> { %2698 = vbcast.lane.b32.xlu1 %v2696_v63, 256  ;;  %2691 = vbcast.lane.b32.xlu0 %v2689_v57, 256  ;;  %v2987_v63 = vrot.slane %v2948_v45, %v8427_v22  ;;  %v2283_v57 = vld [vmem:[%s8577_s0 + $0x8] sm:$0xff] }
 0x3ac   : >> { %2712 = vbcast.lane.b32.xlu1 %v2710_v30, 256  ;;  %2705 = vbcast.lane.b32.xlu0 %v2703_v5, 256 }
 0x3ae   : >> { %v8568_v52 = vpop.permute.xlu1 %2327  ;;  %v8570_v0 = vpop.permute.xlu0 %2313 }
 0x3b0   : >> { %2726 = vbcast.lane.b32.xlu1 %v2724_v60, 256  ;;  %2719 = vbcast.lane.b32.xlu0 %v2717_v18, 256  ;;  %v3008_v60 = vrot.slane %v2948_v45, %v8434_v4  ;;  %v3001_v18 = vrot.slane %v2948_v45, %v8437_v20 }
 0x3b2   : >> { %v8580_v43 = vpop.permute.xlu1 %2334  ;;  %v8582_v56 = vpop.permute.xlu0 %2320 }
 0x3b4   : >> { %2740 = vbcast.lane.b32.xlu1 %v2738_v17, 256  ;;  %2733 = vbcast.lane.b32.xlu0 %v2731_v11, 256  ;;  %v2949_v17 = vmul.f32 %v2283_v57, %v8444_v6  ;;  %v2284_v57 = vld [vmem:[%s8577_s0 + $0x10] sm:$0xff] }
 0x3b5   : >> { %v2950_v24 = vmul.f32 %v2284_v57, %v8463_v29 }
 0x3b6   : >> { %v8589_v9 = vpop.permute.xlu1 %2348  ;;  %v8591_v32 = vpop.permute.xlu0 %2341  ;;  %v3036_v45 = vrot.slane %v2949_v17, %v8410_v15  ;;  %v3029_v6 = vrot.slane %v2949_v17, %v8404_v44 }
 0x3b7   : >> { %v3071_v3 = vrot.slane %v2950_v24, %v8401_v47  ;;  %v3085_v29 = vrot.slane %v2950_v24, %v8404_v44 }
 0x3b8   : >> { %2754 = vbcast.lane.b32.xlu1 %v2752_v16, 256  ;;  %2747 = vbcast.lane.b32.xlu0 %v2745_v27, 256  ;;  %v3022_v16 = vrot.slane %v2949_v17, %v8413_v8  ;;  %v3015_v27 = vrot.slane %v2949_v17, %v8401_v47 }
 0x3ba   : >> { %v8595_v61 = vpop.permute.xlu1 %2362  ;;  %v8597_v25 = vpop.permute.xlu0 %2355 }
 0x3bc   : >> { %2968 = vbcast.lane.b32.xlu1 %v2966_v51, 256  ;;  %2961 = vbcast.lane.b32.xlu0 %v2959_v21, 256 }
 0x3be   : >> { %v8601_v53 = vpop.permute.xlu1 %2376  ;;  %v8603_v1 = vpop.permute.xlu0 %2369 }
 0x3c0   : >> { %2982 = vbcast.lane.b32.xlu1 %v2980_v2, 256  ;;  %2975 = vbcast.lane.b32.xlu0 %v2973_v48, 256 }
 0x3c2   : >> { %v8608_v30 = vpop.permute.xlu1 %2390  ;;  %v8610_v5 = vpop.permute.xlu0 %2383 }
 0x3c4   : >> { %2996 = vbcast.lane.b32.xlu1 %v2994_v33, 256  ;;  %2989 = vbcast.lane.b32.xlu0 %v2987_v63, 256  ;;  %v3050_v33 = vrot.slane %v2949_v17, %v8424_v35  ;;  %v3043_v63 = vrot.slane %v2949_v17, %v8427_v22 }
 0x3c6   : >> { %v8615_v11 = vpop.permute.xlu1 %2404  ;;  %v8617_v62 = vpop.permute.xlu0 %2397 }
 0x3c8   : >> { %3010 = vbcast.lane.b32.xlu1 %v3008_v60, 256  ;;  %3003 = vbcast.lane.b32.xlu0 %v3001_v18, 256 }
 0x3ca   : >> { %v8621_v51 = vpop.permute.xlu1 %2418  ;;  %v8623_v21 = vpop.permute.xlu0 %2411 }
 0x3cc   : >> { %3024 = vbcast.lane.b32.xlu1 %v3022_v16, 256  ;;  %3017 = vbcast.lane.b32.xlu0 %v3015_v27, 256  ;;  %v3064_v16 = vrot.slane %v2949_v17, %v8434_v4  ;;  %v3057_v27 = vrot.slane %v2949_v17, %v8437_v20  ;;  %v3092_v17 = vrot.slane %v2950_v24, %v8410_v15 }
 0x3ce   : >> { %v8627_v2 = vpop.permute.xlu1 %2432  ;;  %v8629_v48 = vpop.permute.xlu0 %2425 }
 0x3d0   : >> { %3038 = vbcast.lane.b32.xlu1 %v3036_v45, 256  ;;  %3031 = vbcast.lane.b32.xlu0 %v3029_v6, 256  ;;  %v3078_v6 = vrot.slane %v2950_v24, %v8413_v8 }
 0x3d2   : >> { %v8634_v60 = vpop.permute.xlu1 %2446  ;;  %v8636_v18 = vpop.permute.xlu0 %2439 }
 0x3d4   : >> { %3052 = vbcast.lane.b32.xlu1 %v3050_v33, 256  ;;  %3045 = vbcast.lane.b32.xlu0 %v3043_v63, 256 }
 0x3d6   : >> { %v8641_v41 = vpop.permute.xlu1 %2460  ;;  %v8643_v45 = vpop.permute.xlu0 %2453 }
 0x3d8   : >> { %3066 = vbcast.lane.b32.xlu1 %v3064_v16, 256  ;;  %3059 = vbcast.lane.b32.xlu0 %v3057_v27, 256  ;;  %v3106_v16 = vrot.slane %v2950_v24, %v8424_v35  ;;  %v3099_v27 = vrot.slane %v2950_v24, %v8427_v22 }
 0x3da   : >> { %v8647_v10 = vpop.permute.xlu1 %2474  ;;  %v8649_v33 = vpop.permute.xlu0 %2467 }
 0x3dc   : >> { %3080 = vbcast.lane.b32.xlu1 %v3078_v6, 256  ;;  %3073 = vbcast.lane.b32.xlu0 %v3071_v3, 256  ;;  %v3120_v3 = vrot.slane %v2950_v24, %v8434_v4  ;;  %v3113_v6 = vrot.slane %v2950_v24, %v8437_v20  ;;  %v3148_v24 = vrot.slane %v2951_v54, %v8410_v15 }
 0x3de   : >> { %v8653_v63 = vpop.permute.xlu1 %2488  ;;  %v8655_v57 = vpop.permute.xlu0 %2481 }
 0x3df   : >> { %11027 = vst [vmem:[#allocation64_spill] sm:$0xff] %v8655_v57  ;;  %v8746_v57 = vld [vmem:[%s8743_s13] sm:$0xff] }
 0x3e0   : >> { %3094 = vbcast.lane.b32.xlu1 %v3092_v17, 256  ;;  %3087 = vbcast.lane.b32.xlu0 %v3085_v29, 256  ;;  %v3134_v29 = vrot.slane %v2951_v54, %v8413_v8 }
 0x3e2   : >> { %v8660_v13 = vpop.permute.xlu1 %2502  ;;  %v8662_v26 = vpop.permute.xlu0 %2495 }
 0x3e3   : >> { %11028 = vst [vmem:[#allocation65_spill] sm:$0xff] %v8660_v13  ;;  %11029 = vst [vmem:[#allocation66_spill] sm:$0xff] %v8662_v26 }
 0x3e4   : >> { %3108 = vbcast.lane.b32.xlu1 %v3106_v16, 256  ;;  %3101 = vbcast.lane.b32.xlu0 %v3099_v27, 256  ;;  %v3414_v16 = vunpack.c.l.s4 %v7185_v23  ;;  %v3162_v23 = vrot.slane %v2951_v54, %v8424_v35 }
 0x3e6   : >> { %v8667_v37 = vpop.permute.xlu1 %2516  ;;  %v8669_v17 = vpop.permute.xlu0 %2509  ;;  %v3415_v42 = vunpack.c.0.s8 %v3414_v16 }
 0x3e7   : >> { %11030 = vst [vmem:[#allocation67_spill] sm:$0xff] %v8667_v37  ;;  %11031 = vst [vmem:[#allocation68_spill] sm:$0xff] %v8669_v17  ;;  %v2291_v17 = vld [vmem:[%s8700_s18] sm:$0xff]  ;;  %v2758_v37 = vmul.f32 %v8568_v52, %v8009_v34 }
 0x3e8   : >> { %3122 = vbcast.lane.b32.xlu1 %v3120_v3, 256  ;;  %3115 = vbcast.lane.b32.xlu0 %v3113_v6, 256  ;;  %v3412_v26 = vcombine.high %v2291_v17, %v2291_v17 }
 0x3ea   : >> { %v8673_v27 = vpop.permute.xlu1 %2530  ;;  %v8675_v28 = vpop.permute.xlu0 %2523 }
 0x3eb   : >> { %11032 = vst [vmem:[#allocation69_spill] sm:$0xff] %v8673_v27  ;;  %11033 = vst [vmem:[#allocation70_spill] sm:$0xff] %v8675_v28  ;;  %v3155_v28 = vrot.slane %v2951_v54, %v8427_v22 }
 0x3ec   : >> { %3136 = vbcast.lane.b32.xlu1 %v3134_v29, 256  ;;  %3129 = vbcast.lane.b32.xlu0 %v3127_v55, 256  ;;  %v2286_v29 = vld [vmem:[%s8577_s0 + $0x20] sm:$0xff]  ;;  %v8687_v55 = vsub.s32 %v3415_v42, %v8392_v31 }
 0x3ee   : >> { %v8679_v3 = vpop.permute.xlu1 %2544  ;;  %v8681_v6 = vpop.permute.xlu0 %2537  ;;  %v4331_v13 = vrot.slane %v8746_v57, %v8687_v55 }
 0x3ef   : >> { %11034 = vst [vmem:[#allocation71_spill] sm:$0xff] %v8679_v3  ;;  %11035 = vst [vmem:[#allocation72_spill] sm:$0xff] %v8681_v6  ;;  %v3176_v3 = vrot.slane %v2951_v54, %v8434_v4  ;;  %v2287_v6 = vld [vmem:[%s8577_s0 + $0x28] sm:$0xff] }
 0x3f0   : >> { %3150 = vbcast.lane.b32.xlu1 %v3148_v24, 256  ;;  %3143 = vbcast.lane.b32.xlu0 %v3141_v40, 256  ;;  %v3169_v24 = vrot.slane %v2951_v54, %v8437_v20  ;;  %v8696_v40 = vmul.f32 %v2286_v29, %v8501_v58 }
 0x3f2   : >> { %v8689_v27 = vpop.permute.xlu1 %2558  ;;  %v8691_v16 = vpop.permute.xlu0 %2551  ;;  %v3190_v54 = vrot.slane %v8696_v40, %v8413_v8  ;;  %v3183_v58 = vrot.slane %v8696_v40, %v8401_v47  ;;  %v3204_v29 = vrot.slane %v8696_v40, %v8410_v15 }
 0x3f3   : >> { %11036 = vst [vmem:[#allocation73_spill] sm:$0xff] %v8689_v27  ;;  %11037 = vst [vmem:[#allocation74_spill] sm:$0xff] %v8691_v16  ;;  %v2288_v27 = vld [vmem:[%s8577_s0 + $0x30] sm:$0xff]  ;;  %v2756_v16 = vmul.f32 %v8570_v0, %v8009_v34 }
 0x3f4   : >> { %3164 = vbcast.lane.b32.xlu1 %v3162_v23, 256  ;;  %3157 = vbcast.lane.b32.xlu0 %v3155_v28, 256  ;;  %v8709_v23 = vmul.f32 %v2287_v6, %v8520_v49  ;;  %v3419_v28 = vrot.slane %v2291_v17, %v8687_v55  ;;  %v3218_v49 = vrot.slane %v8696_v40, %v8424_v35  ;;  %v2824_v17 = vmul.f32 1.442695, %v2758_v37 }
 0x3f5   : >> { %v2761_v37 = vmul.f32 %v8589_v9, %v8009_v34  ;;  %v2763_v9 = vmul.f32 %v8595_v61, %v8009_v34 }
 0x3f6   : >> { %v8703_v31 = vpop.permute.xlu1 %2572  ;;  %v8705_v42 = vpop.permute.xlu0 %2565  ;;  %v8788_v0 = vrot.slane %v3419_v28, %v8687_v55  ;;  %6928 = vpow2.f32 %v2824_v17 }
 0x3f7   : >> { %11038 = vst [vmem:[#allocation75_spill] sm:$0xff] %v8703_v31  ;;  %11039 = vst [vmem:[#allocation76_spill] sm:$0xff] %v8705_v42  ;;  %v3197_v42 = vrot.slane %v8696_v40, %v8404_v44  ;;  %v3211_v31 = vrot.slane %v8696_v40, %v8427_v22  ;;  %v2834_v61 = vmul.f32 1.442695, %v2763_v9 }
 0x3f8   : >> { %3178 = vbcast.lane.b32.xlu1 %v3176_v3, 256  ;;  %3171 = vbcast.lane.b32.xlu0 %v3169_v24, 256  ;;  %v8723_v3 = vmul.f32 %v2288_v27, %v8539_v38  ;;  %v3426_v27 = vrot.slane %v3412_v26, %v8687_v55  ;;  %v4339_v26 = vcombine.high %v4331_v13, %v4331_v13 }
 0x3fa   : >> { %v8725_v6 = vpop.permute.xlu1 %2586  ;;  %v8727_v24 = vpop.permute.xlu0 %2579 }
 0x3fb   : >> { %11040 = vst [vmem:[#allocation77_spill] sm:$0xff] %v8725_v6  ;;  %11041 = vst [vmem:[#allocation78_spill] sm:$0xff] %v8727_v24  ;;  %v2289_v24 = vld [vmem:[%s8577_s0 + $0x38] sm:$0xff]  ;;  %v3427_v6 = vcombine.high %v3419_v28, %v3419_v28  ;;  %v3457_v28 = vcombine.high %v8788_v0, %v8788_v0  ;;  %s11431_s0 = sld [smem:[#allocation172_spill]] (%p2259_p13) }
 0x3fc   : >> { %3192 = vbcast.lane.b32.xlu1 %v3190_v54, 256  ;;  %3185 = vbcast.lane.b32.xlu0 %v3183_v58, 256  ;;  %v8769_v38 = vmul.f32 %v2289_v24, %v8558_v50  ;;  %v2759_v50 = vmul.f32 %v8580_v43, %v8009_v34  ;;  %v2757_v24 = vmul.f32 %v8582_v56, %v8009_v34  ;;  %v2830_v43 = vmul.f32 1.442695, %v2761_v37 }
 0x3fd   : >> { %v3428_v56 = vcombine.high %v3426_v27, %v3426_v27 }
 0x3fe   : >> { %v8762_v54 = vpop.permute.xlu1 %2600  ;;  %v8764_v58 = vpop.permute.xlu0 %2593 }
 0x3ff   : >> { %11042 = vst [vmem:[#allocation79_spill] sm:$0xff] %v8762_v54  ;;  %11043 = vst [vmem:[#allocation80_spill] sm:$0xff] %v8764_v58  ;;  %v8781_v54 = vrot.slane %v3427_v6, %v8687_v55  ;;  %v2820_v58 = vmul.f32 1.442695, %v2756_v16  ;;  %v2822_v16 = vmul.f32 1.442695, %v2757_v24  ;;  %v8834_v24 = vrot.slane %v3426_v27, %v8687_v55 }
 0x400   : >> { %3206 = vbcast.lane.b32.xlu1 %v3204_v29, 256  ;;  %3199 = vbcast.lane.b32.xlu0 %v3197_v42, 256  ;;  %v8837_v6 = vrot.slane %v4339_v26, %v8687_v55  ;;  %v11052_v27 = vrot.slane %v8696_v40, %v8437_v20 }
 0x401   : >> { %11044 = vst [vmem:[#allocation81_spill] sm:$0xff] %v8781_v54  ;;  %v3459_v52 = vcombine.high %v8781_v54, %v8781_v54  ;;  %v8822_v54 = vrot.slane %v4331_v13, %v8687_v55  ;;  %6930 = vpow2.f32 %v2820_v58  ;;  %v8853_v58 = vrot.slane %v3457_v28, %v8401_v47 }
 0x402   : >> { %v8798_v29 = vpop.permute.xlu1 %2614  ;;  %v8800_v42 = vpop.permute.xlu0 %2607  ;;  %11050 = vst [vmem:[#allocation87_spill] sm:$0xff] %v8837_v6  ;;  %v11055_v28 = vrot.slane %v8709_v23, %v8413_v8 }
 0x403   : >> { %11045 = vst [vmem:[#allocation82_spill] sm:$0xff] %v8798_v29  ;;  %11046 = vst [vmem:[#allocation83_spill] sm:$0xff] %v8800_v42  ;;  %v2826_v42 = vmul.f32 1.442695, %v2759_v50  ;;  %v2292_v29 = vld [vmem:[%s8700_s18 + $0x8] sm:$0xff]  ;;  %v8831_v50 = vrot.slane %v3428_v56, %v8687_v55  ;;  %v8840_v13 = vrot.slane %v3459_v52, %v8401_v47  ;;  %v11051_v56 = vrot.slane %v8696_v40, %v8434_v4 }
 0x404   : >> { %3220 = vbcast.lane.b32.xlu1 %v3218_v49, 256  ;;  %3213 = vbcast.lane.b32.xlu0 %v3211_v31, 256  ;;  %v2760_v31 = vmul.f32 %v8591_v32, %v8009_v34  ;;  %v4324_v32 = vcombine.high %v8746_v57, %v8746_v57  ;;  %v3468_v52 = vrot.slane %v2292_v29, %v8687_v55 }
 0x405   : >> { %11049 = vst [vmem:[#allocation86_spill] sm:$0xff] %v8831_v50  ;;  %6932 = vpow2.f32 %v2826_v42  ;;  %v2762_v57 = vmul.f32 %v8597_v25, %v8009_v34  ;;  %v3458_v25 = vcombine.high %v8834_v24, %v8834_v24 }
 0x406   : >> { %v8826_v49 = vpop.permute.xlu1 %2628  ;;  %v8828_v17 = vpop.permute.xlu0 %2621  ;;  %6934 = vpow2.f32 %v2822_v16  ;;  %v2828_v37 = vmul.f32 1.442695, %v2760_v31  ;;  %v4338_v26 = vrot.slane %v4324_v32, %v8687_v55  ;;  %v3476_v16 = vcombine.high %v3468_v52, %v3468_v52 }
 0x407   : >> { %11047 = vst [vmem:[#allocation84_spill] sm:$0xff] %v8826_v49  ;;  %11048 = vst [vmem:[#allocation85_spill] sm:$0xff] %v8828_v17  ;;  %6936 = vpow2.f32 %v2830_v43  ;;  %v11056_v43 = vrot.slane %v8709_v23, %v8401_v47  ;;  %v4371_v32 = vcombine.high %v8837_v6, %v8837_v6  ;;  %v8900_v31 = vrot.slane %v3468_v52, %v8687_v55  ;;  %v8906_v17 = vld [vmem:[%s8743_s13 + $0x8] sm:$0xff] }
 0x408   : >> { %3234 = vbcast.lane.b32.xlu1 %v11051_v56, 256  ;;  %3227 = vbcast.lane.b32.xlu0 %v11052_v27, 256  ;;  %v4369_v56 = vcombine.high %v8822_v54, %v8822_v54  ;;  %v3460_v27 = vcombine.high %v8831_v50, %v8831_v50  ;;  %6938 = vpow2.f32 %v2828_v37  ;;  %v2764_v49 = vmul.f32 %v8603_v1, %v8009_v34 }
 0x409   : >> { %11059 = vst [vmem:[#allocation92_spill] sm:$0xff] %v8900_v31  ;;  %6940 = vpow2.f32 %v2834_v61  ;;  %v11063_v52 = vrot.slane %v8709_v23, %v8410_v15  ;;  %v8923_v6 = vrot.slane %v3476_v16, %v8687_v55  ;;  %v8930_v61 = vrot.slane %v3458_v25, %v8401_v47 }
 0x40a   : >> { %v8862_v42 = vpop.permute.xlu1 %2642  ;;  %v8864_v40 = vpop.permute.xlu0 %2635  ;;  %v8903_v9 = vrot.slane %v4369_v56, %v8401_v47  ;;  %v8911_v37 = vrot.slane %v3460_v27, %v8401_v47  ;;  %v11064_v56 = vrot.slane %v8709_v23, %v8404_v44 }
 0x40b   : >> { %11053 = vst [vmem:[#allocation88_spill] sm:$0xff] %v8862_v42  ;;  %11054 = vst [vmem:[#allocation89_spill] sm:$0xff] %v8864_v40  ;;  %v3461_v40 = vcombine.high %v2292_v29, %v2292_v29  ;;  %v6929_v42 = vpop.eup %6928 }
 0x40c   : >> { %3248 = vbcast.lane.b32.xlu1 %v11055_v28, 256  ;;  %3241 = vbcast.lane.b32.xlu0 %v11056_v43, 256  ;;  %v2765_v28 = vmul.f32 %v8601_v53, %v8009_v34  ;;  %11060 = vst [vmem:[#allocation93_spill] sm:$0xff] %v8903_v9  ;;  %11061 = vst [vmem:[#allocation94_spill] sm:$0xff] %v8911_v37  ;;  %v8914_v53 = vrot.slane %v4338_v26, %v8687_v55  ;;  %v6931_v27 = vpop.eup %6930 }
 0x40d   : >> { %v3475_v1 = vrot.slane %v3461_v40, %v8687_v55  ;;  %v8927_v37 = vmul.f32 %v7170_v14, %v6929_v42  ;;  %11065 = vst [vmem:[#allocation96_spill] sm:$0xff] %v8930_v61  ;;  %v3508_v42 = vcombine.high %v8923_v6, %v8923_v6  ;;  %v3506_v40 = vcombine.high %v8900_v31, %v8900_v31  ;;  %v2293_v61 = vld [vmem:[%s8700_s18 + $0x10] sm:$0xff] }
 0x40e   : >> { %v8895_v43 = vpop.permute.xlu1 %2656  ;;  %v8897_v29 = vpop.permute.xlu0 %2649  ;;  %11062 = vst [vmem:[#allocation95_spill] sm:$0xff] %v8914_v53  ;;  %v2766_v14 = vmul.f32 %v8610_v5, %v8009_v34 }
 0x40f   : >> { %11057 = vst [vmem:[#allocation90_spill] sm:$0xff] %v8895_v43  ;;  %11058 = vst [vmem:[#allocation91_spill] sm:$0xff] %v8897_v29  ;;  %v4340_v43 = vcombine.high %v4338_v26, %v4338_v26  ;;  %v2832_v29 = vmul.f32 1.442695, %v2762_v57  ;;  %v8933_v57 = vrot.slane %v4371_v32, %v8401_v47  ;;  %v8937_v26 = vrot.slane %v8906_v17, %v8687_v55 }
 0x410   : >> { %3262 = vbcast.lane.b32.xlu1 %v11063_v52, 256  ;;  %3255 = vbcast.lane.b32.xlu0 %v11064_v56, 256  ;;  %v6933_v52 = vpop.eup %6932  ;;  %v2838_v56 = vmul.f32 1.442695, %v2765_v28  ;;  %v2836_v32 = vmul.f32 1.442695, %v2764_v49  ;;  %v11070_v49 = vrot.slane %v8709_v23, %v8427_v22  ;;  %v3477_v31 = vcombine.high %v3475_v1, %v3475_v1 }
 0x411   : >> { %11066 = vst [vmem:[#allocation97_spill] sm:$0xff] %v8933_v57  ;;  %v6935_v25 = vpop.eup %6934  ;;  %v2767_v57 = vmul.f32 %v8608_v30, %v8009_v34  ;;  %6942 = vpow2.f32 %v2832_v29  ;;  %v4370_v30 = vcombine.high %v8914_v53, %v8914_v53  ;;  %v8970_v29 = vmul.f32 %v7166_v59, %v6933_v52 }
 0x412   : >> { %v8939_v16 = vpop.permute.xlu1 %2670  ;;  %v8941_v9 = vpop.permute.xlu0 %2663  ;;  %6944 = vpow2.f32 %v2838_v56  ;;  %v8983_v53 = vmul.f32 %v7174_v39, %v6935_v25  ;;  %v8989_v59 = vrot.slane %v3506_v40, %v8401_v47  ;;  %v2840_v5 = vmul.f32 1.442695, %v2766_v14 }
 0x413   : >> { %11067 = vst [vmem:[#allocation98_spill] sm:$0xff] %v8939_v16  ;;  %11068 = vst [vmem:[#allocation99_spill] sm:$0xff] %v8941_v9  ;;  %v8954_v16 = vrot.slane %v4340_v43, %v8687_v55  ;;  %v11069_v9 = vrot.slane %v8709_v23, %v8424_v35  ;;  %v6937_v28 = vpop.eup %6936  ;;  %v8967_v43 = vmul.f32 %v7178_v36, %v6931_v27  ;;  %6946 = vpow2.f32 %v2836_v32 }
 0x414   : >> { %3269 = vbcast.lane.b32.xlu0 %v11070_v49, 256  ;;  %v8986_v36 = vrot.slane %v3508_v42, %v8401_v47  ;;  %v2842_v27 = vmul.f32 1.442695, %v2767_v57  ;;  %v6939_v56 = vpop.eup %6938  ;;  %v11074_v39 = vrot.slane %v8709_v23, %v8434_v4  ;;  %v11075_v42 = vrot.slane %v8709_v23, %v8437_v20 }
 0x415   : >> { %3276 = vbcast.lane.b32.xlu1 %v11069_v9, 256  ;;  %v8975_v9 = vrot.slane %v3475_v1, %v8687_v55  ;;  %v2769_v1 = vmul.f32 %v8615_v11, %v8009_v34  ;;  %v9002_v40 = vrot.slane %v3477_v31, %v8687_v55  ;;  %v3517_v57 = vrot.slane %v2293_v61, %v8687_v55 }
 0x416   : >> { %v8978_v49 = vpop.permute.xlu1 %2684  ;;  %v8980_v50 = vpop.permute.xlu0 %2677  ;;  %v9006_v11 = vrot.slane %v4370_v30, %v8401_v47  ;;  %v2768_v25 = vmul.f32 %v8617_v62, %v8009_v34  ;;  %v9011_v14 = vmul.f32 %v7158_v46, %v6937_v28  ;;  %v4372_v23 = vcombine.high %v8954_v16, %v8954_v16 }
 0x417   : >> { %11071 = vst [vmem:[#allocation100_spill] sm:$0xff] %v8975_v9  ;;  %11072 = vst [vmem:[#allocation101_spill] sm:$0xff] %v8978_v49  ;;  %v2771_v31 = vmul.f32 %v8621_v51, %v8009_v34  ;;  %v3509_v62 = vcombine.high %v9002_v40, %v9002_v40  ;;  %v3507_v46 = vcombine.high %v8975_v9, %v8975_v9  ;;  %6948 = vpow2.f32 %v2842_v27 }
 0x418   : >> { %11073 = vst [vmem:[#allocation102_spill] sm:$0xff] %v8980_v50  ;;  %3283 = vbcast.lane.b32.xlu0 %v11075_v42, 256  ;;  %v9029_v28 = vrot.slane %v8937_v26, %v8687_v55  ;;  %v2846_v32 = vmul.f32 1.442695, %v2769_v1  ;;  %v9032_v52 = vmul.f32 %v7162_v19, %v6939_v56  ;;  %v3510_v51 = vcombine.high %v2293_v61, %v2293_v61 }
 0x419   : >> { %3290 = vbcast.lane.b32.xlu1 %v11074_v39, 256  ;;  %v6941_v39 = vpop.eup %6940  ;;  %6950 = vpow2.f32 %v2840_v5  ;;  %v11080_v49 = vrot.slane %v8723_v3, %v8401_v47  ;;  %v3525_v1 = vcombine.high %v3517_v57, %v3517_v57  ;;  %v2844_v50 = vmul.f32 1.442695, %v2768_v25 }
 0x41a   : >> { %v9019_v42 = vpop.permute.xlu1 %2698  ;;  %v9021_v30 = vpop.permute.xlu0 %2691  ;;  %11078 = vst [vmem:[#allocation105_spill] sm:$0xff] %v9029_v28  ;;  %v9045_v19 = vmul.f32 %v7150_v12, %v6941_v39  ;;  %v9048_v61 = vrot.slane %v3517_v57, %v8687_v55  ;;  %v2850_v56 = vmul.f32 1.442695, %v2771_v31  ;;  %v9061_v25 = vrot.slane %v3507_v46, %v8401_v47 }
 0x41b   : >> { %11076 = vst [vmem:[#allocation103_spill] sm:$0xff] %v9019_v42  ;;  %11077 = vst [vmem:[#allocation104_spill] sm:$0xff] %v9021_v30  ;;  %v2770_v42 = vmul.f32 %v8623_v21, %v8009_v34  ;;  %v11079_v30 = vrot.slane %v8723_v3, %v8413_v8  ;;  %v9051_v21 = vrot.slane %v4372_v23, %v8401_v47  ;;  %v6943_v5 = vpop.eup %6942  ;;  %6952 = vpow2.f32 %v2846_v32 }
 0x41c   : >> { %3297 = vbcast.lane.b32.xlu0 %v11080_v49, 256  ;;  %11081 = vst [vmem:[#allocation106_spill] sm:$0xff] %v9048_v61  ;;  %v9058_v49 = vrot.slane %v3509_v62, %v8401_v47  ;;  %11084 = vst [vmem:[#allocation109_spill] sm:$0xff] %v9061_v25  ;;  %v4388_v12 = vcombine.high %v8937_v26, %v8937_v26  ;;  %v2773_v57 = vmul.f32 %v8627_v2, %v8009_v34  ;;  %v9070_v31 = vpop.eup %6944  ;;  %v9151_v25 = vld [vmem:[%s8743_s13 + $0x10] sm:$0xff] }
 0x41d   : >> { %3304 = vbcast.lane.b32.xlu1 %v11079_v30, 256  ;;  %v3524_v23 = vrot.slane %v3510_v51, %v8687_v55  ;;  %v4418_v39 = vcombine.high %v9029_v28, %v9029_v28  ;;  %v2848_v27 = vmul.f32 1.442695, %v2770_v42  ;;  %v2772_v62 = vmul.f32 %v8629_v48, %v8009_v34  ;;  %v9085_v51 = vpop.eup %6946 }
 0x41e   : >> { %v9053_v30 = vpop.permute.xlu1 %2712  ;;  %v9055_v9 = vpop.permute.xlu0 %2705  ;;  %v11085_v46 = vrot.slane %v8723_v3, %v8410_v15  ;;  %v11086_v26 = vrot.slane %v8723_v3, %v8404_v44  ;;  %v9081_v2 = vrot.slane %v3525_v1, %v8687_v55  ;;  %v4373_v32 = vcombine.high %v8906_v17, %v8906_v17 }
 0x41f   : >> { %11082 = vst [vmem:[#allocation107_spill] sm:$0xff] %v9053_v30  ;;  %11083 = vst [vmem:[#allocation108_spill] sm:$0xff] %v9055_v9  ;;  %6954 = vpow2.f32 %v2844_v50  ;;  %v9088_v42 = vmul.f32 %v7154_v7, %v6943_v5  ;;  %v3555_v50 = vcombine.high %v9048_v61, %v9048_v61  ;;  %v9103_v9 = vld [vmem:[%s8700_s18 + $0x18] sm:$0xff]  ;;  %v9106_v7 = vrot.slane %v4388_v12, %v8687_v55 }
 0x420   : >> { %3311 = vbcast.lane.b32.xlu0 %v11086_v26, 256  ;;  %11087 = vst [vmem:[#allocation110_spill] sm:$0xff] %v9081_v2  ;;  %6956 = vpow2.f32 %v2850_v56  ;;  %v3557_v17 = vcombine.high %v9081_v2, %v9081_v2  ;;  %v2854_v5 = vmul.f32 1.442695, %v2773_v57  ;;  %v2775_v48 = vmul.f32 %v8634_v60, %v8009_v34 }
 0x421   : >> { %3318 = vbcast.lane.b32.xlu1 %v11085_v46, 256  ;;  %11090 = vst [vmem:[#allocation113_spill] sm:$0xff] %v9106_v7  ;;  %v3526_v56 = vcombine.high %v3524_v23, %v3524_v23  ;;  %v9111_v46 = vrot.slane %v4418_v39, %v8401_v47  ;;  %6958 = vpow2.f32 %v2848_v27  ;;  %v11092_v30 = vrot.slane %v8723_v3, %v8424_v35  ;;  %v9122_v57 = vpop.eup %6948 }
 0x422   : >> { %v9094_v26 = vpop.permute.xlu1 %2726  ;;  %v9096_v1 = vpop.permute.xlu0 %2719  ;;  %v11093_v12 = vrot.slane %v8723_v3, %v8427_v22  ;;  %v4387_v60 = vrot.slane %v4373_v32, %v8687_v55  ;;  %11094 = vst [vmem:[#allocation115_spill] sm:$0xff] %v9122_v57  ;;  %v9127_v39 = vrot.slane %v3524_v23, %v8687_v55  ;;  %v9140_v32 = vrot.slane %v3557_v17, %v8401_v47 }
 0x423   : >> { %11088 = vst [vmem:[#allocation111_spill] sm:$0xff] %v9094_v26  ;;  %11089 = vst [vmem:[#allocation112_spill] sm:$0xff] %v9096_v1  ;;  %v2852_v26 = vmul.f32 1.442695, %v2772_v62  ;;  %v2774_v1 = vmul.f32 %v8636_v18, %v8009_v34  ;;  %v3566_v18 = vrot.slane %v9103_v9, %v8687_v55  ;;  %v9133_v62 = vpop.eup %6950  ;;  %v9143_v27 = vrot.slane %v3555_v50, %v8401_v47 }
 0x424   : >> { %11091 = vst [vmem:[#allocation114_spill] sm:$0xff] %v9111_v46  ;;  %3325 = vbcast.lane.b32.xlu0 %v11093_v12, 256  ;;  %11095 = vst [vmem:[#allocation116_spill] sm:$0xff] %v9127_v39  ;;  %v9148_v2 = vrot.slane %v4387_v60, %v8687_v55  ;;  %6960 = vpow2.f32 %v2854_v5  ;;  %v2858_v46 = vmul.f32 1.442695, %v2775_v48  ;;  %v2776_v50 = vmul.f32 %v8643_v45, %v8009_v34 }
 0x425   : >> { %3332 = vbcast.lane.b32.xlu1 %v11092_v30, 256  ;;  %v4420_v30 = vcombine.high %v9106_v7, %v9106_v7  ;;  %11098 = vst [vmem:[#allocation119_spill] sm:$0xff] %v9140_v32  ;;  %11099 = vst [vmem:[#allocation120_spill] sm:$0xff] %v9143_v27  ;;  %6962 = vpow2.f32 %v2852_v26  ;;  %v2856_v17 = vmul.f32 1.442695, %v2774_v1  ;;  %v11102_v23 = vrot.slane %v8723_v3, %v8434_v4  ;;  %v9166_v5 = vpop.eup %6952 }
 0x426   : >> { %v9135_v61 = vpop.permute.xlu1 %2740  ;;  %v9137_v12 = vpop.permute.xlu0 %2733  ;;  %11100 = vst [vmem:[#allocation121_spill] sm:$0xff] %v9148_v2  ;;  %v11103_v32 = vrot.slane %v8723_v3, %v8437_v20  ;;  %v4389_v48 = vcombine.high %v4387_v60, %v4387_v60  ;;  %11104 = vst [vmem:[#allocation123_spill] sm:$0xff] %v9166_v5  ;;  %v4429_v45 = vrot.slane %v9151_v25, %v8687_v55  ;;  %6964 = vpow2.f32 %v2858_v46 }
 0x427   : >> { %11096 = vst [vmem:[#allocation117_spill] sm:$0xff] %v9135_v61  ;;  %11097 = vst [vmem:[#allocation118_spill] sm:$0xff] %v9137_v12  ;;  %v2777_v61 = vmul.f32 %v8641_v41, %v8009_v34  ;;  %v9156_v12 = vrot.slane %v3526_v56, %v8687_v55  ;;  %v3574_v56 = vcombine.high %v3566_v18, %v3566_v18  ;;  %6966 = vpow2.f32 %v2856_v17 }
 0x428   : >> { %3339 = vbcast.lane.b32.xlu0 %v11103_v32, 256  ;;  %v9171_v26 = vrot.slane %v4420_v30, %v8401_v47  ;;  %v3559_v60 = vcombine.high %v9103_v9, %v9103_v9  ;;  %v4419_v30 = vcombine.high %v9148_v2, %v9148_v2  ;;  %v2860_v9 = vmul.f32 1.442695, %v2776_v50 }
 0x429   : >> { %11101 = vst [vmem:[#allocation122_spill] sm:$0xff] %v9156_v12  ;;  %3346 = vbcast.lane.b32.xlu1 %v11102_v23, 256  ;;  %v3558_v3 = vcombine.high %v9156_v12, %v9156_v12  ;;  %v9187_v41 = vpop.eup %6954  ;;  %v2862_v27 = vmul.f32 1.442695, %v2777_v61  ;;  %v2779_v32 = vmul.f32 %v8647_v10, %v8009_v34  ;;  %v11109_v2 = vrot.slane %v8769_v38, %v8413_v8 }
 0x42a   : >> { %11105 = vst [vmem:[#allocation124_spill] sm:$0xff] %v9171_v26  ;;  %v9175_v1 = vpop.permute.xlu1 %2754  ;;  %v9177_v23 = vpop.permute.xlu0 %2747  ;;  %11108 = vst [vmem:[#allocation127_spill] sm:$0xff] %v9187_v41  ;;  %v11110_v61 = vrot.slane %v8769_v38, %v8401_v47  ;;  %v9204_v46 = vrot.slane %v4389_v48, %v8687_v55  ;;  %v9209_v17 = vrot.slane %v3574_v56, %v8687_v55  ;;  %v9418_v41 = vld [vmem:[%s8700_s18 + $0x28] sm:$0xff] }
 0x42b   : >> { %11106 = vst [vmem:[#allocation125_spill] sm:$0xff] %v9175_v1  ;;  %11107 = vst [vmem:[#allocation126_spill] sm:$0xff] %v9177_v23  ;;  %v3556_v23 = vcombine.high %v9127_v39, %v9127_v39  ;;  %v9193_v26 = vpop.eup %6956  ;;  %v2778_v1 = vmul.f32 %v8649_v33, %v8009_v34  ;;  %v9212_v50 = vrot.slane %v4429_v45, %v8687_v55  ;;  %6968 = vpow2.f32 %v2862_v27 }
 0x42c   : >> { %3353 = vbcast.lane.b32.xlu0 %v11110_v61, 256  ;;  %11111 = vst [vmem:[#allocation128_spill] sm:$0xff] %v9204_v46  ;;  %11112 = vst [vmem:[#allocation129_spill] sm:$0xff] %v9209_v17  ;;  %v4437_v10 = vcombine.high %v4429_v45, %v4429_v45  ;;  %v9214_v39 = vpop.eup %6958  ;;  %v9221_v61 = vrot.slane %v3558_v3, %v8401_v47  ;;  %v9224_v48 = vrot.slane %v3566_v18, %v8687_v55  ;;  %v11119_v18 = vld [vmem:[#allocation64_spill] sm:$0xff] }
 0x42d   : >> { %3360 = vbcast.lane.b32.xlu1 %v11109_v2, 256  ;;  %11113 = vst [vmem:[#allocation130_spill] sm:$0xff] %v9212_v50  ;;  %11114 = vst [vmem:[#allocation131_spill] sm:$0xff] %v9214_v39  ;;  %v3573_v33 = vrot.slane %v3559_v60, %v8687_v55  ;;  %v9228_v56 = vrot.slane %v4419_v30, %v8401_v47  ;;  %v2781_v45 = vmul.f32 %v8653_v63, %v8009_v34 }
 0x42e   : >> { %v9216_v8 = vpop.permute.xlu1 %2968  ;;  %v9218_v2 = vpop.permute.xlu0 %2961  ;;  %11115 = vst [vmem:[#allocation132_spill] sm:$0xff] %v9221_v61  ;;  %11116 = vst [vmem:[#allocation133_spill] sm:$0xff] %v9224_v48  ;;  %v9233_v12 = vrot.slane %v3556_v23, %v8401_v47  ;;  %v4421_v39 = vcombine.high %v9204_v46, %v9204_v46  ;;  %6970 = vpow2.f32 %v2860_v9  ;;  %v2866_v3 = vmul.f32 1.442695, %v2779_v32  ;;  %v2295_v9 = vld [vmem:[%s8700_s18 + $0x20] sm:$0xff] }
 0x42f   : >> { %11117 = vst [vmem:[#allocation134_spill] sm:$0xff] %v9228_v56  ;;  %v2780_v7 = vmul.f32 %v11119_v18, %v8009_v34  ;;  %v11120_v60 = vrot.slane %v8769_v38, %v8410_v15  ;;  %v11121_v27 = vrot.slane %v8769_v38, %v8404_v44  ;;  %v9247_v23 = vpop.eup %6960  ;;  %v2864_v30 = vmul.f32 1.442695, %v2778_v1 }
 0x430   : >> { %11118 = vst [vmem:[#allocation135_spill] sm:$0xff] %v9233_v12  ;;  %11122 = vst [vmem:[#allocation64_spill] sm:$0xff] %v9247_v23  ;;  %v9254_v15 = vrot.slane %v4437_v10, %v8687_v55  ;;  %v9256_v18 = vpop.eup %6962  ;;  %v3606_v1 = vcombine.high %v9209_v17, %v9209_v17  ;;  %v3604_v32 = vcombine.high %v9224_v48, %v9224_v48  ;;  %v2870_v56 = vmul.f32 1.442695, %v2781_v45 }
 0x431   : >> { %3374 = vbcast.lane.b32.xlu1 %v11120_v60, 256  ;;  %3367 = vbcast.lane.b32.xlu0 %v11121_v27, 256  ;;  %11124 = vst [vmem:[#allocation137_spill] sm:$0xff] %v9256_v18  ;;  %v3575_v63 = vcombine.high %v3573_v33, %v3573_v33  ;;  %v9270_v10 = vrot.slane %v4421_v39, %v8401_v47  ;;  %6972 = vpow2.f32 %v2866_v3  ;;  %v2868_v27 = vmul.f32 1.442695, %v2780_v7  ;;  %v11126_v18 = vld [vmem:[#allocation65_spill] sm:$0xff] }
 0x432   : >> { %11123 = vst [vmem:[#allocation136_spill] sm:$0xff] %v9254_v15  ;;  %v9258_v60 = vpop.permute.xlu1 %2982  ;;  %v9260_v44 = vpop.permute.xlu0 %2975  ;;  %v4467_v46 = vcombine.high %v9212_v50, %v9212_v50  ;;  %v4422_v12 = vcombine.high %v9151_v25, %v9151_v25  ;;  %v2783_v17 = vmul.f32 %v11126_v18, %v8009_v34  ;;  %v11127_v48 = vrot.slane %v8769_v38, %v8424_v35  ;;  %v11130_v25 = vld [vmem:[#allocation66_spill] sm:$0xff]  ;;  %v11137_v35 = vld [vmem:[#allocation67_spill] sm:$0xff] }
 0x433   : >> { %11125 = vst [vmem:[#allocation138_spill] sm:$0xff] %v9270_v10  ;;  %v11128_v39 = vrot.slane %v8769_v38, %v8427_v22  ;;  %v4469_v45 = vcombine.high %v9254_v15, %v9254_v15  ;;  %v9286_v50 = vpop.eup %6964  ;;  %6974 = vpow2.f32 %v2864_v30  ;;  %v2782_v7 = vmul.f32 %v11130_v25, %v8009_v34 }
 0x434   : >> { %11129 = vst [vmem:[#allocation65_spill] sm:$0xff] %v9286_v50  ;;  %v3615_v3 = vrot.slane %v2295_v9, %v8687_v55  ;;  %v9293_v18 = vpop.eup %6966  ;;  %v9303_v10 = vrot.slane %v3604_v32, %v8401_v47  ;;  %v9306_v30 = vrot.slane %v3575_v63, %v8687_v55  ;;  %v9309_v25 = vrot.slane %v3573_v33, %v8687_v55  ;;  %v9312_v50 = vld [vmem:[%s8743_s13 + $0x18] sm:$0xff] }
 0x435   : >> { %3388 = vbcast.lane.b32.xlu1 %v11127_v48, 256  ;;  %3381 = vbcast.lane.b32.xlu0 %v11128_v39, 256  ;;  %11131 = vst [vmem:[#allocation66_spill] sm:$0xff] %v9293_v18  ;;  %v9300_v39 = vrot.slane %v3606_v1, %v8401_v47  ;;  %11136 = vst [vmem:[#allocation143_spill] sm:$0xff] %v9312_v50  ;;  %6976 = vpow2.f32 %v2870_v56  ;;  %v2785_v15 = vmul.f32 %v11137_v35, %v8009_v34 }
 0x436   : >> { %v9295_v48 = vpop.permute.xlu1 %2996  ;;  %v9297_v22 = vpop.permute.xlu0 %2989  ;;  %11133 = vst [vmem:[#allocation140_spill] sm:$0xff] %v9303_v10  ;;  %11134 = vst [vmem:[#allocation141_spill] sm:$0xff] %v9306_v30  ;;  %v9317_v18 = vrot.slane %v4467_v46, %v8401_v47  ;;  %v4436_v1 = vrot.slane %v4422_v12, %v8687_v55  ;;  %6978 = vpow2.f32 %v2868_v27  ;;  %v2874_v32 = vmul.f32 1.442695, %v2783_v17 }
 0x437   : >> { %11132 = vst [vmem:[#allocation139_spill] sm:$0xff] %v9300_v39  ;;  %11135 = vst [vmem:[#allocation142_spill] sm:$0xff] %v9309_v25  ;;  %v11139_v39 = vld [vmem:[#allocation68_spill] sm:$0xff]  ;;  %v11140_v33 = vrot.slane %v8769_v38, %v8434_v4  ;;  %v11141_v56 = vrot.slane %v8769_v38, %v8437_v20  ;;  %v9329_v35 = vrot.slane %v4469_v45, %v8401_v47  ;;  %v9331_v46 = vpop.eup %6968  ;;  %v2872_v10 = vmul.f32 1.442695, %v2782_v7  ;;  %v11147_v20 = vld [vmem:[#allocation70_spill] sm:$0xff] }
 0x438   : >> { %11138 = vst [vmem:[#allocation67_spill] sm:$0xff] %v9317_v18  ;;  %v2784_v63 = vmul.f32 %v11139_v39, %v8009_v34  ;;  %11143 = vst [vmem:[#allocation144_spill] sm:$0xff] %v9331_v46  ;;  %v3623_v12 = vcombine.high %v3615_v3, %v3615_v3  ;;  %v3608_v27 = vcombine.high %v2295_v9, %v2295_v9  ;;  %v9337_v39 = vpop.eup %6970  ;;  %v2878_v7 = vmul.f32 1.442695, %v2785_v15 }
 0x439   : >> { %3402 = vbcast.lane.b32.xlu1 %v11140_v33, 256  ;;  %3395 = vbcast.lane.b32.xlu0 %v11141_v56, 256  ;;  %11142 = vst [vmem:[#allocation68_spill] sm:$0xff] %v9329_v35  ;;  %v9335_v17 = vrot.slane %v9312_v50, %v8687_v55  ;;  %11144 = vst [vmem:[#allocation145_spill] sm:$0xff] %v9337_v39  ;;  %v3607_v45 = vcombine.high %v9306_v30, %v9306_v30  ;;  %v11145_v56 = vld [vmem:[#allocation69_spill] sm:$0xff]  ;;  %6980 = vpow2.f32 %v2874_v32 }
 0x43a   : >> { %v9339_v4 = vpop.permute.xlu1 %3010  ;;  %v9341_v33 = vpop.permute.xlu0 %3003  ;;  %v3605_v9 = vcombine.high %v9309_v25, %v9309_v25  ;;  %v2787_v35 = vmul.f32 %v11145_v56, %v8009_v34  ;;  %v9354_v18 = vrot.slane %v4436_v1, %v8687_v55  ;;  %v4438_v39 = vcombine.high %v4436_v1, %v4436_v1  ;;  %v11151_v1 = vld [vmem:[#allocation71_spill] sm:$0xff] }
 0x43b   : >> { %v2876_v23 = vmul.f32 1.442695, %v2784_v63  ;;  %v2786_v46 = vmul.f32 %v11147_v20, %v8009_v34  ;;  %v9360_v38 = vrot.slane %v9335_v17, %v8687_v55  ;;  %6982 = vpow2.f32 %v2872_v10  ;;  %v9368_v30 = vpop.eup %6972 }
 0x43c   : >> { %11146 = vst [vmem:[#allocation69_spill] sm:$0xff] %v9354_v18  ;;  %v9363_v25 = vrot.slane %v3623_v12, %v8687_v55  ;;  %v3622_v15 = vrot.slane %v3608_v27, %v8687_v55  ;;  %11150 = vst [vmem:[#allocation147_spill] sm:$0xff] %v9368_v30  ;;  %v2789_v32 = vmul.f32 %v11151_v1, %v8009_v34  ;;  %6984 = vpow2.f32 %v2878_v7 }
 0x43d   : >> { %11148 = vst [vmem:[#allocation70_spill] sm:$0xff] %v9360_v38  ;;  %v9377_v10 = vrot.slane %v3607_v45, %v8401_v47  ;;  %v9380_v12 = vrot.slane %v3605_v9, %v8401_v47  ;;  %v9383_v27 = vrot.slane %v3615_v3, %v8687_v55  ;;  %v9385_v56 = vpop.eup %6974  ;;  %v2882_v50 = vmul.f32 1.442695, %v2787_v35  ;;  %v11159_v35 = vld [vmem:[#allocation72_spill] sm:$0xff] }
 0x43e   : >> { %11149 = vst [vmem:[#allocation146_spill] sm:$0xff] %v9363_v25  ;;  %v9372_v63 = vpop.permute.xlu1 %3024  ;;  %v9374_v20 = vpop.permute.xlu0 %3017  ;;  %11155 = vst [vmem:[#allocation150_spill] sm:$0xff] %v9385_v56  ;;  %v9390_v30 = vrot.slane %v4438_v39, %v8687_v55  ;;  %6986 = vpow2.f32 %v2876_v23  ;;  %v2880_v45 = vmul.f32 1.442695, %v2786_v46  ;;  %v4468_v9 = vcombine.high %v9354_v18, %v9354_v18 }
 0x43f   : >> { %11152 = vst [vmem:[#allocation71_spill] sm:$0xff] %v9377_v10  ;;  %11153 = vst [vmem:[#allocation148_spill] sm:$0xff] %v9380_v12  ;;  %v9397_v12 = vld [vmem:[%s8743_s13 + $0x20] sm:$0xff]  ;;  %v9399_v56 = vpop.eup %6976  ;;  %v2788_v7 = vmul.f32 %v11159_v35, %v8009_v34  ;;  %v3655_v23 = vcombine.high %v9363_v25, %v9363_v25  ;;  %v3624_v46 = vcombine.high %v3622_v15, %v3622_v15  ;;  %v2886_v18 = vmul.f32 1.442695, %v2789_v32 }
 0x440   : >> { %11154 = vst [vmem:[#allocation149_spill] sm:$0xff] %v9383_v27  ;;  %11156 = vst [vmem:[#allocation151_spill] sm:$0xff] %v9390_v30  ;;  %v9407_v1 = vpop.eup %6978  ;;  %v3653_v35 = vcombine.high %v9383_v27, %v9383_v27  ;;  %v4486_v39 = vcombine.high %v9335_v17, %v9335_v17  ;;  %6988 = vpow2.f32 %v2882_v50  ;;  %v11161_v25 = vld [vmem:[#allocation73_spill] sm:$0xff]  ;;  %v4527_v5 = vrot.slane %v9397_v12, %v8687_v55 }
 0x441   : >> { %11157 = vst [vmem:[#allocation152_spill] sm:$0xff] %v9397_v12  ;;  %11158 = vst [vmem:[#allocation153_spill] sm:$0xff] %v9399_v56  ;;  %6990 = vpow2.f32 %v2880_v45  ;;  %v11162_v56 = vld [vmem:[#allocation74_spill] sm:$0xff]  ;;  %v9431_v27 = vrot.slane %v4468_v9, %v8401_v47  ;;  %v4470_v17 = vcombine.high %v9390_v30, %v9390_v30  ;;  %v2884_v50 = vmul.f32 1.442695, %v2788_v7 }
 0x442   : >> { %11160 = vst [vmem:[#allocation72_spill] sm:$0xff] %v9407_v1  ;;  %v9409_v10 = vpop.permute.xlu1 %3038  ;;  %v9411_v3 = vpop.permute.xlu0 %3031  ;;  %v2791_v1 = vmul.f32 %v11161_v25, %v8009_v34  ;;  %v2790_v57 = vmul.f32 %v11162_v56, %v8009_v34  ;;  %v9436_v28 = vrot.slane %v3655_v23, %v8401_v47  ;;  %v9439_v25 = vrot.slane %v3624_v46, %v8687_v55 }
 0x443   : >> { %11163 = vst [vmem:[#allocation73_spill] sm:$0xff] %v9431_v27  ;;  %v3664_v32 = vrot.slane %v9418_v41, %v8687_v55  ;;  %v9443_v45 = vpop.eup %6980  ;;  %6992 = vpow2.f32 %v2886_v18  ;;  %v9450_v12 = vrot.slane %v3653_v35, %v8401_v47  ;;  %v9453_v7 = vrot.slane %v3622_v15, %v8687_v55  ;;  %v11172_v27 = vld [vmem:[#allocation75_spill] sm:$0xff]  ;;  %v11174_v35 = vld [vmem:[#allocation76_spill] sm:$0xff] }
 0x444   : >> { %11164 = vst [vmem:[#allocation74_spill] sm:$0xff] %v9436_v28  ;;  %11165 = vst [vmem:[#allocation154_spill] sm:$0xff] %v9439_v25  ;;  %v9456_v23 = vrot.slane %v4486_v39, %v8687_v55  ;;  %v2890_v28 = vmul.f32 1.442695, %v2791_v1  ;;  %v9463_v18 = vrot.slane %v4527_v5, %v8687_v55  ;;  %v4535_v30 = vcombine.high %v4527_v5, %v4527_v5 }
 0x445   : >> { %11166 = vst [vmem:[#allocation155_spill] sm:$0xff] %v9443_v45  ;;  %11168 = vst [vmem:[#allocation157_spill] sm:$0xff] %v9450_v12  ;;  %v9458_v46 = vpop.eup %6982  ;;  %v2793_v45 = vmul.f32 %v11172_v27, %v8009_v34  ;;  %v2888_v61 = vmul.f32 1.442695, %v2790_v57  ;;  %v2792_v12 = vmul.f32 %v11174_v35, %v8009_v34  ;;  %v9468_v15 = vrot.slane %v4470_v17, %v8401_v47 }
 0x446   : >> { %v9445_v56 = vpop.permute.xlu1 %3052  ;;  %v9447_v9 = vpop.permute.xlu0 %3045  ;;  %11169 = vst [vmem:[#allocation158_spill] sm:$0xff] %v9453_v7  ;;  %11170 = vst [vmem:[#allocation159_spill] sm:$0xff] %v9456_v23  ;;  %v4516_v39 = vcombine.high %v9360_v38, %v9360_v38  ;;  %6994 = vpow2.f32 %v2884_v50  ;;  %v3656_v1 = vcombine.high %v9439_v25, %v9439_v25  ;;  %v3672_v57 = vcombine.high %v3664_v32, %v3664_v32  ;;  %v9502_v50 = vld [vmem:[%s8743_s13 + $0x28] sm:$0xff] }
 0x447   : >> { %11167 = vst [vmem:[#allocation156_spill] sm:$0xff] %v9447_v9  ;;  %11171 = vst [vmem:[#allocation160_spill] sm:$0xff] %v9458_v46  ;;  %v9472_v9 = vpop.eup %6984  ;;  %v11178_v17 = vrot.slane %v8788_v0, %v8401_v47  ;;  %v3654_v27 = vcombine.high %v9453_v7, %v9453_v7  ;;  %6996 = vpow2.f32 %v2890_v28  ;;  %v9497_v0 = vrot.slane %v4535_v30, %v8687_v55  ;;  %v11183_v28 = vld [vmem:[#allocation78_spill] sm:$0xff] }
 0x448   : >> { %11173 = vst [vmem:[#allocation75_spill] sm:$0xff] %v9463_v18  ;;  %11175 = vst [vmem:[#allocation76_spill] sm:$0xff] %v9468_v15  ;;  %v9478_v5 = vpop.eup %6986  ;;  %6998 = vpow2.f32 %v2888_v61  ;;  %v9505_v7 = vrot.slane %v4516_v39, %v8401_v47  ;;  %v9512_v25 = vrot.slane %v3656_v1, %v8401_v47  ;;  %v9515_v30 = vrot.slane %v3672_v57, %v8687_v55 }
 0x449   : >> { %11176 = vst [vmem:[#allocation161_spill] sm:$0xff] %v9472_v9  ;;  %11177 = vst [vmem:[#allocation162_spill] sm:$0xff] %v9478_v5  ;;  %v4124_v35 = vmul.f32 %v11178_v17, %v9218_v2  ;;  %v2894_v5 = vmul.f32 1.442695, %v2793_v45  ;;  %v2892_v2 = vmul.f32 1.442695, %v2792_v12  ;;  %v2794_v45 = vmul.f32 %v11183_v28, %v8009_v34 }
 0x44a   : >> { %v9484_v46 = vpop.permute.xlu1 %3066  ;;  %v9486_v38 = vpop.permute.xlu0 %3059  ;;  %v11180_v17 = vld [vmem:[#allocation77_spill] sm:$0xff]  ;;  %11182 = vst [vmem:[#allocation164_spill] sm:$0xff] %v9505_v7  ;;  %11184 = vst [vmem:[#allocation78_spill] sm:$0xff] %v9512_v25  ;;  %v4565_v61 = vcombine.high %v9463_v18, %v9463_v18  ;;  %v4126_v1 = vmul.f32 %v8853_v58, %v9260_v44  ;;  %v9535_v25 = vrot.slane %v3654_v27, %v8401_v47 }
 0x44b   : >> { %11179 = vst [vmem:[#allocation163_spill] sm:$0xff] %v9486_v38  ;;  %v2795_v9 = vmul.f32 %v11180_v17, %v8009_v34  ;;  %11181 = vst [vmem:[#allocation77_spill] sm:$0xff] %v9502_v50  ;;  %v9507_v38 = vpop.eup %6988  ;;  %v11186_v17 = vld [vmem:[#allocation81_spill] sm:$0xff]  ;;  %v9526_v7 = vadd.f32 %v8967_v43, %v4124_v35  ;;  %7000 = vpow2.f32 %v2894_v5  ;;  %v9538_v18 = vrot.slane %v3664_v32, %v8687_v55  ;;  %v11190_v32 = vld [vmem:[#allocation79_spill] sm:$0xff] }
 0x44c   : >> { %11185 = vst [vmem:[#allocation165_spill] sm:$0xff] %v9515_v30  ;;  %v9519_v12 = vpop.eup %6990  ;;  %v11187_v39 = vrot.slane %v11186_v17, %v8401_v47  ;;  %v4576_v43 = vrot.slane %v9502_v50, %v8687_v55  ;;  %7002 = vpow2.f32 %v2892_v2  ;;  %v3657_v44 = vcombine.high %v9418_v41, %v9418_v41 }
 0x44d   : >> { %11188 = vst [vmem:[#allocation81_spill] sm:$0xff] %v9538_v18  ;;  %v9544_v35 = vpop.eup %6992  ;;  %v2898_v58 = vmul.f32 1.442695, %v2795_v9  ;;  %v4518_v27 = vcombine.high %v9456_v23, %v9456_v23  ;;  %v2896_v5 = vmul.f32 1.442695, %v2794_v45  ;;  %v2797_v17 = vmul.f32 %v11190_v32, %v8009_v34 }
 0x44e   : >> { %v4125_v15 = vmul.f32 %v11187_v39, %v9216_v8  ;;  %v9530_v28 = vpop.permute.xlu1 %3080  ;;  %v9532_v57 = vpop.permute.xlu0 %3073  ;;  %11189 = vst [vmem:[#allocation166_spill] sm:$0xff] %v9544_v35  ;;  %v9555_v8 = vrot.slane %v4565_v61, %v8401_v47  ;;  %v4127_v9 = vmul.f32 %v8840_v13, %v9258_v60  ;;  %v9563_v41 = vadd.f32 %v8927_v37, %v4126_v1 }
 0x44f   : >> { %v11192_v32 = vrot.slane %v8822_v54, %v8401_v47  ;;  %v11195_v13 = vrot.slane %v8834_v24, %v8401_v47  ;;  %v4584_v1 = vcombine.high %v4576_v43, %v4576_v43  ;;  %7004 = vpow2.f32 %v2898_v58  ;;  %v11198_v24 = vld [vmem:[#allocation86_spill] sm:$0xff] }
 0x450   : >> { %11191 = vst [vmem:[#allocation79_spill] sm:$0xff] %v9555_v8  ;;  %v9558_v50 = vadd.f32 %v8983_v53, %v4125_v15  ;;  %v9573_v61 = vpop.eup %6994  ;;  %v11194_v53 = vld [vmem:[#allocation80_spill] sm:$0xff]  ;;  %v3704_v8 = vcombine.high %v9515_v30, %v9515_v30  ;;  %v3671_v54 = vrot.slane %v3657_v44, %v8687_v55  ;;  %7006 = vpow2.f32 %v2896_v5 }
 0x451   : >> { %v5036_v39 = vmul.f32 %v11192_v32, %v9526_v7  ;;  %11193 = vst [vmem:[#allocation167_spill] sm:$0xff] %v9573_v61  ;;  %v2796_v15 = vmul.f32 %v11194_v53, %v8009_v34  ;;  %v4128_v37 = vmul.f32 %v11195_v13, %v9297_v22  ;;  %v9587_v32 = vrot.slane %v4518_v27, %v8401_v47  ;;  %v9589_v23 = vpop.eup %6996 }
 0x452   : >> { %v9565_v2 = vpop.permute.xlu1 %3094  ;;  %v9567_v45 = vpop.permute.xlu0 %3087  ;;  %11197 = vst [vmem:[#allocation168_spill] sm:$0xff] %v9589_v23  ;;  %v2902_v53 = vmul.f32 1.442695, %v2797_v17  ;;  %v11199_v22 = vrot.slane %v11198_v24, %v8401_v47  ;;  %v3702_v58 = vcombine.high %v9538_v18, %v9538_v18  ;;  %v9600_v30 = vadd.f32 %v8970_v29, %v4127_v9  ;;  %v11201_v17 = vld [vmem:[#allocation93_spill] sm:$0xff]  ;;  %v11202_v24 = vld [vmem:[#allocation87_spill] sm:$0xff]  ;;  %v11204_v29 = vld [vmem:[#allocation94_spill] sm:$0xff] }
 0x453   : >> { %11196 = vst [vmem:[#allocation80_spill] sm:$0xff] %v9587_v32  ;;  %v9597_v60 = vpop.eup %6998  ;;  %v5100_v5 = vsel %vm678_vm1, %v5036_v39, 0.0  ;;  %v5038_v32 = vmul.f32 %v11201_v17, %v9563_v41  ;;  %v2900_v23 = vmul.f32 1.442695, %v2796_v15  ;;  %v4131_v9 = vmul.f32 %v11204_v29, %v9339_v4  ;;  %v11205_v18 = vld [vmem:[#allocation96_spill] sm:$0xff] }
 0x454   : >> { %v4129_v13 = vmul.f32 %v11199_v22, %v9295_v48  ;;  %11200 = vst [vmem:[#allocation86_spill] sm:$0xff] %v9597_v60  ;;  %v11203_v48 = vrot.slane %v11202_v24, %v8401_v47  ;;  %v9614_v60 = vadd.f32 %v9032_v52, %v4128_v37  ;;  %v4130_v35 = vmul.f32 %v11205_v18, %v9341_v33  ;;  %v11211_v29 = vld [vmem:[#allocation92_spill] sm:$0xff] }
 0x455   : >> { %v9621_v39 = vrot.slane %v3704_v8, %v8401_v47  ;;  %v3673_v17 = vcombine.high %v3671_v54, %v3671_v54  ;;  %v9624_v61 = vrot.slane %v4576_v43, %v8687_v55  ;;  %v9627_v24 = vrot.slane %v4584_v1, %v8687_v55  ;;  %v9629_v15 = vpop.eup %7000  ;;  %v11209_v8 = vld [vmem:[#allocation82_spill] sm:$0xff] }
 0x456   : >> { %v9602_v44 = vpop.permute.xlu1 %3108  ;;  %v9604_v27 = vpop.permute.xlu0 %3101  ;;  %v5037_v22 = vmul.f32 %v11203_v48, %v9558_v50  ;;  %7008 = vpow2.f32 %v2902_v53  ;;  %v4201_v52 = vadd.f32 %v9011_v14, %v4129_v13  ;;  %v9633_v4 = vrot.slane %v3702_v58, %v8401_v47  ;;  %v11210_v14 = vld [vmem:[#allocation97_spill] sm:$0xff] }
 0x457   : >> { %11206 = vst [vmem:[#allocation93_spill] sm:$0xff] %v9621_v39  ;;  %v4567_v33 = vcombine.high %v9497_v0, %v9497_v0  ;;  %v9637_v18 = vpop.eup %7002  ;;  %v2799_v43 = vmul.f32 %v11209_v8, %v8009_v34  ;;  %v5106_v1 = vsel %vm678_vm1, %v5038_v32, 0.0  ;;  %v5039_v13 = vmul.f32 %v11210_v14, %v9600_v30  ;;  %v11213_v39 = vld [vmem:[#allocation95_spill] sm:$0xff] }
 0x458   : >> { %5101 = vadd.xlane.f32.xlu0 %v5100_v5  ;;  %11207 = vst [vmem:[#allocation87_spill] sm:$0xff] %v9633_v4  ;;  %11208 = vst [vmem:[#allocation94_spill] sm:$0xff] %v9637_v18  ;;  %v5103_v53 = vsel %vm678_vm1, %v5037_v22, 0.0  ;;  %v4203_v58 = vadd.f32 %v9045_v19, %v4131_v9  ;;  %v9649_v48 = vadd.f32 %v9088_v42, %v4130_v35  ;;  %7010 = vpow2.f32 %v2900_v23  ;;  %v11215_v22 = vld [vmem:[#allocation83_spill] sm:$0xff]  ;;  %v11246_v42 = vld [vmem:[#allocation106_spill] sm:$0xff] }
 0x459   : >> { %v11212_v18 = vrot.slane %v11211_v29, %v8401_v47  ;;  %v11214_v32 = vrot.slane %v11213_v39, %v8401_v47  ;;  %v2798_v14 = vmul.f32 %v11215_v22, %v8009_v34  ;;  %v9662_v19 = vrot.slane %v3673_v17, %v8687_v55  ;;  %v9677_v17 = vpop.eup %7004  ;;  %v11220_v22 = vld [vmem:[#allocation100_spill] sm:$0xff] }
 0x45a   : >> { %v3123_v37 = vpop.permute.xlu1 %3122  ;;  %v9641_v5 = vpop.permute.xlu0 %3115  ;;  %v4204_v9 = vmul.f32 %v9085_v51, %v9526_v7  ;;  %v4139_v23 = vmul.f32 %v9058_v49, %v9484_v46  ;;  %v11217_v39 = vrot.slane %v8954_v16, %v8401_v47  ;;  %v5109_v51 = vsel %vm678_vm1, %v5039_v13, 0.0 }
 0x45b   : >> { %v4132_v8 = vmul.f32 %v11212_v18, %v9374_v20  ;;  %v5040_v4 = vmul.f32 %v11214_v32, %v9614_v60  ;;  %v11216_v20 = vrot.slane %v8923_v6, %v8401_v47  ;;  %v9689_v49 = vrot.slane %v3671_v54, %v8687_v55  ;;  %v9691_v7 = vpop.eup %7006 }
 0x45c   : >> { %5107 = vadd.xlane.f32.xlu0 %v5106_v1  ;;  %v5041_v18 = vmul.f32 %v11217_v39, %v4201_v52  ;;  %v4205_v1 = vmul.f32 %v9070_v31, %v9558_v50  ;;  %v4211_v46 = vmul.f32 %v9193_v26, %v4203_v58  ;;  %v2904_v50 = vmul.f32 1.442695, %v2798_v14 }
 0x45d   : >> { %5104 = vadd.xlane.f32.xlu1 %v5103_v53  ;;  %v4133_v35 = vmul.f32 %v11216_v20, %v9372_v63  ;;  %v4134_v53 = vmul.f32 %v8989_v59, %v9411_v3  ;;  %v9693_v16 = vadd.f32 %v4204_v9, %v4132_v8  ;;  %v5112_v31 = vsel %vm678_vm1, %v5040_v4, 0.0 }
 0x45e   : >> { %v9683_v6 = vpop.permute.xlu1 %3136  ;;  %v9685_v63 = vpop.permute.xlu0 %3129  ;;  %v5042_v59 = vmul.f32 %v9006_v11, %v9649_v48  ;;  %v2906_v3 = vmul.f32 1.442695, %v2799_v43  ;;  %v4206_v13 = vmul.f32 %v9133_v62, %v9563_v41  ;;  %v9703_v8 = vadd.f32 %v4211_v46, %v4139_v23  ;;  %v11219_v43 = vld [vmem:[#allocation156_spill] sm:$0xff]  ;;  %v11223_v23 = vld [vmem:[#allocation105_spill] sm:$0xff]  ;;  %v11227_v46 = vld [vmem:[#allocation127_spill] sm:$0xff] }
 0x45f   : >> { %v4213_v29 = vadd.f32 %v4205_v1, %v4133_v35  ;;  %v5115_v26 = vsel %vm678_vm1, %v5041_v18, 0.0  ;;  %v5043_v32 = vmul.f32 %v9051_v21, %v4203_v58  ;;  %v4135_v4 = vmul.f32 %v8986_v36, %v9409_v10  ;;  %v11222_v58 = vld [vmem:[#allocation132_spill] sm:$0xff]  ;;  %v11225_v18 = vld [vmem:[#allocation115_spill] sm:$0xff] }
 0x460   : >> { %5110 = vadd.xlane.f32.xlu0 %v5109_v51  ;;  %v9709_v11 = vadd.f32 %v4206_v13, %v4134_v53  ;;  %v11218_v62 = vrot.slane %v9002_v40, %v8401_v47  ;;  %v11221_v14 = vrot.slane %v11220_v22, %v8401_v47  ;;  %v9723_v21 = vpop.eup %7008  ;;  %v4147_v36 = vmul.f32 %v11222_v58, %v3123_v37  ;;  %v11226_v53 = vld [vmem:[#allocation123_spill] sm:$0xff] }
 0x461   : >> { %5113 = vadd.xlane.f32.xlu1 %v5112_v31  ;;  %v5118_v10 = vsel %vm678_vm1, %v5042_v59, 0.0  ;;  %v11224_v40 = vrot.slane %v11223_v23, %v8401_v47  ;;  %v4614_v39 = vcombine.high %v9624_v61, %v9624_v61  ;;  %v4207_v1 = vmul.f32 %v11225_v18, %v9600_v30  ;;  %v11229_v59 = vld [vmem:[#allocation147_spill] sm:$0xff]  ;;  %v11232_v23 = vld [vmem:[#allocation114_spill] sm:$0xff]  ;;  %v11234_v18 = vld [vmem:[#allocation109_spill] sm:$0xff] }
 0x462   : >> { %v4137_v41 = vmul.f32 %v11218_v62, %v9445_v56  ;;  %v4136_v20 = vmul.f32 %v11221_v14, %v11219_v43  ;;  %v9719_v35 = vpop.permute.xlu1 %3150  ;;  %v9721_v9 = vpop.permute.xlu0 %3143  ;;  %v4209_v51 = vmul.f32 %v11226_v53, %v4201_v52  ;;  %v4208_v31 = vmul.f32 %v11227_v46, %v9614_v60  ;;  %v11230_v62 = vld [vmem:[#allocation113_spill] sm:$0xff] }
 0x463   : >> { %v5044_v56 = vmul.f32 %v11224_v40, %v9693_v16  ;;  %v9739_v37 = vrot.slane %v4567_v33, %v8401_v47  ;;  %v4227_v13 = vmul.f32 %v11229_v59, %v9703_v8  ;;  %v11231_v43 = vrot.slane %v11230_v62, %v8401_v47  ;;  %v9749_v52 = vpop.eup %7010 }
 0x464   : >> { %5116 = vadd.xlane.f32.xlu0 %v5115_v26  ;;  %v5121_v26 = vsel %vm678_vm1, %v5043_v32, 0.0  ;;  %v4215_v14 = vadd.f32 %v4207_v1, %v4135_v4  ;;  %v4217_v60 = vadd.f32 %v4209_v51, %v4137_v41  ;;  %v9751_v58 = vadd.f32 %v4208_v31, %v4136_v20  ;;  %v11233_v32 = vld [vmem:[#allocation163_spill] sm:$0xff]  ;;  %v11235_v41 = vld [vmem:[#allocation84_spill] sm:$0xff]  ;;  %v11250_v1 = vld [vmem:[#allocation137_spill] sm:$0xff] }
 0x465   : >> { %5119 = vadd.xlane.f32.xlu1 %v5118_v10  ;;  %11228 = vst [vmem:[#allocation96_spill] sm:$0xff] %v9739_v37  ;;  %v5045_v22 = vmul.f32 %v11231_v43, %v4213_v29  ;;  %v5046_v40 = vmul.f32 %v11232_v23, %v9709_v11  ;;  %v4138_v53 = vmul.f32 %v11234_v18, %v11233_v32  ;;  %v5124_v59 = vsel %vm678_vm1, %v5044_v56, 0.0  ;;  %v11236_v51 = vld [vmem:[#allocation143_spill] sm:$0xff]  ;;  %v11242_v18 = vld [vmem:[#allocation144_spill] sm:$0xff] }
 0x466   : >> { %v3165_v33 = vpop.permute.xlu1 %3164  ;;  %v9753_v10 = vpop.permute.xlu0 %3157  ;;  %v9759_v46 = vadd.f32 %v4227_v13, %v4147_v36  ;;  %7012 = vpow2.f32 %v2906_v3  ;;  %v2801_v20 = vmul.f32 %v11235_v41, %v8009_v34  ;;  %v11237_v31 = vcombine.high %v11236_v51, %v11236_v51  ;;  %v11238_v13 = vld [vmem:[#allocation85_spill] sm:$0xff]  ;;  %v11240_v3 = vld [vmem:[#allocation122_spill] sm:$0xff] }
 0x467   : >> { %v2800_v56 = vmul.f32 %v11238_v13, %v8009_v34  ;;  %v11241_v43 = vrot.slane %v11240_v3, %v8401_v47  ;;  %v5127_v32 = vsel %vm678_vm1, %v5045_v22, 0.0  ;;  %v5130_v51 = vsel %vm678_vm1, %v5046_v40, 0.0  ;;  %v11244_v13 = vld [vmem:[#allocation121_spill] sm:$0xff]  ;;  %v11248_v22 = vld [vmem:[#allocation71_spill] sm:$0xff]  ;;  %v11249_v40 = vld [vmem:[#allocation64_spill] sm:$0xff] }
 0x468   : >> { %5122 = vadd.xlane.f32.xlu0 %v5121_v26  ;;  %v9772_v36 = vrot.slane %v11237_v31, %v8687_v55  ;;  %v11239_v26 = vld [vmem:[#allocation131_spill] sm:$0xff]  ;;  %v11243_v31 = vld [vmem:[#allocation124_spill] sm:$0xff]  ;;  %v11245_v54 = vrot.slane %v11244_v13, %v8401_v47  ;;  %7014 = vpow2.f32 %v2904_v50  ;;  %v4220_v37 = vmul.f32 %v11250_v1, %v9693_v16 }
 0x469   : >> { %5125 = vadd.xlane.f32.xlu1 %v5124_v59  ;;  %v4210_v62 = vmul.f32 %v11239_v26, %v9649_v48  ;;  %v4145_v23 = vmul.f32 %v11241_v43, %v9602_v44  ;;  %v4225_v59 = vmul.f32 %v11242_v18, %v4217_v60  ;;  %v5047_v4 = vmul.f32 %v11243_v31, %v4215_v14  ;;  %v11256_v13 = vld [vmem:[#allocation128_spill] sm:$0xff] }
 0x46a   : >> { %v3179_v41 = vpop.permute.xlu1 %3178  ;;  %v3172_v30 = vpop.permute.xlu0 %3171  ;;  %v5048_v48 = vmul.f32 %v11245_v54, %v9751_v58  ;;  %v11247_v44 = vrot.slane %v11246_v42, %v8401_v47  ;;  %v4243_v18 = vmul.f32 %v9507_v38, %v9759_v46  ;;  %v4221_v31 = vmul.f32 %v11249_v40, %v4213_v29  ;;  %v11253_v38 = vld [vmem:[#allocation135_spill] sm:$0xff]  ;;  %v11255_v29 = vld [vmem:[#allocation120_spill] sm:$0xff] }
 0x46b   : >> { %v4218_v26 = vadd.f32 %v4210_v62, %v4138_v53  ;;  %v4155_v43 = vmul.f32 %v11248_v22, %v3179_v41  ;;  %v9801_v54 = vrot.slane %v4614_v39, %v8401_v47  ;;  %v11251_v53 = vld [vmem:[#allocation110_spill] sm:$0xff]  ;;  %v9807_v62 = vadd.f32 %v4225_v59, %v4145_v23  ;;  %v11259_v22 = vld [vmem:[#allocation141_spill] sm:$0xff] }
 0x46c   : >> { %v4140_v3 = vmul.f32 %v11247_v44, %v9532_v57  ;;  %5128 = vadd.xlane.f32.xlu0 %v5127_v32  ;;  %v11252_v57 = vrot.slane %v11251_v53, %v8401_v47  ;;  %v4146_v32 = vmul.f32 %v11253_v38, %v9641_v5  ;;  %v4142_v41 = vmul.f32 %v11255_v29, %v9567_v45  ;;  %v11258_v5 = vld [vmem:[#allocation150_spill] sm:$0xff]  ;;  %v11262_v53 = vld [vmem:[#allocation65_spill] sm:$0xff] }
 0x46d   : >> { %5131 = vadd.xlane.f32.xlu1 %v5130_v51  ;;  %v9811_v50 = vadd.f32 %v4243_v18, %v4155_v43  ;;  %v5133_v39 = vsel %vm678_vm1, %v5047_v4, 0.0  ;;  %v5136_v51 = vsel %vm678_vm1, %v5048_v48, 0.0  ;;  %v4226_v44 = vmul.f32 %v11258_v5, %v4218_v26  ;;  %v11261_v18 = vld [vmem:[#allocation134_spill] sm:$0xff] }
 0x46e   : >> { %v4141_v42 = vmul.f32 %v11252_v57, %v9530_v28  ;;  %v9815_v16 = vpop.permute.xlu1 %3192  ;;  %v9817_v1 = vpop.permute.xlu0 %3185  ;;  %v11257_v28 = vrot.slane %v11256_v13, %v8401_v47  ;;  %v4228_v59 = vadd.f32 %v4220_v37, %v4140_v3  ;;  %v11260_v43 = vrot.slane %v11259_v22, %v8401_v47  ;;  %v11263_v4 = vld [vmem:[#allocation66_spill] sm:$0xff]  ;;  %v11264_v3 = vld [vmem:[#allocation119_spill] sm:$0xff]  ;;  %v11290_v37 = vld [vmem:[#allocation69_spill] sm:$0xff] }
 0x46f   : >> { %11254 = vst [vmem:[#allocation82_spill] sm:$0xff] %v9811_v50  ;;  %v5050_v40 = vmul.f32 %v11261_v18, %v4218_v26  ;;  %v4223_v57 = vmul.f32 %v11262_v53, %v4215_v14  ;;  %v4222_v48 = vmul.f32 %v11263_v4, %v9709_v11  ;;  %v4143_v29 = vmul.f32 %v11264_v3, %v9565_v2  ;;  %v11265_v26 = vld [vmem:[#allocation161_spill] sm:$0xff]  ;;  %v9843_v14 = vld [vmem:[%s8700_s18 + $0x30] sm:$0xff]  ;;  %v11271_v53 = vld [vmem:[#allocation130_spill] sm:$0xff] }
 0x470   : >> { %v5049_v23 = vmul.f32 %v11257_v28, %v4217_v60  ;;  %v4153_v45 = vmul.f32 %v11260_v43, %v3165_v33  ;;  %5134 = vadd.xlane.f32.xlu0 %v5133_v39  ;;  %v4229_v60 = vadd.f32 %v4221_v31, %v4141_v42  ;;  %v9838_v33 = vadd.f32 %v4226_v44, %v4146_v32  ;;  %v9845_v13 = vpop.eup %7012  ;;  %v11268_v32 = vld [vmem:[#allocation138_spill] sm:$0xff]  ;;  %v11270_v43 = vld [vmem:[#allocation148_spill] sm:$0xff] }
 0x471   : >> { %5137 = vadd.xlane.f32.xlu1 %v5136_v51  ;;  %v4241_v39 = vmul.f32 %v11265_v26, %v9807_v62  ;;  %v9847_v11 = vadd.f32 %v4222_v48, %v4142_v41  ;;  %v11266_v51 = vld [vmem:[#allocation116_spill] sm:$0xff]  ;;  %v5051_v44 = vmul.f32 %v11268_v32, %v9703_v8  ;;  %v4154_v18 = vmul.f32 %v11270_v43, %v3172_v30 }
 0x472   : >> { %v11267_v28 = vrot.slane %v11266_v51, %v8401_v47  ;;  %v9853_v31 = vpop.permute.xlu1 %3206  ;;  %v9855_v42 = vpop.permute.xlu0 %3199  ;;  %v5139_v2 = vsel %vm678_vm1, %v5049_v23, 0.0  ;;  %v5142_v41 = vsel %vm678_vm1, %v5050_v40, 0.0  ;;  %v11272_v4 = vrot.slane %v11271_v53, %v8401_v47  ;;  %v11273_v3 = vld [vmem:[#allocation88_spill] sm:$0xff]  ;;  %v11274_v23 = vld [vmem:[#allocation145_spill] sm:$0xff] }
 0x473   : >> { %v9860_v22 = vadd.f32 %v4241_v39, %v4153_v45  ;;  %v9867_v48 = vmul.f32 1.442695, %v2801_v20  ;;  %v2803_v26 = vmul.f32 %v11273_v3, %v8009_v34  ;;  %v4224_v51 = vmul.f32 %v11274_v23, %v9751_v58  ;;  %v11275_v20 = vld [vmem:[#allocation136_spill] sm:$0xff]  ;;  %v11277_v58 = vld [vmem:[#allocation133_spill] sm:$0xff]  ;;  %v11281_v3 = vld [vmem:[#allocation154_spill] sm:$0xff] }
 0x474   : >> { %v4144_v5 = vmul.f32 %v11267_v28, %v9604_v27  ;;  %5140 = vadd.xlane.f32.xlu0 %v5139_v2  ;;  %v5052_v27 = vmul.f32 %v11272_v4, %v4228_v59  ;;  %v9875_v8 = vrot.slane %v9843_v14, %v8687_v55  ;;  %v9877_v30 = vmul.f32 1.442695, %v2800_v56  ;;  %v9886_v2 = vpop.eup %7014 }
 0x475   : >> { %11269 = vst [vmem:[#allocation97_spill] sm:$0xff] %v9860_v22  ;;  %5143 = vadd.xlane.f32.xlu1 %v5142_v41  ;;  %v9879_v45 = vadd.f32 %v4223_v57, %v4143_v29  ;;  %v4242_v40 = vmul.f32 %v9519_v12, %v9838_v33  ;;  %v11276_v39 = vrot.slane %v11275_v20, %v8401_v47  ;;  %v5145_v57 = vsel %vm678_vm1, %v5051_v44, 0.0  ;;  %v11279_v12 = vld [vmem:[#allocation67_spill] sm:$0xff]  ;;  %v11284_v44 = vld [vmem:[#allocation72_spill] sm:$0xff] }
 0x476   : >> { %v9888_v32 = vadd.f32 %v4224_v51, %v4144_v5  ;;  %v11278_v43 = vrot.slane %v11277_v58, %v8401_v47  ;;  %v3221_v56 = vpop.permute.xlu1 %3220  ;;  %v9894_v53 = vpop.permute.xlu0 %3213  ;;  %v5054_v29 = vmul.f32 %v11279_v12, %v9847_v11  ;;  %v11282_v23 = vrot.slane %v11281_v3, %v8401_v47  ;;  %v11288_v3 = vld [vmem:[#allocation129_spill] sm:$0xff] }
 0x477   : >> { %v5053_v28 = vmul.f32 %v11276_v39, %v4229_v60  ;;  %v9899_v4 = vadd.f32 %v4242_v40, %v4154_v18  ;;  %v4257_v51 = vmul.f32 %v9629_v15, %v9860_v22  ;;  %v2914_v20 = vmul.f32 1.442695, %v2803_v26  ;;  %v11283_v39 = vld [vmem:[#allocation89_spill] sm:$0xff]  ;;  %v11287_v26 = vld [vmem:[#allocation68_spill] sm:$0xff] }
 0x478   : >> { %v4148_v41 = vmul.f32 %v11278_v43, %v9685_v63  ;;  %v4161_v5 = vmul.f32 %v11282_v23, %v3221_v56  ;;  %5146 = vadd.xlane.f32.xlu0 %v5145_v57  ;;  %v5148_v63 = vsel %vm678_vm1, %v5052_v27, 0.0  ;;  %v2802_v58 = vmul.f32 %v11283_v39, %v8009_v34  ;;  %v11286_v56 = vld [vmem:[#allocation90_spill] sm:$0xff] }
 0x479   : >> { %11280 = vst [vmem:[#allocation92_spill] sm:$0xff] %v9899_v4  ;;  %v4236_v43 = vmul.f32 %v11284_v44, %v4228_v59  ;;  %5149 = vadd.xlane.f32.xlu1 %v5148_v63  ;;  %v11285_v18 = vcombine.high %v9627_v24, %v9627_v24  ;;  %v2805_v12 = vmul.f32 %v11286_v56, %v8009_v34  ;;  %v5151_v27 = vsel %vm678_vm1, %v5053_v28, 0.0  ;;  %v11292_v28 = vld [vmem:[#allocation78_spill] sm:$0xff] }
 0x47a   : >> { %v9918_v15 = vadd.f32 %v4257_v51, %v4161_v5  ;;  %v5055_v57 = vmul.f32 %v11287_v26, %v9879_v45  ;;  %v11289_v59 = vrot.slane %v11288_v3, %v8401_v47  ;;  %v3235_v39 = vpop.permute.xlu1 %3234  ;;  %v3228_v44 = vpop.permute.xlu0 %3227  ;;  %v11291_v5 = vrot.slane %v11290_v37, %v8401_v47  ;;  %v11294_v3 = vld [vmem:[#allocation153_spill] sm:$0xff] }
 0x47b   : >> { %v9914_v40 = vrot.slane %v11285_v18, %v8401_v47  ;;  %v4244_v63 = vadd.f32 %v4236_v43, %v4148_v41  ;;  %v5154_v18 = vsel %vm678_vm1, %v5054_v29, 0.0  ;;  %v4163_v56 = vmul.f32 %v11292_v28, %v3235_v39  ;;  %v11293_v29 = vld [vmem:[#allocation91_spill] sm:$0xff]  ;;  %v11296_v39 = vld [vmem:[#allocation149_spill] sm:$0xff] }
 0x47c   : >> { %v4149_v23 = vmul.f32 %v11289_v59, %v9683_v6  ;;  %v5056_v51 = vmul.f32 %v11291_v5, %v9888_v32  ;;  %v4259_v26 = vmul.f32 %v9677_v17, %v9811_v50  ;;  %v4162_v38 = vmul.f32 %v9535_v25, %v3228_v44  ;;  %5152 = vadd.xlane.f32.xlu0 %v5151_v27  ;;  %v9956_v27 = vld [vmem:[%s8743_s13 + $0x30] sm:$0xff] }
 0x47d   : >> { %v4258_v6 = vmul.f32 %v9691_v7, %v9899_v4  ;;  %v2912_v41 = vmul.f32 1.442695, %v2802_v58  ;;  %v2804_v43 = vmul.f32 %v11293_v29, %v8009_v34  ;;  %v4237_v59 = vmul.f32 %v11294_v3, %v4229_v60  ;;  %5155 = vadd.xlane.f32.xlu1 %v5154_v18  ;;  %v11300_v29 = vld [vmem:[#allocation151_spill] sm:$0xff] }
 0x47e   : >> { %v9943_v37 = vrot.slane %v9772_v36, %v8687_v55  ;;  %v11297_v17 = vrot.slane %v11296_v39, %v8401_v47  ;;  %v9949_v44 = vadd.f32 %v4259_v26, %v4163_v56  ;;  %v3721_v58 = vcombine.high %v9875_v8, %v9875_v8  ;;  %v3249_v18 = vpop.permute.xlu1 %3248  ;;  %v3242_v5 = vpop.permute.xlu0 %3241  ;;  %v11302_v26 = vld [vmem:[#allocation167_spill] sm:$0xff]  ;;  %v11303_v39 = vld [vmem:[#allocation73_spill] sm:$0xff] }
 0x47f   : >> { %v9951_v7 = vadd.f32 %v4258_v6, %v4162_v38  ;;  %7016 = vpow2.f32 %v2914_v20  ;;  %v4245_v60 = vadd.f32 %v4237_v59, %v4149_v23  ;;  %v5157_v28 = vsel %vm678_vm1, %v5055_v57, 0.0  ;;  %v11304_v23 = vld [vmem:[#allocation146_spill] sm:$0xff] }
 0x480   : >> { %11295 = vst [vmem:[#allocation95_spill] sm:$0xff] %v9943_v37  ;;  %v4156_v25 = vmul.f32 %v11297_v17, %v9817_v1  ;;  %11298 = vst [vmem:[#allocation83_spill] sm:$0xff] %v9949_v44  ;;  %v11301_v3 = vrot.slane %v11300_v29, %v8401_v47  ;;  %v2918_v56 = vmul.f32 1.442695, %v2805_v12  ;;  %v4252_v38 = vmul.f32 %v11302_v26, %v4244_v63 }
 0x481   : >> { %11299 = vst [vmem:[#allocation156_spill] sm:$0xff] %v9951_v7  ;;  %5158 = vadd.xlane.f32.xlu0 %v5157_v28  ;;  %v5160_v6 = vsel %vm678_vm1, %v5056_v51, 0.0  ;;  %v5058_v17 = vmul.f32 %v11303_v39, %v9838_v33  ;;  %7018 = vpow2.f32 %v2912_v41  ;;  %v2916_v20 = vmul.f32 1.442695, %v2804_v43  ;;  %v11308_v43 = vld [vmem:[#allocation152_spill] sm:$0xff] }
 0x482   : >> { %v5057_v1 = vmul.f32 %v11301_v3, %v9807_v62  ;;  %v11305_v57 = vrot.slane %v11304_v23, %v8401_v47  ;;  %5161 = vadd.xlane.f32.xlu1 %v5160_v6  ;;  %v4625_v62 = vrot.slane %v9956_v27, %v8687_v55  ;;  %v4260_v12 = vadd.f32 %v4252_v38, %v4156_v25  ;;  %v11309_v3 = vld [vmem:[#allocation166_spill] sm:$0xff]  ;;  %v9984_v26 = vpop.permute.xlu1 %3262  ;;  %v9986_v6 = vpop.permute.xlu0 %3255  ;;  %v11310_v38 = vld [vmem:[#allocation76_spill] sm:$0xff] }
 0x483   : >> { %v11306_v28 = vcombine.high %v9662_v19, %v9662_v19  ;;  %v11307_v33 = vcombine.high %v9689_v49, %v9689_v49  ;;  %v4520_v29 = vcombine.high %v11308_v43, %v11308_v43  ;;  %v5059_v39 = vmul.f32 %v11310_v38, %v9759_v46 }
 0x484   : >> { %v4157_v59 = vmul.f32 %v11305_v57, %v9815_v16  ;;  %v4253_v16 = vmul.f32 %v11309_v3, %v4245_v60  ;;  %v5163_v25 = vsel %vm678_vm1, %v5057_v1, 0.0  ;;  %v9992_v23 = vrot.slane %v3721_v58, %v8687_v55  ;;  %v11311_v57 = vld [vmem:[#allocation81_spill] sm:$0xff]  ;;  %v11313_v3 = vld [vmem:[#allocation70_spill] sm:$0xff] }
 0x485   : >> { %v3995_v51 = vrot.slane %v11306_v28, %v8401_v47  ;;  %v3991_v41 = vrot.slane %v11307_v33, %v8401_v47  ;;  %7020 = vpow2.f32 %v2918_v56  ;;  %v11312_v28 = vrot.slane %v11311_v57, %v8401_v47  ;;  %5164 = vadd.xlane.f32.xlu0 %v5163_v25 }
 0x486   : >> { %v5166_v43 = vsel %vm678_vm1, %v5058_v17, 0.0  ;;  %v11314_v50 = vrot.slane %v11313_v3, %v8401_v47  ;;  %7022 = vpow2.f32 %v2916_v20  ;;  %v4261_v1 = vadd.f32 %v4253_v16, %v4157_v59  ;;  %v10018_v59 = vpop.permute.xlu0 %3269 }
 0x487   : >> { %v4164_v33 = vmul.f32 %v11312_v28, %v3242_v5  ;;  %5167 = vadd.xlane.f32.xlu1 %v5166_v43  ;;  %v10003_v46 = vrot.slane %v9875_v8, %v8687_v55  ;;  %v4633_v58 = vcombine.high %v4625_v62, %v4625_v62  ;;  %7024 = vpow2.f32 %v9867_v48  ;;  %v11315_v5 = vld [vmem:[#allocation159_spill] sm:$0xff]  ;;  %v10016_v8 = vpop.permute.xlu1 %3276 }
 0x488   : >> { %v5060_v4 = vmul.f32 %v11314_v50, %v4244_v63  ;;  %v4268_v56 = vmul.f32 %v9749_v52, %v4260_v12  ;;  %v11316_v25 = vrot.slane %v11315_v5, %v8401_v47  ;;  %7026 = vpow2.f32 %v9877_v30  ;;  %v11317_v50 = vld [vmem:[#allocation165_spill] sm:$0xff]  ;;  %v11319_v52 = vld [vmem:[#allocation75_spill] sm:$0xff] }
 0x489   : >> { %v11318_v63 = vrot.slane %v11317_v50, %v8401_v47  ;;  %v5169_v48 = vsel %vm678_vm1, %v5059_v39, 0.0  ;;  %v11320_v16 = vrot.slane %v11319_v52, %v8401_v47  ;;  %v4003_v30 = vrot.slane %v9992_v23, %v8401_v47  ;;  %v7017_v43 = vpop.eup %7016  ;;  %v11322_v5 = vld [vmem:[#allocation107_spill] sm:$0xff]  ;;  %v10047_v50 = vld [vmem:[%s8700_s18 + $0x38] sm:$0xff] }
 0x48a   : >> { %v5061_v17 = vmul.f32 %v11316_v25, %v4245_v60  ;;  %v4276_v60 = vadd.f32 %v4268_v56, %v4164_v33  ;;  %5170 = vadd.xlane.f32.xlu0 %v5169_v48  ;;  %v5172_v28 = vsel %vm678_vm1, %v5060_v4, 0.0  ;;  %v4269_v3 = vmul.f32 %v9723_v21, %v4261_v1  ;;  %v11321_v4 = vld [vmem:[#allocation99_spill] sm:$0xff] }
 0x48b   : >> { %v4165_v20 = vmul.f32 %v11318_v63, %v3249_v18  ;;  %v5068_v57 = vmul.f32 %v11320_v16, %v4260_v12  ;;  %v10028_v18 = vrot.slane %v4520_v29, %v8687_v55  ;;  %5173 = vadd.xlane.f32.xlu1 %v5172_v28  ;;  %v3999_v39 = vrot.slane %v10003_v46, %v8401_v47  ;;  %v7019_v63 = vpop.eup %7018 }
 0x48c   : >> { %v10034_v12 = vrot.slane %v4625_v62, %v8687_v55  ;;  %v10037_v33 = vrot.slane %v4633_v58, %v8687_v55  ;;  %v2806_v56 = vmul.f32 %v11321_v4, %v8009_v34  ;;  %v2813_v29 = vmul.f32 %v11322_v5, %v8009_v34  ;;  %v3291_v62 = vpop.permute.xlu1 %3290  ;;  %v3284_v58 = vpop.permute.xlu0 %3283 }
 0x48d   : >> { %v5175_v25 = vsel %vm678_vm1, %v5061_v17, 0.0  ;;  %v3706_v21 = vcombine.high %v9843_v14, %v9843_v14  ;;  %v4277_v48 = vadd.f32 %v4269_v3, %v4165_v20  ;;  %v4275_v52 = vmul.f32 %v7017_v43, %v9949_v44  ;;  %v11325_v20 = vld [vmem:[#allocation108_spill] sm:$0xff] }
 0x48e   : >> { %v5196_v16 = vsel %vm678_vm1, %v5068_v57, 0.0  ;;  %v11323_v28 = vrot.slane %v9497_v0, %v8401_v47  ;;  %v4171_v5 = vmul.f32 %v3995_v51, %v3291_v62  ;;  %v4170_v38 = vmul.f32 %v3991_v41, %v3284_v58  ;;  %5176 = vadd.xlane.f32.xlu0 %v5175_v25  ;;  %v11326_v43 = vld [vmem:[#allocation140_spill] sm:$0xff] }
 0x48f   : >> { %v4274_v17 = vmul.f32 %v7019_v63, %v9951_v7  ;;  %v11324_v14 = vrot.slane %v9624_v61, %v8401_v47  ;;  %v2812_v3 = vmul.f32 %v11325_v20, %v8009_v34  ;;  %5197 = vadd.xlane.f32.xlu1 %v5196_v16  ;;  %v4911_v57 = vrot.slane %v10034_v12, %v8401_v47  ;;  %v7021_v41 = vpop.eup %7020  ;;  %v11329_v58 = vld [vmem:[#allocation160_spill] sm:$0xff] }
 0x490   : >> { %v5069_v4 = vmul.f32 %v11323_v28, %v4261_v1  ;;  %v4915_v0 = vrot.slane %v10037_v33, %v8401_v47  ;;  %v3762_v51 = vrot.slane %v10047_v50, %v8687_v55  ;;  %v2934_v1 = vmul.f32 1.442695, %v2813_v29  ;;  %v7023_v62 = vpop.eup %7022  ;;  %v3305_v28 = vpop.permute.xlu1 %3304 }
 0x491   : >> { %v5076_v22 = vmul.f32 %v11324_v14, %v4276_v60  ;;  %v4150_v25 = vmul.f32 %v11326_v43, %v9721_v9  ;;  %v10068_v61 = vadd.f32 %v4275_v52, %v4171_v5  ;;  %v10070_v63 = vadd.f32 %v4274_v17, %v4170_v38  ;;  %v3298_v20 = vpop.permute.xlu0 %3297  ;;  %v10078_v37 = vpop.eup %7024  ;;  %v10082_v17 = vld [vmem:[%s8743_s13 + $0x38] sm:$0xff] }
 0x492   : >> { %v4238_v16 = vmul.f32 %v11329_v58, %v9847_v11  ;;  %v4285_v14 = vmul.f32 %v7021_v41, %v4277_v48  ;;  %v5199_v44 = vsel %vm678_vm1, %v5069_v4, 0.0  ;;  %v11330_v29 = vrot.slane %v9627_v24, %v8401_v47  ;;  %v10084_v11 = vpop.eup %7026 }
 0x493   : >> { %11327 = vst [vmem:[#allocation100_spill] sm:$0xff] %v10068_v61  ;;  %11328 = vst [vmem:[#allocation132_spill] sm:$0xff] %v10070_v63  ;;  %v4173_v9 = vmul.f32 %v4003_v30, %v3305_v28  ;;  %v4172_v52 = vmul.f32 %v3999_v39, %v3298_v20  ;;  %v4284_v5 = vmul.f32 %v7023_v62, %v4276_v60  ;;  %5200 = vadd.xlane.f32.xlu0 %v5199_v44 }
 0x494   : >> { %v5077_v7 = vmul.f32 %v11330_v29, %v4277_v48  ;;  %v5220_v38 = vsel %vm678_vm1, %v5076_v22, 0.0  ;;  %v2932_v41 = vmul.f32 1.442695, %v2812_v3  ;;  %v3753_v4 = vcombine.high %v9992_v23, %v9992_v23  ;;  %v10101_v3 = vpop.permute.xlu1 %3318  ;;  %v11334_v29 = vld [vmem:[#allocation98_spill] sm:$0xff] }
 0x495   : >> { %5221 = vadd.xlane.f32.xlu1 %v5220_v38  ;;  %v3720_v24 = vrot.slane %v3706_v21, %v8687_v55  ;;  %v10091_v48 = vrot.slane %v10028_v18, %v8687_v55  ;;  %v10093_v30 = vadd.f32 %v4238_v16, %v4150_v25  ;;  %v10095_v44 = vadd.f32 %v4285_v14, %v4173_v9  ;;  %v3312_v43 = vpop.permute.xlu0 %3311  ;;  %v11331_v25 = vld [vmem:[#allocation157_spill] sm:$0xff]  ;;  %v11333_v14 = vld [vmem:[#allocation139_spill] sm:$0xff] }
 0x496   : >> { %v10097_v22 = vadd.f32 %v4284_v5, %v4172_v52  ;;  %v3751_v60 = vcombine.high %v10003_v46, %v10003_v46  ;;  %v2920_v39 = vmul.f32 1.442695, %v2806_v56  ;;  %v5223_v23 = vsel %vm678_vm1, %v5077_v7, 0.0  ;;  %v11332_v46 = vld [vmem:[#allocation112_spill] sm:$0xff] }
 0x497   : >> { %v3770_v21 = vcombine.high %v3762_v51, %v3762_v51  ;;  %v4674_v62 = vrot.slane %v10082_v17, %v8687_v55  ;;  %7028 = vpow2.f32 %v2934_v1  ;;  %v4158_v58 = vmul.f32 %v11331_v25, %v9855_v42  ;;  %5224 = vadd.xlane.f32.xlu0 %v5223_v23  ;;  %v11335_v1 = vld [vmem:[#allocation86_spill] sm:$0xff]  ;;  %v11338_v23 = vld [vmem:[#allocation77_spill] sm:$0xff] }
 0x498   : >> { %v5084_v16 = vmul.f32 %v4911_v57, %v10097_v22  ;;  %v5085_v28 = vmul.f32 %v4915_v0, %v10095_v44  ;;  %7030 = vpow2.f32 %v2932_v41  ;;  %v2814_v56 = vmul.f32 %v11332_v46, %v8009_v34  ;;  %v11336_v0 = vld [vmem:[#allocation155_spill] sm:$0xff]  ;;  %v10122_v38 = vpop.permute.xlu1 %3332  ;;  %v11346_v25 = vld [vmem:[#allocation102_spill] sm:$0xff] }
 0x499   : >> { %v4151_v7 = vmul.f32 %v11333_v14, %v9719_v35  ;;  %v3722_v20 = vcombine.high %v3720_v24, %v3720_v24  ;;  %v2807_v9 = vmul.f32 %v11334_v29, %v8009_v34  ;;  %v4254_v52 = vmul.f32 %v11335_v1, %v10093_v30  ;;  %11337 = vst [vmem:[#allocation105_spill] sm:$0xff] %v10122_v38  ;;  %v10124_v41 = vpop.permute.xlu0 %3325  ;;  %v11349_v38 = vld [vmem:[#allocation93_spill] sm:$0xff] }
 0x49a   : >> { %v5244_v42 = vsel %vm678_vm1, %v5084_v16, 0.0  ;;  %v5247_v57 = vsel %vm678_vm1, %v5085_v28, 0.0  ;;  %7032 = vpow2.f32 %v2920_v39  ;;  %v4239_v5 = vmul.f32 %v11336_v0, %v9879_v45 }
 0x49b   : >> { %5245 = vadd.xlane.f32.xlu1 %v5244_v42  ;;  %v4682_v35 = vcombine.high %v4674_v62, %v4674_v62  ;;  %v10128_v46 = vadd.f32 %v4254_v52, %v4158_v58  ;;  %v10131_v14 = vrot.slane %v3753_v4, %v8401_v47  ;;  %5248 = vadd.xlane.f32.xlu0 %v5247_v57  ;;  %v2936_v16 = vmul.f32 1.442695, %v2814_v56  ;;  %v11339_v58 = vld [vmem:[#allocation87_spill] sm:$0xff] }
 0x49c   : >> { %v10134_v39 = vrot.slane %v3770_v21, %v8687_v55  ;;  %v3778_v45 = vrot.slane %v3762_v51, %v8687_v55  ;;  %v10137_v28 = vadd.f32 %v4239_v5, %v4151_v7  ;;  %v4007_v29 = vrot.slane %v3751_v60, %v8401_v47  ;;  %v11341_v51 = vld [vmem:[#allocation74_spill] sm:$0xff]  ;;  %v10152_v7 = vpop.permute.xlu1 %3346 }
 0x49d   : >> { %v2922_v42 = vmul.f32 1.442695, %v2807_v9  ;;  %v4166_v52 = vmul.f32 %v11339_v58, %v9986_v6  ;;  %v10145_v4 = vrot.slane %v3722_v20, %v8687_v55  ;;  %v10148_v21 = vrot.slane %v3720_v24, %v8687_v55  ;;  %11342 = vst [vmem:[#allocation123_spill] sm:$0xff] %v10152_v7  ;;  %v10154_v57 = vpop.permute.xlu0 %3339 }
 0x49e   : >> { %v4159_v56 = vmul.f32 %v11341_v51, %v9853_v31  ;;  %11343 = vst [vmem:[#allocation127_spill] sm:$0xff] %v10154_v57  ;;  %v10157_v60 = vrot.slane %v4674_v62, %v8687_v55  ;;  %v10160_v9 = vrot.slane %v4682_v35, %v8687_v55  ;;  %v4663_v6 = vcombine.high %v10034_v12, %v10034_v12  ;;  %v11344_v62 = vld [vmem:[#allocation111_spill] sm:$0xff]  ;;  %v11345_v35 = vld [vmem:[#allocation168_spill] sm:$0xff] }
 0x49f   : >> { %11340 = vst [vmem:[#allocation115_spill] sm:$0xff] %v10145_v4  ;;  %v4270_v24 = vmul.f32 %v9886_v2, %v10128_v46  ;;  %v4035_v20 = vrot.slane %v10134_v39, %v8401_v47  ;;  %v4031_v31 = vrot.slane %v3778_v45, %v8401_v47  ;;  %v2815_v5 = vmul.f32 %v11344_v62, %v8009_v34 }
 0x4a0   : >> { %7034 = vpow2.f32 %v2936_v16  ;;  %v4255_v58 = vmul.f32 %v11345_v35, %v10137_v28  ;;  %v3800_v51 = vcombine.high %v3778_v45, %v3778_v45  ;;  %v4174_v0 = vmul.f32 %v4007_v29, %v3312_v43  ;;  %v3361_v63 = vpop.permute.xlu1 %3360  ;;  %v11347_v43 = vld [vmem:[#allocation142_spill] sm:$0xff] }
 0x4a1   : >> { %v7029_v12 = vpop.eup %7028  ;;  %7036 = vpow2.f32 %v2922_v42  ;;  %v4278_v1 = vadd.f32 %v4270_v24, %v4166_v52  ;;  %v3354_v62 = vpop.permute.xlu0 %3353  ;;  %v4943_v16 = vrot.slane %v10157_v60, %v8401_v47  ;;  %v4947_v45 = vrot.slane %v10160_v9, %v8401_v47 }
 0x4a2   : >> { %v7031_v61 = vpop.eup %7030  ;;  %v10179_v7 = vadd.f32 %v4255_v58, %v4159_v56  ;;  %v4181_v42 = vmul.f32 %v4035_v20, %v3361_v63  ;;  %v4301_v52 = vmul.f32 %v7029_v12, %v10095_v44  ;;  %v4180_v24 = vmul.f32 %v4031_v31, %v3354_v62 }
 0x4a3   : >> { %v4300_v35 = vmul.f32 %v7031_v61, %v10097_v22  ;;  %v2808_v56 = vmul.f32 %v11346_v25, %v8009_v34  ;;  %v2938_v58 = vmul.f32 1.442695, %v2815_v5  ;;  %v11348_v29 = vrot.slane %v11347_v43, %v8401_v47  ;;  %v11350_v61 = vld [vmem:[#allocation162_spill] sm:$0xff] }
 0x4a4   : >> { %v7033_v2 = vpop.eup %7032  ;;  %v4039_v4 = vrot.slane %v3800_v51, %v8401_v47  ;;  %v4167_v63 = vmul.f32 %v11349_v38, %v9984_v26  ;;  %v10196_v44 = vadd.f32 %v4301_v52, %v4181_v42   ;;  %v4240_v22 = vmul.f32 %v11350_v61, %v9888_v32  ;;  %v11351_v32 = vld [vmem:[#allocation164_spill] sm:$0xff]  ;;  %v11352_v42 = vld [vmem:[#allocation79_spill] sm:$0xff]  ;;  %v11355_v43 = vld [vmem:[#allocation158_spill] sm:$0xff] }
 0x4a5   : >> { %v4152_v57 = vmul.f32 %v11348_v29, %v9753_v10  ;;  %v4286_v20 = vmul.f32 %v7033_v2, %v4278_v1  ;;  %v10198_v31 = vadd.f32 %v4300_v35, %v4180_v24   ;;  %v3802_v25 = vcombine.high %v10134_v39, %v10134_v39  ;;  %v3368_v5 = vpop.permute.xlu0 %3367 }
 0x4a6   : >> { %v4919_v12 = vrot.slane %v4663_v6, %v8401_v47  ;;  %v4712_v10 = vcombine.high %v10157_v60, %v10157_v60  ;;  %v4271_v26 = vmul.f32 %v9845_v13, %v10179_v7  ;;  %v5093_v2 = vmul.f32 %v4947_v45, %v10196_v44  ;;  %v11354_v45 = vld [vmem:[#allocation118_spill] sm:$0xff]  ;;  %5695 = vst.msk [vmem:[#allocation7 + $0x8] sm:$0xff] (%p2259_p13), %vm678_vm1, %v10196_v44 }
 0x4a7   : >> { %v4294_v38 = vadd.f32 %v4286_v20, %v4174_v0  ;;  %v5092_v51 = vmul.f32 %v4943_v16, %v10198_v31  ;;  %7038 = vpow2.f32 %v2938_v58  ;;  %v10211_v62 = vadd.f32 %v4240_v22, %v4152_v57  ;;  %v11357_v20 = vld [vmem:[#allocation94_spill] sm:$0xff]  ;;  %5694 = vst.msk [vmem:[#allocation7] sm:$0xff] (%p2259_p13), %vm678_vm1, %v10198_v31 }
 0x4a8   : >> { %v5062_v39 = vmul.f32 %v11351_v32, %v10093_v30  ;;  %v5070_v6 = vmul.f32 %v11352_v42, %v10128_v46  ;;  %v4279_v52 = vadd.f32 %v4271_v26, %v4167_v63  ;;  %v4182_v24 = vmul.f32 %v4039_v4, %v3368_v5 }
 0x4a9   : >> { %v5268_v60 = vsel %vm678_vm1, %v5092_v51, 0.0  ;;  %v5271_v13 = vsel %vm678_vm1, %v5093_v2, 0.0  ;;  %v2924_v35 = vmul.f32 1.442695, %v2808_v56  ;;  %v4043_v16 = vrot.slane %v3802_v25, %v8401_v47 }
 0x4aa   : >> { %v7035_v0 = vpop.eup %7034  ;;  %v3755_v57 = vcombine.high %v10047_v50, %v10047_v50  ;;  %5269 = vadd.xlane.f32.xlu1 %v5268_v60  ;;  %5272 = vadd.xlane.f32.xlu0 %v5271_v13  ;;  %v11353_v30 = vcombine.high %v11338_v23, %v11338_v23  ;;  %v2816_v58 = vmul.f32 %v11354_v45, %v8009_v34  ;;  %v5178_v23 = vsel %vm678_vm1, %v5062_v39, 0.0 }
 0x4ab   : >> { %v7037_v4 = vpop.eup %7036  ;;  %v11356_v56 = vrot.slane %v11355_v43, %v8401_v47  ;;  %v4175_v50 = vmul.f32 %v10131_v14, %v10101_v3  ;;  %v4302_v63 = vmul.f32 %v7035_v0, %v4294_v38  ;;  %v4256_v61 = vmul.f32 %v11357_v20, %v10211_v62  ;;  %v3375_v3 = vpop.permute.xlu1 %3374 }
 0x4ac   : >> { %v10226_v46 = vrot.slane %v11353_v30, %v8687_v55  ;;  %v5202_v22 = vsel %vm678_vm1, %v5070_v6, 0.0  ;;  %v4951_v25 = vrot.slane %v4712_v10, %v8401_v47  ;;  %v4287_v5 = vmul.f32 %v7037_v4, %v4279_v52 }
 0x4ad   : >> { %v4160_v29 = vmul.f32 %v11356_v56, %v9894_v53  ;;  %v10241_v14 = vadd.f32 %v4302_v63, %v4182_v24   ;;  %v5078_v51 = vmul.f32 %v9801_v54, %v4278_v1  ;;  %v5086_v2 = vmul.f32 %v4919_v12, %v4294_v38  ;;  %v11359_v53 = vld [vmem:[#allocation101_spill] sm:$0xff] }
 0x4ae   : >> { %v2809_v32 = vmul.f32 %v11359_v53, %v8009_v34  ;;  %7040 = vpow2.f32 %v2924_v35  ;;  %v3769_v42 = vrot.slane %v3755_v57, %v8687_v55  ;;  %5179 = vadd.xlane.f32.xlu1 %v5178_v23  ;;  %5203 = vadd.xlane.f32.xlu0 %v5202_v22  ;;  %v4618_v39 = vcombine.high %v9956_v27, %v9956_v27  ;;  %v11362_v27 = vld [vmem:[#allocation80_spill] sm:$0xff] }
 0x4af   : >> { %v11358_v26 = vmov %v10241_v14  ;;  %v10249_v6 = vadd.f32 %v4256_v61, %v4160_v29  ;;  %v4295_v10 = vadd.f32 %v4287_v5, %v4175_v50  ;;  %v11360_v54 = vcombine.high %v10037_v33, %v10037_v33  ;;  %v11364_v29 = vld [vmem:[#allocation96_spill] sm:$0xff] }
 0x4b0   : >> { %v10257_v1 = vrot.slane %v10226_v46, %v8687_v55  ;;  %v2940_v12 = vmul.f32 1.442695, %v2816_v58  ;;  %v11361_v38 = vrot.slane %v9689_v49, %v8401_v47  ;;  %v5063_v60 = vmul.f32 %v11362_v27, %v10137_v28  ;;  %v11363_v28 = vld [vmem:[#allocation117_spill] sm:$0xff]  ;;  %5696 = vst.msk [vmem:[#allocation7 + $0x10] sm:$0xff] (%p2259_p13), %vm678_vm1, %v11358_v26 }
 0x4b1   : >> { %v4923_v14 = vrot.slane %v11360_v54, %v8401_v47  ;;  %v4714_v13 = vcombine.high %v10160_v9, %v10160_v9  ;;  %v4183_v0 = vmul.f32 %v4043_v16, %v3375_v3  ;;  %v5226_v33 = vsel %vm678_vm1, %v5078_v51, 0.0  ;;  %v7039_v30 = vpop.eup %7038 }
 0x4b2   : >> { %v4168_v24 = vmul.f32 %v11361_v38, %v10018_v59  ;;  %v5250_v35 = vsel %vm678_vm1, %v5086_v2, 0.0  ;;  %v5094_v57 = vmul.f32 %v4951_v25, %v11358_v26  ;;  %v2926_v4 = vmul.f32 1.442695, %v2809_v32  ;;  %5227 = vadd.xlane.f32.xlu1 %v5226_v33  ;;  %v11368_v33 = vld [vmem:[#allocation95_spill] sm:$0xff] }
 0x4b3   : >> { %v3771_v45 = vcombine.high %v3769_v42, %v3769_v42  ;;  %5251 = vadd.xlane.f32.xlu0 %v5250_v35  ;;  %v10271_v49 = vrot.slane %v4618_v39, %v8687_v55  ;;  %v4667_v59 = vcombine.high %v10082_v17, %v10082_v17  ;;  %v2817_v9 = vmul.f32 %v11363_v28, %v8009_v34 }
 0x4b4   : >> { %v4272_v16 = vmul.f32 %v10084_v11, %v10249_v6  ;;  %v4303_v58 = vmul.f32 %v7039_v30, %v4295_v10  ;;  %v10280_v43 = vrot.slane %v3769_v42, %v8687_v55  ;;  %7042 = vpow2.f32 %v2940_v12  ;;  %v11365_v11 = vld [vmem:[#allocation104_spill] sm:$0xff] }
 0x4b5   : >> { %v5181_v56 = vsel %vm678_vm1, %v5063_v60, 0.0  ;;  %v5071_v50 = vmul.f32 %v11364_v29, %v10179_v7  ;;  %v4955_v63 = vrot.slane %v4714_v13, %v8401_v47  ;;  %v5274_v61 = vsel %vm678_vm1, %v5094_v57, 0.0 }
 0x4b6   : >> { %v4280_v20 = vadd.f32 %v4272_v16, %v4168_v24  ;;  %v10286_v17 = vadd.f32 %v4303_v58, %v4183_v0   ;;  %v5079_v23 = vmul.f32 %v9914_v40, %v4279_v52  ;;  %7044 = vpow2.f32 %v2926_v4  ;;  %5275 = vadd.xlane.f32.xlu1 %v5274_v61  ;;  %v3382_v24 = vpop.permute.xlu0 %3381 }
 0x4b7   : >> { %v2810_v22 = vmul.f32 %v11365_v11, %v8009_v34  ;;  %5182 = vadd.xlane.f32.xlu0 %v5181_v56  ;;  %v10294_v25 = vrot.slane %v10271_v49, %v8687_v55  ;;  %v4487_v7 = vcombine.high %v9772_v36, %v9772_v36  ;;  %v11366_v5 = vrot.slane %v10148_v21, %v8401_v47  ;;  %v11373_v56 = vld [vmem:[#allocation115_spill] sm:$0xff] }
 0x4b8   : >> { %v10303_v40 = vrot.slane %v3771_v45, %v8687_v55  ;;  %v4047_v52 = vrot.slane %v10280_v43, %v8401_v47  ;;  %v4895_v2 = vrot.slane %v10257_v1, %v8401_v47  ;;  %v7041_v53 = vpop.eup %7040  ;;  %v2942_v32 = vmul.f32 1.442695, %v2817_v9  ;;  %v11371_v9 = vld [vmem:[#allocation126_spill] sm:$0xff]  ;;  %5697 = vst.msk [vmem:[#allocation7 + $0x18] sm:$0xff] (%p2259_p13), %vm678_vm1, %v10286_v17 }
 0x4b9   : >> { %v4176_v51 = vmul.f32 %v11366_v5, %v10124_v41  ;;  %v11367_v36 = vrot.slane %v9662_v19, %v8401_v47  ;;  %v5205_v42 = vsel %vm678_vm1, %v5071_v50, 0.0  ;;  %v4681_v41 = vrot.slane %v4667_v59, %v8687_v55 }
 0x4ba   : >> { %v4288_v39 = vmul.f32 %v7041_v53, %v4280_v20  ;;  %v5229_v54 = vsel %vm678_vm1, %v5079_v23, 0.0  ;;  %v5087_v12 = vmul.f32 %v4923_v14, %v4295_v10  ;;  %v5095_v38 = vmul.f32 %v4955_v63, %v10286_v17  ;;  %5206 = vadd.xlane.f32.xlu1 %v5205_v42 }
 0x4bb   : >> { %v4169_v3 = vmul.f32 %v11367_v36, %v10016_v8  ;;  %5230 = vadd.xlane.f32.xlu0 %v5229_v54  ;;  %v4927_v27 = vrot.slane %v10294_v25, %v8401_v47  ;;  %v10320_v60 = vrot.slane %v4681_v41, %v8687_v55  ;;  %v10323_v19 = vrot.slane %v4487_v7, %v8687_v55  ;;  %v3389_v54 = vpop.permute.xlu1 %3388 }
 0x4bc   : >> { %v4273_v8 = vmul.f32 %v10078_v37, %v9918_v15  ;;  %v4296_v13 = vadd.f32 %v4288_v39, %v4176_v51  ;;  %v4536_v10 = vcombine.high %v10028_v18, %v10028_v18  ;;  %v4585_v14 = vcombine.high %v10226_v46, %v10226_v46 }
 0x4bd   : >> { %7046 = vpow2.f32 %v2942_v32  ;;  %v4051_v0 = vrot.slane %v10303_v40, %v8401_v47  ;;  %v11369_v35 = vrot.slane %v11368_v33, %v8401_v47  ;;  %v11370_v37 = vrot.slane %v10091_v48, %v8401_v47 }
 0x4be   : >> { %v4281_v4 = vadd.f32 %v4273_v8, %v4169_v3  ;;  %v4184_v45 = vmul.f32 %v4047_v52, %v3382_v24  ;;  %v5253_v18 = vsel %vm678_vm1, %v5087_v12, 0.0  ;;  %v5277_v46 = vsel %vm678_vm1, %v5095_v38, 0.0  ;;  %v7043_v59 = vpop.eup %7042  ;;  %v11375_v3 = vld [vmem:[#allocation103_spill] sm:$0xff] }
 0x4bf   : >> { %v5064_v57 = vmul.f32 %v11369_v35, %v10211_v62  ;;  %v5072_v30 = vmul.f32 %v11370_v37, %v10249_v6  ;;  %v2928_v28 = vmul.f32 1.442695, %v2810_v22  ;;  %v2818_v16 = vmul.f32 %v11371_v9, %v8009_v34  ;;  %5254 = vadd.xlane.f32.xlu1 %v5253_v18  ;;  %5278 = vadd.xlane.f32.xlu0 %v5277_v46  ;;  %v11372_v6 = vld [vmem:[#allocation105_spill] sm:$0xff] }
 0x4c0   : >> { %v4959_v62 = vrot.slane %v10320_v60, %v8401_v47  ;;  %v4835_v58 = vrot.slane %v10323_v19, %v8401_v47  ;;  %v11374_v29 = vrot.slane %v11373_v56, %v8401_v47  ;;  %v4304_v63 = vmul.f32 %v7043_v59, %v4296_v13  ;;  %v7045_v11 = vpop.eup %7044 }
 0x4c1   : >> { %v10354_v61 = vrot.slane %v4536_v10, %v8687_v55  ;;  %v10357_v23 = vrot.slane %v4585_v14, %v8687_v55  ;;  %v5184_v22 = vsel %vm678_vm1, %v5064_v57, 0.0  ;;  %v5208_v7 = vsel %vm678_vm1, %v5072_v30, 0.0  ;;  %v11377_v30 = vld [vmem:[#allocation125_spill] sm:$0xff] }
 0x4c2   : >> { %v4177_v50 = vmul.f32 %v11374_v29, %v11372_v6  ;;  %v4634_v5 = vcombine.high %v10271_v49, %v10271_v49  ;;  %v4683_v51 = vcombine.high %v4681_v41, %v4681_v41  ;;  %v4289_v52 = vmul.f32 %v7045_v11, %v4281_v4  ;;  %v11376_v41 = vld [vmem:[#allocation97_spill] sm:$0xff] }
 0x4c3   : >> { %v10363_v53 = vadd.f32 %v4304_v63, %v4184_v45   ;;  %v5080_v32 = vmul.f32 %v4895_v2, %v4280_v20  ;;  %v5088_v36 = vmul.f32 %v4927_v27, %v4296_v13  ;;  %v2811_v42 = vmul.f32 %v11375_v3, %v8009_v34  ;;  %5185 = vadd.xlane.f32.xlu1 %v5184_v22  ;;  %v11379_v22 = vld [vmem:[#allocation132_spill] sm:$0xff] }
 0x4c4   : >> { %7048 = vpow2.f32 %v2928_v28  ;;  %v3752_v39 = vcombine.high %v10148_v21, %v10148_v21  ;;  %5209 = vadd.xlane.f32.xlu0 %v5208_v7  ;;  %v2944_v12 = vmul.f32 1.442695, %v2818_v16  ;;  %v4297_v38 = vadd.f32 %v4289_v52, %v4177_v50 }
 0x4c5   : >> { %v4867_v49 = vrot.slane %v10354_v61, %v8401_v47  ;;  %v5065_v24 = vmul.f32 %v4835_v58, %v11376_v41  ;;  %v4899_v20 = vrot.slane %v10357_v23, %v8401_v47  ;;  %v10375_v2 = vrot.slane %v4634_v5, %v8687_v55  ;;  %5698 = vst.msk [vmem:[#allocation7 + $0x20] sm:$0xff] (%p2259_p13), %vm678_vm1, %v10363_v53 }
 0x4c6   : >> { %v10378_v27 = vrot.slane %v4683_v51, %v8687_v55  ;;  %v4185_v21 = vmul.f32 %v4051_v0, %v3389_v54  ;;  %v5232_v8 = vsel %vm678_vm1, %v5080_v32, 0.0  ;;  %v5256_v13 = vsel %vm678_vm1, %v5088_v36, 0.0  ;;  %v3396_v36 = vpop.permute.xlu0 %3395  ;;  %v11381_v54 = vld [vmem:[#allocation156_spill] sm:$0xff] }
 0x4c7   : >> { %v5096_v10 = vmul.f32 %v4959_v62, %v10363_v53  ;;  %v7047_v14 = vpop.eup %7046  ;;  %v2930_v35 = vmul.f32 1.442695, %v2811_v42  ;;  %v4023_v57 = vrot.slane %v3752_v39, %v8401_v47  ;;  %v3801_v37 = vcombine.high %v10280_v43, %v10280_v43  ;;  %5233 = vadd.xlane.f32.xlu1 %v5232_v8  ;;  %v11380_v42 = vld [vmem:[#allocation92_spill] sm:$0xff] }
 0x4c8   : >> { %5257 = vadd.xlane.f32.xlu0 %v5256_v13  ;;  %v2819_v55 = vmul.f32 %v11377_v30, %v8009_v34  ;;  %v4305_v45 = vmul.f32 %v7047_v14, %v4297_v38  ;;  %v4517_v0 = vcombine.high %v11368_v33, %v11368_v33  ;;  %v4566_v18 = vcombine.high %v10091_v48, %v10091_v48  ;;  %v11378_v33 = vld [vmem:[#allocation127_spill] sm:$0xff]  ;;  %v5773_v34 = vld [vmem:[%s11397_s28] sm:$0xff] (%p2259_p13) }
 0x4c9   : >> { %7050 = vpow2.f32 %v2944_v12  ;;  %v5073_v46 = vmul.f32 %v4867_v49, %v9918_v15  ;;  %v4931_v59 = vrot.slane %v10375_v2, %v8401_v47  ;;  %v4963_v43 = vrot.slane %v10378_v27, %v8401_v47  ;;  %6596 = vmatprep.subr.mxu1 (%p2259_p13), %v5773_v34 }
 0x4ca   : >> { %v10397_v28 = vadd.f32 %v4305_v45, %v4185_v21   ;;  %v5280_v9 = vsel %vm678_vm1, %v5096_v10, 0.0  ;;  %v5187_v16 = vsel %vm678_vm1, %v5065_v24, 0.0  ;;  %v5081_v62 = vmul.f32 %v4899_v20, %v4281_v4  ;;  %v11383_v45 = vld [vmem:[#allocation100_spill] sm:$0xff]  ;;  %6597 = vmatpush3.msra.mxu1 (%p2259_p13), %v5773_v34 }
 0x4cb   : >> { %7052 = vpow2.f32 %v2930_v35  ;;  %v3754_v48 = vcombine.high %v11373_v56, %v11373_v56  ;;  %5281 = vadd.xlane.f32.xlu1 %v5280_v9  ;;  %v2946_v15 = vmul.f32 1.442695, %v2819_v55  ;;  %v4178_v58 = vmul.f32 %v4023_v57, %v11378_v33 }
 0x4cc   : >> { %5188 = vadd.xlane.f32.xlu0 %v5187_v16  ;;  %v4055_v6 = vrot.slane %v3801_v37, %v8401_v47  ;;  %v4839_v29 = vrot.slane %v4517_v0, %v8401_v47  ;;  %v5211_v63 = vsel %vm678_vm1, %v5073_v46, 0.0  ;;  %v4871_v11 = vrot.slane %v4566_v18, %v8401_v47  ;;  %v11385_v16 = vld [vmem:[#allocation82_spill] sm:$0xff]  ;;  %5699 = vst.msk [vmem:[#allocation7 + $0x28] sm:$0xff] (%p2259_p13), %vm678_vm1, %v10397_v28 }
 0x4cd   : >> { %v4615_v4 = vcombine.high %v10257_v1, %v10257_v1  ;;  %v4664_v56 = vcombine.high %v10294_v25, %v10294_v25  ;;  %v5235_v5 = vsel %vm678_vm1, %v5081_v62, 0.0  ;;  %v5089_v51 = vmul.f32 %v4931_v59, %v4297_v38 }
 0x4ce   : >> { %v7049_v50 = vpop.eup %7048  ;;  %v5097_v52 = vmul.f32 %v4963_v43, %v10397_v28  ;;  %v3803_v32 = vcombine.high %v10303_v40, %v10303_v40  ;;  %7054 = vpow2.f32 %v2946_v15  ;;  %v4027_v3 = vrot.slane %v3754_v48, %v8401_v47  ;;  %v3403_v43 = vpop.permute.xlu1 %3402 }
 0x4cf   : >> { %v4290_v7 = vmul.f32 %v7049_v50, %v11379_v22  ;;  %5212 = vadd.xlane.f32.xlu1 %v5211_v63  ;;  %v4713_v25 = vcombine.high %v10320_v60, %v10320_v60  ;;  %v5066_v39 = vmul.f32 %v4839_v29, %v11380_v42  ;;  %v5074_v12 = vmul.f32 %v4871_v11, %v11381_v54  ;;  %v11382_v60 = vld [vmem:[#allocation123_spill] sm:$0xff] }
 0x4d0   : >> { %5236 = vadd.xlane.f32.xlu0 %v5235_v5  ;;  %v4903_v38 = vrot.slane %v4615_v4, %v8401_v47  ;;  %v4519_v49 = vcombine.high %v10323_v19, %v10323_v19  ;;  %v4186_v40 = vmul.f32 %v4055_v6, %v3396_v36  ;;  %v5259_v41 = vsel %vm678_vm1, %v5089_v51, 0.0 }
 0x4d1   : >> { %v4298_v1 = vadd.f32 %v4290_v7, %v4178_v58  ;;  %v5283_v24 = vsel %vm678_vm1, %v5097_v52, 0.0  ;;  %v4935_v20 = vrot.slane %v4664_v56, %v8401_v47  ;;  %v4059_v8 = vrot.slane %v3803_v32, %v8401_v47 }
 0x4d2   : >> { %v4179_v13 = vmul.f32 %v4027_v3, %v11382_v60  ;;  %v4967_v14 = vrot.slane %v4713_v25, %v8401_v47  ;;  %v4568_v19 = vcombine.high %v10354_v61, %v10354_v61  ;;  %v5190_v57 = vsel %vm678_vm1, %v5066_v39, 0.0  ;;  %v11388_v39 = vld [vmem:[#allocation63_spill] sm:$0xff] }
 0x4d3   : >> { %v7051_v21 = vpop.eup %7050  ;;  %5260 = vadd.xlane.f32.xlu1 %v5259_v41  ;;  %v5214_v37 = vsel %vm678_vm1, %v5074_v12, 0.0  ;;  %v4843_v30 = vrot.slane %v4519_v49, %v8401_v47  ;;  %v4617_v55 = vcombine.high %v10357_v23, %v10357_v23  ;;  %v5082_v46 = vmul.f32 %v4903_v38, %v11379_v22  ;;  %v11387_v22 = vld [vmem:[#allocation83_spill] sm:$0xff] }
 0x4d4   : >> { %5284 = vadd.xlane.f32.xlu0 %v5283_v24  ;;  %v4306_v10 = vmul.f32 %v7051_v21, %v4298_v1  ;;  %v5090_v59 = vmul.f32 %v4935_v20, %v4298_v1  ;;  %v4875_v9 = vrot.slane %v4568_v19, %v8401_v47  ;;  %v4666_v23 = vcombine.high %v10375_v2, %v10375_v2 }
 0x4d5   : >> { %v7053_v35 = vpop.eup %7052  ;;  %v5067_v62 = vmul.f32 %v4843_v30, %v11385_v16  ;;  %v4907_v48 = vrot.slane %v4617_v55, %v8401_v47  ;;  %v4715_v15 = vcombine.high %v10378_v27, %v10378_v27  ;;  %v4187_v58 = vmul.f32 %v4059_v8, %v3403_v43 }
 0x4d6   : >> { %v4291_v0 = vmul.f32 %v7053_v35, %v11383_v45  ;;  %v10439_v7 = vadd.f32 %v4306_v10, %v4186_v40   ;;  %v5238_v6 = vsel %vm678_vm1, %v5082_v46, 0.0  ;;  %v5262_v29 = vsel %vm678_vm1, %v5090_v59, 0.0 }
 0x4d7   : >> { %5191 = vadd.xlane.f32.xlu1 %v5190_v57  ;;  %v5193_v11 = vsel %vm678_vm1, %v5067_v62, 0.0  ;;  %v4939_v4 = vrot.slane %v4666_v23, %v8401_v47  ;;  %v4971_v2 = vrot.slane %v4715_v15, %v8401_v47  ;;  %v5083_v5 = vmul.f32 %v4907_v48, %v11383_v45 }
 0x4d8   : >> { %v11384_v18 = vmov %v10439_v7  ;;  %5215 = vadd.xlane.f32.xlu0 %v5214_v37  ;;  %v4299_v61 = vadd.f32 %v4291_v0, %v4179_v13  ;;  %v7055_v33 = vpop.eup %7054  ;;  %v5075_v7 = vmul.f32 %v4875_v9, %v11387_v22 }
 0x4d9   : >> { %v5098_v50 = vmul.f32 %v4967_v14, %v11384_v18  ;;  %v5241_v52 = vsel %vm678_vm1, %v5083_v5, 0.0  ;;  %5700 = vst.msk [vmem:[#allocation7 + $0x30] sm:$0xff] (%p2259_p13), %vm678_vm1, %v11384_v18 }
 0x4da   : >> { %v4307_v63 = vmul.f32 %v7055_v33, %v4299_v61  ;;  %v5217_v51 = vsel %vm678_vm1, %v5075_v7, 0.0  ;;  %v5091_v32 = vmul.f32 %v4939_v4, %v4299_v61 }
 0x4db   : >> { %5239 = vadd.xlane.f32.xlu1 %v5238_v6  ;;  %v5286_v27 = vsel %vm678_vm1, %v5098_v50, 0.0 }
 0x4dc   : >> { %5263 = vadd.xlane.f32.xlu0 %v5262_v29  ;;  %v10455_v12 = vadd.f32 %v4307_v63, %v4187_v58   ;;  %v5265_v47 = vsel %vm678_vm1, %v5091_v32, 0.0 }
 0x4de   : >> { %v11386_v56 = vmov %v10455_v12 }
 0x4df   : >> { %5287 = vadd.xlane.f32.xlu1 %v5286_v27  ;;  %v5099_v36 = vmul.f32 %v4971_v2, %v11386_v56  ;;  %5701 = vst.msk [vmem:[#allocation7 + $0x38] sm:$0xff] (%p2259_p13), %vm678_vm1, %v11386_v56 }
 0x4e0   : >> { %5194 = vadd.xlane.f32.xlu0 %v5193_v11 }
 0x4e1   : >> { %v5289_v3 = vsel %vm678_vm1, %v5099_v36, 0.0 }
 0x4e3   : >> { %5218 = vadd.xlane.f32.xlu1 %v5217_v51 }
 0x4e4   : >> { %5242 = vadd.xlane.f32.xlu0 %v5241_v52 }
 0x4e5   : >> { %v5102_v1 = vpop.xlane.xlu0 %5101 }
 0x4e6   : >> { %v5361_v54 = vrot.slane %v5102_v1, %v11388_v39 }
 0x4e7   : >> { %5266 = vadd.xlane.f32.xlu1 %v5265_v47 }
 0x4e8   : >> { %5290 = vadd.xlane.f32.xlu0 %v5289_v3 }
 0x4e9   : >> { %v5108_v25 = vpop.xlane.xlu0 %5107 }
 0x4ea   : >> { %v5105_v42 = vpop.xlane.xlu1 %5104  ;;  %v5369_v38 = vrot.slane %v5108_v25, %v11388_v39 }
 0x4eb   : >> { %v5365_v12 = vrot.slane %v5105_v42, %v11388_v39 }
 0x4ed   : >> { %v5615_v49 = vsel %vm5614_vm4, %v5365_v12, %v5361_v54  ;;  %v5111_v40 = vpop.xlane.xlu0 %5110 }
 0x4ee   : >> { %v5617_v41 = vsel %vm5616_vm5, %v5369_v38, %v5615_v49  ;;  %v5373_v24 = vrot.slane %v5111_v40, %v11388_v39  ;;  %v5114_v20 = vpop.xlane.xlu1 %5113 }
 0x4ef   : >> { %v5377_v21 = vrot.slane %v5114_v20, %v11388_v39 }
 0x4f0   : >> { %v5619_v8 = vsel %vm5618_vm6, %v5373_v24, %v5617_v41 }
 0x4f1   : >> { %v5117_v60 = vpop.xlane.xlu0 %5116  ;;  %v5621_v14 = vsel %vm5620_vm7, %v5377_v21, %v5619_v8 }
 0x4f2   : >> { %v5381_v13 = vrot.slane %v5117_v60, %v11388_v39  ;;  %v5120_v10 = vpop.xlane.xlu1 %5119 }
 0x4f3   : >> { %v5385_v19 = vrot.slane %v5120_v10, %v11388_v39 }
 0x4f4   : >> { %v5623_v35 = vsel %vm5622_vm8, %v5381_v13, %v5621_v14 }
 0x4f5   : >> { %v5123_v57 = vpop.xlane.xlu0 %5122  ;;  %v5625_v55 = vsel %vm5624_vm9, %v5385_v19, %v5623_v35 }
 0x4f6   : >> { %v5389_v37 = vrot.slane %v5123_v57, %v11388_v39  ;;  %v5126_v30 = vpop.xlane.xlu1 %5125 }
 0x4f7   : >> { %v5393_v46 = vrot.slane %v5126_v30, %v11388_v39 }
 0x4f8   : >> { %v5627_v45 = vsel %vm5626_vm10, %v5389_v37, %v5625_v55 }
 0x4f9   : >> { %5686 = vst.msk [vmem:[%s10481_s14] sm:$0xff] %vm678_vm1, %v5627_v45  ;;  %v5129_v0 = vpop.xlane.xlu0 %5128 }
 0x4fa   : >> { %v5397_v59 = vrot.slane %v5129_v0, %v11388_v39  ;;  %v5132_v43 = vpop.xlane.xlu1 %5131 }
 0x4fb   : >> { %v5401_v61 = vrot.slane %v5132_v43, %v11388_v39 }
 0x4fc   : >> { %v5628_v9 = vsel %vm5614_vm4, %v5397_v59, %v5393_v46 }
 0x4fd   : >> { %v5135_v16 = vpop.xlane.xlu0 %5134  ;;  %v5629_v23 = vsel %vm5616_vm5, %v5401_v61, %v5628_v9 }
 0x4fe   : >> { %v5405_v62 = vrot.slane %v5135_v16, %v11388_v39  ;;  %v5138_v48 = vpop.xlane.xlu1 %5137 }
 0x4ff   : >> { %v5409_v15 = vrot.slane %v5138_v48, %v11388_v39 }
 0x500   : >> { %v5630_v33 = vsel %vm5618_vm6, %v5405_v62, %v5629_v23 }
 0x501   : >> { %v5141_v58 = vpop.xlane.xlu0 %5140  ;;  %v5631_v50 = vsel %vm5620_vm7, %v5409_v15, %v5630_v33 }
 0x502   : >> { %v5413_v6 = vrot.slane %v5141_v58, %v11388_v39  ;;  %v5144_v29 = vpop.xlane.xlu1 %5143 }
 0x503   : >> { %v5417_v63 = vrot.slane %v5144_v29, %v11388_v39 }
 0x504   : >> { %v5632_v11 = vsel %vm5622_vm8, %v5413_v6, %v5631_v50 }
 0x505   : >> { %v5147_v4 = vpop.xlane.xlu0 %5146  ;;  %v5633_v22 = vsel %vm5624_vm9, %v5417_v63, %v5632_v11 }
 0x506   : >> { %v5421_v2 = vrot.slane %v5147_v4, %v11388_v39  ;;  %v5150_v27 = vpop.xlane.xlu1 %5149 }
 0x507   : >> { %v5425_v51 = vrot.slane %v5150_v27, %v11388_v39 }
 0x508   : >> { %v5634_v7 = vsel %vm5626_vm10, %v5421_v2, %v5633_v22 }
 0x509   : >> { %5687 = vst.msk [vmem:[%s10481_s14 + $0x8] sm:$0xff] %vm678_vm1, %v5634_v7  ;;  %v5153_v5 = vpop.xlane.xlu0 %5152 }
 0x50a   : >> { %v5429_v52 = vrot.slane %v5153_v5, %v11388_v39  ;;  %v5156_v32 = vpop.xlane.xlu1 %5155 }
 0x50b   : >> { %v5433_v36 = vrot.slane %v5156_v32, %v11388_v39 }
 0x50c   : >> { %v5635_v47 = vsel %vm5614_vm4, %v5429_v52, %v5425_v51 }
 0x50d   : >> { %v5636_v42 = vsel %vm5616_vm5, %v5433_v36, %v5635_v47 }
 0x50e   : >> { %v5159_v3 = vpop.xlane.xlu0 %5158 }
 0x50f   : >> { %v5437_v1 = vrot.slane %v5159_v3, %v11388_v39  ;;  %v5162_v25 = vpop.xlane.xlu1 %5161 }
 0x510   : >> { %v5441_v54 = vrot.slane %v5162_v25, %v11388_v39 }
 0x511   : >> { %v5637_v12 = vsel %vm5618_vm6, %v5437_v1, %v5636_v42 }
 0x512   : >> { %v5165_v38 = vpop.xlane.xlu0 %5164  ;;  %v5638_v41 = vsel %vm5620_vm7, %v5441_v54, %v5637_v12 }
 0x513   : >> { %v5445_v49 = vrot.slane %v5165_v38, %v11388_v39 }
 0x514   : >> { %v5168_v40 = vpop.xlane.xlu1 %5167 }
 0x515   : >> { %v5449_v24 = vrot.slane %v5168_v40, %v11388_v39  ;;  %v5639_v20 = vsel %vm5622_vm8, %v5445_v49, %v5638_v41 }
 0x517   : >> { %v5171_v21 = vpop.xlane.xlu0 %5170  ;;  %v5640_v60 = vsel %vm5624_vm9, %v5449_v24, %v5639_v20 }
 0x518   : >> { %v5453_v8 = vrot.slane %v5171_v21, %v11388_v39  ;;  %v5174_v14 = vpop.xlane.xlu1 %5173 }
 0x519   : >> { %v5457_v47 = vrot.slane %v5174_v14, %v11388_v39 }
 0x51a   : >> { %v5641_v13 = vsel %vm5626_vm10, %v5453_v8, %v5640_v60 }
 0x51b   : >> { %5688 = vst.msk [vmem:[%s10481_s14 + $0x10] sm:$0xff] %vm678_vm1, %v5641_v13  ;;  %v5177_v10 = vpop.xlane.xlu0 %5176 }
 0x51c   : >> { %v5198_v35 = vpop.xlane.xlu1 %5197  ;;  %v5461_v22 = vrot.slane %v5177_v10, %v11388_v39 }
 0x51d   : >> { %v5489_v3 = vrot.slane %v5198_v35, %v11388_v39 }
 0x51e   : >> { %v5642_v49 = vsel %vm5614_vm4, %v5461_v22, %v5457_v47 }
 0x520   : >> { %v5201_v19 = vpop.xlane.xlu0 %5200 }
 0x521   : >> { %v5493_v7 = vrot.slane %v5201_v19, %v11388_v39 }
 0x522   : >> { %v5222_v37 = vpop.xlane.xlu1 %5221 }
 0x523   : >> { %v5521_v42 = vrot.slane %v5222_v37, %v11388_v39  ;;  %v5649_v40 = vsel %vm5614_vm4, %v5493_v7, %v5489_v3 }
 0x524   : >> { %v5225_v57 = vpop.xlane.xlu0 %5224 }
 0x525   : >> { %v5525_v5 = vrot.slane %v5225_v57, %v11388_v39 }
 0x527   : >> { %v5656_v20 = vsel %vm5614_vm4, %v5525_v5, %v5521_v42 }
 0x528   : >> { %v5246_v30 = vpop.xlane.xlu1 %5245  ;;  %v5249_v55 = vpop.xlane.xlu0 %5248 }
 0x529   : >> { %v5553_v51 = vrot.slane %v5246_v30, %v11388_v39  ;;  %v5557_v52 = vrot.slane %v5249_v55, %v11388_v39 }
 0x52b   : >> { %v5663_v21 = vsel %vm5614_vm4, %v5557_v52, %v5553_v51 }
 0x537   : >> { %v5270_v45 = vpop.xlane.xlu1 %5269  ;;  %v5273_v0 = vpop.xlane.xlu0 %5272 }
 0x538   : >> { %v5585_v1 = vrot.slane %v5270_v45, %v11388_v39  ;;  %v5589_v25 = vrot.slane %v5273_v0, %v11388_v39 }
 0x53a   : >> { %v5670_v14 = vsel %vm5614_vm4, %v5589_v25, %v5585_v1 }
 0x53b   : >> { %v5180_v46 = vpop.xlane.xlu1 %5179  ;;  %v5204_v59 = vpop.xlane.xlu0 %5203 }
 0x53c   : >> { %v5465_v54 = vrot.slane %v5180_v46, %v11388_v39  ;;  %v5497_v12 = vrot.slane %v5204_v59, %v11388_v39 }
 0x53e   : >> { %v5643_v37 = vsel %vm5616_vm5, %v5465_v54, %v5642_v49  ;;  %v5650_v30 = vsel %vm5616_vm5, %v5497_v12, %v5649_v40 }
 0x53f   : >> { %v5228_v43 = vpop.xlane.xlu1 %5227 }
 0x540   : >> { %v5252_v61 = vpop.xlane.xlu0 %5251  ;;  %v5529_v38 = vrot.slane %v5228_v43, %v11388_v39 }
 0x541   : >> { %v5561_v41 = vrot.slane %v5252_v61, %v11388_v39 }
 0x542   : >> { %v5657_v55 = vsel %vm5616_vm5, %v5529_v38, %v5656_v20 }
 0x543   : >> { %v5276_v9 = vpop.xlane.xlu1 %5275  ;;  %v5664_v0 = vsel %vm5616_vm5, %v5561_v41, %v5663_v21 }
 0x544   : >> { %v5183_v16 = vpop.xlane.xlu0 %5182  ;;  %v5593_v8 = vrot.slane %v5276_v9, %v11388_v39 }
 0x545   : >> { %v5469_v24 = vrot.slane %v5183_v16, %v11388_v39 }
 0x546   : >> { %v5671_v61 = vsel %vm5616_vm5, %v5593_v8, %v5670_v14 }
 0x547   : >> { %v5207_v62 = vpop.xlane.xlu1 %5206  ;;  %v5644_v46 = vsel %vm5618_vm6, %v5469_v24, %v5643_v37 }
 0x548   : >> { %v5231_v48 = vpop.xlane.xlu0 %5230  ;;  %v5501_v19 = vrot.slane %v5207_v62, %v11388_v39 }
 0x549   : >> { %v5533_v35 = vrot.slane %v5231_v48, %v11388_v39 }
 0x54c   : >> { %v10519_v23 = vpop.xlane.xlu1 %5254  ;;  %v10521_v15 = vpop.xlane.xlu0 %5278 }
 0x54d   : >> { %v5565_v7 = vrot.slane %v10519_v23, %v11388_v39  ;;  %v5597_v51 = vrot.slane %v10521_v15, %v11388_v39 }
 0x54f   : >> { %v5665_v41 = vsel %vm5618_vm6, %v5565_v7, %v5664_v0  ;;  %v5672_v24 = vsel %vm5618_vm6, %v5597_v51, %v5671_v61  ;;  %v11390_v7 = vmov %v11384_v18  ;;  %v11402_v0 = vld [vmem:[#allocation55_spill] sm:$0xff] (%p2259_p13) }
 0x550   : >> { %v5186_v33 = vpop.xlane.xlu1 %5185 }
 0x551   : >> { %v10523_v58 = vpop.xlane.xlu0 %5209  ;;  %v5473_v60 = vrot.slane %v5186_v33, %v11388_v39 }
 0x552   : >> { %v5505_v59 = vrot.slane %v10523_v58, %v11388_v39  ;;  %v5658_v58 = vsel %vm5618_vm6, %v5533_v35, %v5657_v55 }
 0x553   : >> { %v5645_v9 = vsel %vm5620_vm7, %v5473_v60, %v5644_v46  ;;  %v11391_v46 = vmov %v10397_v28  ;;  %v11400_v28 = vld [vmem:[#allocation48_spill] sm:$0xff] (%p2259_p13) }
 0x554   : >> { %v10525_v6 = vpop.xlane.xlu1 %5233 }
 0x555   : >> { %v10527_v29 = vpop.xlane.xlu0 %5257  ;;  %v5537_v43 = vrot.slane %v10525_v6, %v11388_v39 }
 0x556   : >> { %v5569_v3 = vrot.slane %v10527_v29, %v11388_v39 }
 0x558   : >> { %v10529_v50 = vpop.xlane.xlu1 %5281  ;;  %v5666_v20 = vsel %vm5620_vm7, %v5569_v3, %v5665_v41  ;;  %v11409_v3 = vld [vmem:[#allocation33_spill] sm:$0xff] (%p2259_p13) }
 0x559   : >> { %v5189_v63 = vpop.xlane.xlu0 %5188  ;;  %v5601_v23 = vrot.slane %v10529_v50, %v11388_v39 }
 0x55a   : >> { %v5477_v57 = vrot.slane %v5189_v63, %v11388_v39  ;;  %v5651_v63 = vsel %vm5618_vm6, %v5501_v19, %v5650_v30 }
 0x55b   : >> { %v5652_v52 = vsel %vm5620_vm7, %v5505_v59, %v5651_v63  ;;  %v5673_v21 = vsel %vm5620_vm7, %v5601_v23, %v5672_v24  ;;  %v11393_v59 = vmov %v10286_v17  ;;  %v11414_v24 = vld [vmem:[#allocation59_spill] sm:$0xff] (%p2259_p13) }
 0x55c   : >> { %v10531_v11 = vpop.xlane.xlu1 %5212  ;;  %v5646_v22 = vsel %vm5622_vm8, %v5477_v57, %v5645_v9 }
 0x55d   : >> { %v10533_v4 = vpop.xlane.xlu0 %5236  ;;  %v5509_v16 = vrot.slane %v10531_v11, %v11388_v39 }
 0x55e   : >> { %v5541_v62 = vrot.slane %v10533_v4, %v11388_v39 }
 0x55f   : >> { %v5653_v1 = vsel %vm5622_vm8, %v5509_v16, %v5652_v52 }
 0x560   : >> { %v10535_v2 = vpop.xlane.xlu1 %5260 }
 0x561   : >> { %v10537_v27 = vpop.xlane.xlu0 %5284  ;;  %v5573_v42 = vrot.slane %v10535_v2, %v11388_v39 }
 0x562   : >> { %v5605_v54 = vrot.slane %v10537_v27, %v11388_v39 }
 0x564   : >> { %v5192_v32 = vpop.xlane.xlu1 %5191 }
 0x565   : >> { %v5216_v36 = vpop.xlane.xlu0 %5215  ;;  %v5481_v45 = vrot.slane %v5192_v32, %v11388_v39  ;;  %v5659_v32 = vsel %vm5620_vm7, %v5537_v43, %v5658_v58  ;;  %v11403_v43 = vld [vmem:[#allocation50_spill] sm:$0xff] (%p2259_p13)  ;;  %v11405_v58 = vld [vmem:[#allocation51_spill] sm:$0xff] (%p2259_p13) }
 0x566   : >> { %v5513_v11 = vrot.slane %v5216_v36, %v11388_v39  ;;  %v5660_v36 = vsel %vm5622_vm8, %v5541_v62, %v5659_v32 }
 0x567   : >> { %v5647_v5 = vsel %vm5624_vm9, %v5481_v45, %v5646_v22 }
 0x568   : >> { %v5240_v13 = vpop.xlane.xlu1 %5239  ;;  %v5654_v12 = vsel %vm5624_vm9, %v5513_v11, %v5653_v1 }
 0x569   : >> { %v5264_v10 = vpop.xlane.xlu0 %5263  ;;  %v5545_v4 = vrot.slane %v5240_v13, %v11388_v39  ;;  %v5667_v13 = vsel %vm5622_vm8, %v5573_v42, %v5666_v20 }
 0x56a   : >> { %v5577_v49 = vrot.slane %v5264_v10, %v11388_v39  ;;  %v5674_v10 = vsel %vm5622_vm8, %v5605_v54, %v5673_v21 }
 0x56b   : >> { %v5661_v38 = vsel %vm5624_vm9, %v5545_v4, %v5660_v36  ;;  %v11396_v36 = vmov %v10198_v31  ;;  %v10683_v31 = vld [vmem:[%s11398_s19] ss:$0 sm:$0xff] (%p2259_p13)  ;;  %v11408_v4 = vld [vmem:[#allocation34_spill] sm:$0xff] (%p2259_p13) }
 0x56c   : >> { %v5288_v48 = vpop.xlane.xlu1 %5287  ;;  %v5668_v35 = vsel %vm5624_vm9, %v5577_v49, %v5667_v13  ;;  %v5726_v18 = vmul.f32 (%p2259_p13), %v10683_v31, %v11400_v28  ;;  %v5728_v46 = vmul.f32 (%p2259_p13), %v10683_v31, %v11402_v0  ;;  %v5729_v61 = vmul.f32 (%p2259_p13), %v10683_v31, %v11403_v43  ;;  %v11410_v36 = vld [vmem:[#allocation58_spill] sm:$0xff] (%p2259_p13)  ;;  %v11413_v49 = vld [vmem:[#allocation35_spill] sm:$0xff] (%p2259_p13) }
 0x56d   : >> { %v5195_v33 = vpop.xlane.xlu0 %5194  ;;  %v5609_v40 = vrot.slane %v5288_v48, %v11388_v39  ;;  %v5731_v22 = vmul.f32 (%p2259_p13), %v10683_v31, %v11405_v58  ;;  %v11423_v0 = vld [vmem:[#allocation42_spill] sm:$0xff] (%p2259_p13) }
 0x56e   : >> { %v5485_v6 = vrot.slane %v5195_v33, %v11388_v39  ;;  %v11404_v33 = vld [vmem:[#allocation56_spill] sm:$0xff] (%p2259_p13) }
 0x56f   : >> { %v5675_v57 = vsel %vm5624_vm9, %v5609_v40, %v5674_v10  ;;  %v5730_v63 = vmul.f32 (%p2259_p13), %v10683_v31, %v11404_v33 }
 0x570   : >> { %v5648_v47 = vsel %vm5626_vm10, %v5485_v6, %v5647_v5  ;;  %v5219_v25 = vpop.xlane.xlu1 %5218  ;;  %v11406_v6 = vld [vmem:[#allocation32_spill] sm:$0xff] (%p2259_p13)  ;;  %v11407_v5 = vld [vmem:[#allocation31_spill] sm:$0xff] (%p2259_p13) }
 0x571   : >> { %5689 = vst.msk [vmem:[%s10481_s14 + $0x18] sm:$0xff] %vm678_vm1, %v5648_v47  ;;  %v5243_v15 = vpop.xlane.xlu0 %5242  ;;  %v5517_v29 = vrot.slane %v5219_v25, %v11388_v39  ;;  %v5732_v25 = vmul.f32 (%p2259_p13), %v10683_v31, %v11410_v36 }
 0x572   : >> { %v5549_v50 = vrot.slane %v5243_v15, %v11388_v39  ;;  %v11411_v15 = vld [vmem:[#allocation36_spill] sm:$0xff] (%p2259_p13) }
 0x573   : >> { %v5655_v2 = vsel %vm5626_vm10, %v5517_v29, %v5654_v12  ;;  %v11389_v12 = vmov %v11386_v56  ;;  %2261 = sbr.rel (!%p2259_p13) target bundleno = 819 (0x333), region = 211  ;;  %v11401_v56 = vld [vmem:[#allocation49_spill] sm:$0xff] (%p2259_p13) }
 0x574   : >> { %v5662_v27 = vsel %vm5626_vm10, %v5549_v50, %v5661_v38  ;;  %5690 = vst.msk [vmem:[%s10481_s14 + $0x20] sm:$0xff] %vm678_vm1, %v5655_v2  ;;  %v5267_v8 = vpop.xlane.xlu1 %5266  ;;  %v5727_v55 = vmul.f32 (%p2259_p13), %v10683_v31, %v11401_v56  ;;  %v11412_v50 = vld [vmem:[#allocation52_spill] sm:$0xff] (%p2259_p13)  ;;  %v5734_v2 = vmul.f32 (%p2259_p13), %v10683_v31, %v11414_v24 }
 0x575   : >> { %5691 = vst.msk [vmem:[%s10481_s14 + $0x28] sm:$0xff] %vm678_vm1, %v5662_v27  ;;  %v5291_v60 = vpop.xlane.xlu0 %5290  ;;  %v5581_v14 = vrot.slane %v5267_v8, %v11388_v39  ;;  %v5733_v12 = vmul.f32 (%p2259_p13), %v10683_v31, %v11412_v50  ;;  %v11415_v27 = vld [vmem:[#allocation38_spill] sm:$0xff] (%p2259_p13)  ;;  %v11435_v24 = vld [vmem:[#allocation16_spill] sm:$0xff] (%p2259_p13) }
 0x576   : >> { %v5613_v19 = vrot.slane %v5291_v60, %v11388_v39  ;;  %v11395_v39 = vmov %v10196_v44  ;;  %v11416_v60 = vld [vmem:[#allocation53_spill] sm:$0xff] (%p2259_p13) }
 0x577   : >> { %v5669_v37 = vsel %vm5626_vm10, %v5581_v14, %v5668_v35  ;;  %v11394_v14 = vmov %v11358_v26  ;;  %v11399_v26 = vld [vmem:[#allocation47_spill] sm:$0xff] (%p2259_p13)  ;;  %v5735_v13 = vmul.f32 (%p2259_p13), %v10683_v31, %v11416_v60  ;;  %v11436_v60 = vld [vmem:[#allocation20_spill] sm:$0xff] (%p2259_p13) }
 0x578   : >> { %v5676_v30 = vsel %vm5626_vm10, %v5613_v19, %v5675_v57  ;;  %5692 = vst.msk [vmem:[%s10481_s14 + $0x30] sm:$0xff] %vm678_vm1, %v5669_v37  ;;  %v11392_v19 = vmov %v10363_v53  ;;  %v5725_v17 = vmul.f32 (%p2259_p13), %v10683_v31, %v11399_v26  ;;  %v11417_v14 = vld [vmem:[#allocation37_spill] sm:$0xff] (%p2259_p13)  ;;  %v11418_v57 = vld [vmem:[#allocation60_spill] sm:$0xff] (%p2259_p13) }
 0x579   : >> { %5693 = vst.msk [vmem:[%s10481_s14 + $0x38] sm:$0xff] %vm678_vm1, %v5676_v30  ;;  %v5736_v37 = vmul.f32 (%p2259_p13), %v10683_v31, %v11418_v57  ;;  %v11419_v30 = vld [vmem:[#allocation40_spill] sm:$0xff] (%p2259_p13) }
 0x57a   : > { %s11449_s13 = sld [smem:[#allocation11_spill]] (%p7319_p6)  ;;  %s6363_s14 = sshll.u32 (%p7319_p6), %s7130_s23, 5 }
 0x57b   : > { %s11450_s17 = sld [smem:[#allocation173_spill]] (%p7319_p6) }
 0x580   : > { %v5702_v44 = vld [vmem:[#allocation6] sm:$0xff]  ;;  %v5703_v53 = vld [vmem:[#allocation6 + $0x8] sm:$0xff]  ;;  %v5704_v39 = vld [vmem:[#allocation6 + $0x10] sm:$0xff]  ;;  %s6015_s15 = sadd.s32 (%p7319_p6), %s11449_s13, %s6363_s14 }
 0x581   : > { %v5705_v45 = vld [vmem:[#allocation6 + $0x18] sm:$0xff]  ;;  %v5706_v59 = vld [vmem:[#allocation6 + $0x20] sm:$0xff]  ;;  %v5741_v9 = vadd.f32 %v5725_v17, %v5702_v44  ;;  %v5742_v16 = vadd.f32 %v5726_v18, %v5703_v53  ;;  %v5743_v62 = vadd.f32 %v5727_v55, %v5704_v39  ;;  %v5707_v32 = vld [vmem:[#allocation6 + $0x28] sm:$0xff]  ;;  %s6359_s21 = sshll.u32 (%p7319_p6), %s6015_s15, 3 }
 0x582   : > { %v5744_v48 = vadd.f32 %v5728_v46, %v5705_v45  ;;  %v5745_v52 = vadd.f32 %v5729_v61, %v5706_v59  ;;  %v5708_v47 = vld [vmem:[#allocation6 + $0x30] sm:$0xff]  ;;  %v5746_v1 = vadd.f32 %v5730_v63, %v5707_v32  ;;  %v5709_v29 = vld [vmem:[#allocation6 + $0x38] sm:$0xff]  ;;  %v5710_v38 = vld [vmem:[#allocation6 + $0x40] sm:$0xff]  ;;  %s6017_s19 = scalar_lea.vmem (%p7319_p6), %s11450_s17, %s6359_s21 }
 0x583   : > { %v5757_v7 = vmul.f32 %v5741_v9, %v11406_v6  ;;  %v5758_v11 = vmul.f32 %v5742_v16, %v11407_v5  ;;  %v5759_v51 = vmul.f32 %v5743_v62, %v11408_v4  ;;  %v5747_v54 = vadd.f32 %v5731_v22, %v5708_v47  ;;  %v5711_v8 = vld [vmem:[#allocation6 + $0x48] sm:$0xff]  ;;  %v5712_v10 = vld [vmem:[#allocation6 + $0x50] sm:$0xff]  ;;  %v5713_v26 = vld [vmem:[#allocation6 + $0x58] sm:$0xff] }
 0x584   : > { %v5760_v23 = vmul.f32 %v5744_v48, %v11409_v3  ;;  %v5761_v42 = vmul.f32 %v5745_v52, %v11411_v15  ;;  %v5762_v40 = vmul.f32 %v5746_v1, %v11413_v49  ;;  %v5748_v41 = vadd.f32 %v5732_v25, %v5709_v29  ;;  %v11420_v17 = vld [vmem:[#allocation54_spill] sm:$0xff]  ;;  %v5714_v28 = vld [vmem:[#allocation6 + $0x60] sm:$0xff]  ;;  %v11421_v18 = vld [vmem:[#allocation39_spill] sm:$0xff] }
 0x585   : > { %6598 = vmatprep.mubr.msk.f32.mxu1 %vm678_vm1, %v5757_v7  ;;  %v5763_v20 = vmul.f32 %v5747_v54, %v11415_v27  ;;  %v5749_v21 = vadd.f32 %v5733_v12, %v5710_v38  ;;  %v5750_v35 = vadd.f32 %v5734_v2, %v5711_v8  ;;  %v5751_v44 = vadd.f32 %v5735_v13, %v5712_v10  ;;  %v11422_v55 = vld [vmem:[#allocation61_spill] sm:$0xff]  ;;  %v5715_v43 = vld [vmem:[#allocation6 + $0x68] sm:$0xff]  ;;  %v5716_v16 = vld [vmem:[#allocation6 + $0x70] sm:$0xff] }
 0x586   : > { %6599 = vmatmul.mubr.msk.f32.vlgmr.msra.gmra.mrb[32].mxu1 %vm678_vm1, %v5758_v11  ;;  %v5764_v19 = vmul.f32 %v5748_v41, %v11417_v14  ;;  %v5737_v53 = vmul.f32 %v10683_v31, %v11420_v17  ;;  %v5752_v56 = vadd.f32 %v5736_v37, %v5713_v26  ;;  %v5738_v45 = vmul.f32 %v10683_v31, %v11422_v55  ;;  %v11424_v61 = vld [vmem:[#allocation57_spill] sm:$0xff]  ;;  %v11426_v63 = vld [vmem:[#allocation62_spill] sm:$0xff]  ;;  %v11427_v22 = vld [vmem:[#allocation44_spill] sm:$0xff] }
 0x587   : > { %6601 = vmatprep.mubr.msk.f32.mxu1 %vm678_vm1, %v5759_v51  ;;  %v5765_v34 = vmul.f32 %v5749_v21, %v11419_v30  ;;  %v5766_v39 = vmul.f32 %v5750_v35, %v11421_v18  ;;  %v5767_v46 = vmul.f32 %v5751_v44, %v11423_v0  ;;  %v5739_v9 = vmul.f32 %v10683_v31, %v11424_v61  ;;  %v11425_v62 = vld [vmem:[#allocation41_spill] sm:$0xff]  ;;  %v5717_v5 = vld [vmem:[#allocation6 + $0x78] sm:$0xff]  ;;  %v11428_v11 = vld [vmem:[#allocation43_spill] sm:$0xff] }
 0x588   : > { %v5753_v59 = vadd.f32 %v5737_v53, %v5714_v28  ;;  %v5768_v48 = vmul.f32 %v5752_v56, %v11425_v62  ;;  %v5754_v33 = vadd.f32 %v5738_v45, %v5715_v43  ;;  %v5740_v58 = vmul.f32 %v10683_v31, %v11426_v63  ;;  %v11429_v52 = vld [vmem:[#allocation46_spill] sm:$0xff]  ;;  %v11430_v31 = vld [vmem:[#allocation45_spill] sm:$0xff]  ;;  %v11433_v54 = vld [vmem:[#allocation15_spill] sm:$0xff] }
 0x589   : > { %v5755_v7 = vadd.f32 %v5739_v9, %v5716_v16  ;;  %v6339_v3 = vld [vmem:[%s11431_s0] ss:$0 sm:$0xff]  ;;  %v11437_v10 = vld [vmem:[#allocation19_spill] sm:$0xff]  ;;  %v11438_v30 = vld [vmem:[#allocation22_spill] sm:$0xff] }
 0x58a   : > { %6602 = vmatmul.mubr.msk.f32.gmra.mrb[34].mxu1 %vm678_vm1, %v5760_v23  ;;  %v5769_v6 = vmul.f32 %v5753_v59, %v11427_v22  ;;  %v5770_v4 = vmul.f32 %v5754_v33, %v11428_v11  ;;  %v5756_v51 = vadd.f32 %v5740_v58, %v5717_v5  ;;  %v11432_v15 = vld [vmem:[#allocation17_spill] sm:$0xff]  ;;  %v11441_v55 = vld [vmem:[#allocation23_spill] sm:$0xff]  ;;  %v11442_v61 = vld [vmem:[#allocation26_spill] sm:$0xff] }
 0x58b   : > { %6604 = vmatprep.mubr.msk.f32.mxu1 %vm678_vm1, %v5761_v42  ;;  %v5771_v32 = vmul.f32 %v5755_v7, %v11429_v52  ;;  %v11439_v44 = vld [vmem:[#allocation21_spill] sm:$0xff]  ;;  %v11444_v22 = vld [vmem:[#allocation28_spill] sm:$0xff]  ;;  %v11445_v7 = vld [vmem:[#allocation27_spill] sm:$0xff] }
 0x58c   : > { %v5772_v47 = vmul.f32 %v5756_v51, %v11430_v31  ;;  %v11443_v16 = vld [vmem:[#allocation25_spill] sm:$0xff] }
 0x58e   : > { %6605 = vmatmul.mubr.msk.f32.gmra.mrb[36].mxu1 %vm678_vm1, %v5762_v40  ;;  %v11434_v40 = vld [vmem:[#allocation18_spill] sm:$0xff] }
 0x58f   : > { %6607 = vmatprep.mubr.msk.f32.mxu1 %vm678_vm1, %v5763_v20 }
 0x592   : > { %6608 = vmatmul.mubr.msk.f32.gmra.mrb[38].mxu1 %vm678_vm1, %v5764_v19 }
 0x593   : > { %6610 = vmatprep.mubr.msk.f32.mxu1 %vm678_vm1, %v5765_v34 }
 0x596   : > { %6611 = vmatmul.mubr.msk.f32.gmra.mrb[40].mxu1 %vm678_vm1, %v5766_v39  ;;  %v11440_v39 = vld [vmem:[#allocation24_spill] sm:$0xff] }
 0x597   : > { %6613 = vmatprep.mubr.msk.f32.mxu1 %vm678_vm1, %v5767_v46 }
 0x59a   : > { %6614 = vmatmul.mubr.msk.f32.gmra.mrb[42].mxu1 %vm678_vm1, %v5768_v48 }
 0x59b   : > { %6616 = vmatprep.mubr.msk.f32.mxu1 %vm678_vm1, %v5769_v6 }
 0x59e   : > { %6617 = vmatmul.mubr.msk.f32.gmra.mrb[44].mxu1 %vm678_vm1, %v5770_v4 }
 0x59f   : > { %6619 = vmatprep.mubr.msk.f32.mxu1 %vm678_vm1, %v5771_v32  ;;  %v11446_v32 = vld [vmem:[#allocation30_spill] sm:$0xff] }
 0x5a2   : > { %6620 = vmatmul.mubr.msk.f32.gmra.mrb[46].mxu1 %vm678_vm1, %v5772_v47  ;;  %v11447_v47 = vld [vmem:[#allocation29_spill] sm:$0xff] }
 0x659   : > { %v6600_v23 = vpop.f32.mrb[32].mxu1 }
 0x65a   : > { %v5901_v1 = vadd.f32 %v6600_v23, %v6339_v3  ;;  %v5895_v36 = vpop.f32.mrb[33].mxu1 }
 0x65b   : > { %v5896_v25 = vadd.f32 %v6339_v3, %v5895_v36 }
 0x65c   : > { %v5975_v42 = vadd.f32 %v5901_v1, %v11432_v15 }
 0x65d   : > { %v5974_v29 = vadd.f32 %v5896_v25, %v11433_v54  ;;  %v6603_v50 = vpop.f32.mrb[34].mxu1 }
 0x65e   : > { %5991 = vst.msk [vmem:[%s7359_s24 + $0x8] sm:$0xff] %vm678_vm1, %v5975_v42  ;;  %v5911_v12 = vadd.f32 %v6603_v50, %v6339_v3  ;;  %v5905_v38 = vpop.f32.mrb[35].mxu1 }
 0x65f   : > { %5990 = vst.msk [vmem:[%s7359_s24] sm:$0xff] %vm678_vm1, %v5974_v29  ;;  %v5906_v49 = vadd.f32 %v6339_v3, %v5905_v38 }
 0x660   : > { %v5977_v41 = vadd.f32 %v5911_v12, %v11434_v40 }
 0x661   : > { %v5976_v2 = vadd.f32 %v5906_v49, %v11435_v24  ;;  %v6606_v27 = vpop.f32.mrb[36].mxu1 }
 0x662   : > { %5993 = vst.msk [vmem:[%s7359_s24 + $0x18] sm:$0xff] %vm678_vm1, %v5977_v41  ;;  %v5921_v20 = vadd.f32 %v6606_v27, %v6339_v3  ;;  %v5915_v21 = vpop.f32.mrb[37].mxu1 }
 0x663   : > { %5992 = vst.msk [vmem:[%s7359_s24 + $0x10] sm:$0xff] %vm678_vm1, %v5976_v2  ;;  %v5916_v8 = vadd.f32 %v6339_v3, %v5915_v21 }
 0x664   : > { %v5979_v13 = vadd.f32 %v5921_v20, %v11436_v60 }
 0x665   : > { %v5978_v14 = vadd.f32 %v5916_v8, %v11437_v10  ;;  %v6609_v19 = vpop.f32.mrb[38].mxu1  ;;  %v6077_v1 = vld [vmem:[%s7359_s24 + $0x8] sm:$0xff] (%p7319_p6) }
 0x666   : > { %5995 = vst.msk [vmem:[%s7359_s24 + $0x28] sm:$0xff] %vm678_vm1, %v5979_v13  ;;  %v5931_v35 = vadd.f32 %v6609_v19, %v6339_v3  ;;  %v5925_v57 = vpop.f32.mrb[39].mxu1  ;;  %6078 = vst [vmem:[%s6017_s19 + $0x10] sm:$0xff] (%p7319_p6), %v6077_v1 }
 0x667   : > { %5994 = vst.msk [vmem:[%s7359_s24 + $0x20] sm:$0xff] %vm678_vm1, %v5978_v14  ;;  %v5926_v37 = vadd.f32 %v6339_v3, %v5925_v57 }
 0x668   : > { %v5981_v34 = vadd.f32 %v5931_v35, %v11438_v30 }
 0x669   : > { %v5980_v26 = vadd.f32 %v5926_v37, %v11439_v44  ;;  %v6612_v17 = vpop.f32.mrb[40].mxu1  ;;  %v6081_v25 = vld [vmem:[%s7359_s24 + $0x18] sm:$0xff] (%p7319_p6) }
 0x66a   : > { %5997 = vst.msk [vmem:[%s7359_s24 + $0x38] sm:$0xff] %vm678_vm1, %v5981_v34  ;;  %v5941_v53 = vadd.f32 %v6612_v17, %v6339_v3  ;;  %v5935_v28 = vpop.f32.mrb[41].mxu1  ;;  %v6079_v36 = vld [vmem:[%s7359_s24 + $0x10] sm:$0xff] (%p7319_p6)  ;;  %6082 = vst [vmem:[%s6017_s19 + $0x30] sm:$0xff] (%p7319_p6), %v6081_v25 }
 0x66b   : > { %5996 = vst.msk [vmem:[%s7359_s24 + $0x30] sm:$0xff] %vm678_vm1, %v5980_v26  ;;  %v5936_v18 = vadd.f32 %v6339_v3, %v5935_v28  ;;  %6080 = vst [vmem:[%s6017_s19 + $0x20] sm:$0xff] (%p7319_p6), %v6079_v36 }
 0x66c   : > { %v5983_v56 = vadd.f32 %v5941_v53, %v11440_v39 }
 0x66d   : > { %v5982_v45 = vadd.f32 %v5936_v18, %v11441_v55  ;;  %v6615_v0 = vpop.f32.mrb[42].mxu1  ;;  %v6085_v42 = vld [vmem:[%s7359_s24 + $0x28] sm:$0xff] (%p7319_p6) }
 0x66e   : > { %5999 = vst.msk [vmem:[%s7359_s24 + $0x48] sm:$0xff] %vm678_vm1, %v5983_v56  ;;  %v5951_v46 = vadd.f32 %v6615_v0, %v6339_v3  ;;  %v5945_v59 = vpop.f32.mrb[43].mxu1  ;;  %v6083_v15 = vld [vmem:[%s7359_s24 + $0x20] sm:$0xff] (%p7319_p6)  ;;  %6086 = vst [vmem:[%s6017_s19 + $0x50] sm:$0xff] (%p7319_p6), %v6085_v42 }
 0x66f   : > { %5998 = vst.msk [vmem:[%s7359_s24 + $0x40] sm:$0xff] %vm678_vm1, %v5982_v45  ;;  %v5946_v43 = vadd.f32 %v6339_v3, %v5945_v59  ;;  %6084 = vst [vmem:[%s6017_s19 + $0x40] sm:$0xff] (%p7319_p6), %v6083_v15 }
 0x670   : > { %v5985_v9 = vadd.f32 %v5951_v46, %v11442_v61 }
 0x671   : > { %v5984_v62 = vadd.f32 %v5946_v43, %v11443_v16  ;;  %v6618_v48 = vpop.f32.mrb[44].mxu1  ;;  %v6089_v29 = vld [vmem:[%s7359_s24 + $0x38] sm:$0xff] (%p7319_p6) }
 0x672   : > { %6001 = vst.msk [vmem:[%s7359_s24 + $0x58] sm:$0xff] %vm678_vm1, %v5985_v9  ;;  %v5961_v33 = vadd.f32 %v6618_v48, %v6339_v3  ;;  %v5955_v63 = vpop.f32.mrb[45].mxu1  ;;  %v6087_v54 = vld [vmem:[%s7359_s24 + $0x30] sm:$0xff] (%p7319_p6)  ;;  %6090 = vst [vmem:[%s6017_s19 + $0x70] sm:$0xff] (%p7319_p6), %v6089_v29 }
 0x673   : > { %6000 = vst.msk [vmem:[%s7359_s24 + $0x50] sm:$0xff] %vm678_vm1, %v5984_v62  ;;  %v5956_v58 = vadd.f32 %v6339_v3, %v5955_v63  ;;  %6088 = vst [vmem:[%s6017_s19 + $0x60] sm:$0xff] (%p7319_p6), %v6087_v54 }
 0x674   : > { %v5987_v6 = vadd.f32 %v5961_v33, %v11444_v22 }
 0x675   : > { %v5986_v5 = vadd.f32 %v5956_v58, %v11445_v7  ;;  %v6621_v11 = vpop.f32.mrb[46].mxu1  ;;  %6012 = sbr.rel (!%p7319_p6) target bundleno = 1668 (0x684), region = 137  ;;  %v6093_v12 = vld [vmem:[%s7359_s24 + $0x48] sm:$0xff] (%p7319_p6) }
 0x676   : > { %6003 = vst.msk [vmem:[%s7359_s24 + $0x68] sm:$0xff] %vm678_vm1, %v5987_v6  ;;  %v5971_v4 = vadd.f32 %v6621_v11, %v6339_v3  ;;  %v5965_v51 = vpop.f32.mrb[47].mxu1  ;;  %v6091_v50 = vld [vmem:[%s7359_s24 + $0x40] sm:$0xff] (%p7319_p6)  ;;  %6094 = vst [vmem:[%s6017_s19 + $0x90] sm:$0xff] (%p7319_p6), %v6093_v12 }
 0x677   : > { %6002 = vst.msk [vmem:[%s7359_s24 + $0x60] sm:$0xff] %vm678_vm1, %v5986_v5  ;;  %v5966_v52 = vadd.f32 %v6339_v3, %v5965_v51  ;;  %v6075_v3 = vld [vmem:[%s7359_s24] sm:$0xff] (%p7319_p6)  ;;  %6092 = vst [vmem:[%s6017_s19 + $0x80] sm:$0xff] (%p7319_p6), %v6091_v50 }
 0x678   : > { %v5989_v31 = vadd.f32 %v5971_v4, %v11446_v32  ;;  %6076 = vst [vmem:[%s6017_s19] sm:$0xff] (%p7319_p6), %v6075_v3 }
 0x679   : > { %v5988_v23 = vadd.f32 %v5966_v52, %v11447_v47  ;;  %v6097_v49 = vld [vmem:[%s7359_s24 + $0x58] sm:$0xff] (%p7319_p6) }
 0x67a   : > { %6005 = vst.msk [vmem:[%s7359_s24 + $0x78] sm:$0xff] %vm678_vm1, %v5989_v31  ;;  %v6095_v38 = vld [vmem:[%s7359_s24 + $0x50] sm:$0xff] (%p7319_p6)  ;;  %6098 = vst [vmem:[%s6017_s19 + $0xb0] sm:$0xff] (%p7319_p6), %v6097_v49 }
 0x67b   : > { %6004 = vst.msk [vmem:[%s7359_s24 + $0x70] sm:$0xff] %vm678_vm1, %v5988_v23  ;;  %6096 = vst [vmem:[%s6017_s19 + $0xa0] sm:$0xff] (%p7319_p6), %v6095_v38 }
 0x67d   : > { %v6101_v41 = vld [vmem:[%s7359_s24 + $0x68] sm:$0xff] }
 0x67e   : > { %v6099_v40 = vld [vmem:[%s7359_s24 + $0x60] sm:$0xff]  ;;  %6102 = vst [vmem:[%s6017_s19 + $0xd0] sm:$0xff] %v6101_v41 }
 0x67f   : > { %6100 = vst [vmem:[%s6017_s19 + $0xc0] sm:$0xff] %v6099_v40 }
 0x681   : > { %v6105_v2 = vld [vmem:[%s7359_s24 + $0x78] sm:$0xff] }
 0x682   : > { %v6103_v24 = vld [vmem:[%s7359_s24 + $0x70] sm:$0xff]  ;;  %6106 = vst [vmem:[%s6017_s19 + $0xf0] sm:$0xff] %v6105_v2 }
 0x683   : > { %6104 = vst [vmem:[%s6017_s19 + $0xe0] sm:$0xff] %v6103_v24 }
 0x684 PF: > { %s26_s27 = sadd.s32 1, %s7146_s27   ;;  %s11451_s20 = sld [smem:[#allocation12_spill]] }
 0x685   : > { %p23_p0 = scmp.ge.s32.totalorder %s26_s27, 6   ;;  %s11452_s30 = sld [smem:[#allocation13_spill]] }
 0x686   : > { %s11453_s21 = smov %s7126_s22  ;;  %s11454_s22 = smov %s7327_s16 }
 0x687   : > { %s11455_s23 = smov %s7138_s25  ;;  %s11456_s24 = smov %s7142_s26 }
 0x688   :  { %25 = sbr.rel (!%p23_p0) target bundleno = 10 (0xa), region = 222 }
 0x68a   : > { %s11457_s25 = smov %s11451_s20 }
 0x68b   : > { %s11458_s26 = smov %s11452_s30 }

</bundles_post_ra>
